<compile_context>
chip_gen: v7x
topology: tpu7x:2x2x1
jax: 0.10.0
libtpu: 0.0.40
codegen_flags: <defaults>
</compile_context>

<pallas_src>
import functools
import math

import jax
import jax.numpy as jnp
import numpy as np
from jax.experimental import pallas as pl
from jax.experimental.pallas import tpu as pltpu


# ------------------------------------------------------------------ helpers
def kernel_mus(n_kernels):
    l_mu = [1.0]
    if n_kernels == 1:
        return l_mu
    bin_size = 2.0 / (n_kernels - 1)
    l_mu.append(1 - bin_size / 2)
    for i in range(1, n_kernels - 1):
        l_mu.append(l_mu[i] - bin_size)
    return l_mu


def kernel_sigmas(n_kernels):
    l_sigma = [0.001]
    if n_kernels == 1:
        return l_sigma
    l_sigma += [0.1] * (n_kernels - 1)
    return l_sigma


# ------------------------------------------------------------------ kernel
def knrm_kernel(q_ref, d_ref, mq_ref, md_ref, w_ref, b_ref, out_ref,
                *, mus, sigmas):
    """One block of `bB` batch elements per grid step, batch on the lane axis.

    q_ref : (bB, Lq, D) VMEM     mq_ref : (bB, Lq) VMEM
    d_ref : (bB, Ld, D) VMEM     md_ref : (bB, Ld) VMEM
    w_ref : (K,) SMEM            b_ref  : (1,)     SMEM
    out_ref : (1, 1, bB) VMEM    (lane-dense block of scores)
    """
    q = q_ref[...]                      # [bB, Lq, D]
    d = d_ref[...]                      # [bB, Ld, D]
    bB, Lq, _ = q.shape
    Ld = d.shape[1]

    # F.normalize(x, 2, dim=2) == x / max(||x||, 1e-12) == x * rsqrt(max(||x||^2, 1e-24))
    qn = q * jax.lax.rsqrt(jnp.maximum(jnp.sum(q * q, axis=-1, keepdims=True), 1e-24))
    dn = d * jax.lax.rsqrt(jnp.maximum(jnp.sum(d * d, axis=-1, keepdims=True), 1e-24))

    # Batched cosine-similarity on the MXU, emitted directly in batch-minor
    # (lane-dense) order: [Lq, Ld, bB].  One relayout per grid step here buys
    # full-lane occupancy for all ~30 slab ops of the Gaussian chain below.
    sim = jnp.einsum('bqd,bkd->qkb', qn, dn,
                     preferred_element_type=jnp.float32)       # [Lq, Ld, bB]

    # Lane-dense masks (tiny in-kernel 2-D transposes).
    mq = mq_ref[...].T                                          # [Lq, bB]
    md = md_ref[...].T[None, :, :]                              # [1, Ld, bB]

    acc = jnp.zeros((Lq, bB), jnp.float32)

    def accum(acc, e, k):
        # `e` already carries the doc mask; reduce over the Ld axis.
        ps = jnp.sum(e, axis=1)                                 # [Lq, bB]
        return acc + w_ref[k] * jnp.log(jnp.maximum(ps, 1e-10))

    K = len(mus)

    # k = 0 kernel (mu = 1, sigma = 0.001): its own exp (different sigma).
    # Fold the doc mask in once; zeros propagate through the recurrence below.
    inv2s0 = 1.0 / (2.0 * float(sigmas[0]) ** 2)
    acc = accum(acc, jnp.exp(-inv2s0 * (sim - float(mus[0])) ** 2) * md, 0)

    if K > 1:
        # Remaining kernels share sigma == sigmas[1] and equally-spaced mus:
        # E_{j+-1} = E_j * exp(+-2*delta*sim/(2*sigma^2)) * const.  Anchoring
        # at the mu closest to 0 keeps every recurrence constant <= 1, so
        # intermediates never over/underflow before the exact Gaussian would.
        tail = [float(m) for m in mus[1:]]                      # descending mus
        inv2s = 1.0 / (2.0 * float(sigmas[1]) ** 2)
        a = min(range(len(tail)), key=lambda i: abs(tail[i]))
        e_anchor = jnp.exp(-inv2s * (sim - tail[a]) ** 2) * md  # masked once
        acc = accum(acc, e_anchor, 1 + a)

        if len(tail) > 1:
            delta = tail[0] - tail[1]                           # positive spacing

            # Walk toward larger mu: E_{j-1} = E_j * exp(+2*inv2s*delta*sim) * c
            if a > 0:
                g_up = jnp.exp((2.0 * inv2s * delta) * sim)
                e = e_anchor
                for j in range(a, 0, -1):
                    c = math.exp(-inv2s * delta * (tail[j] + tail[j - 1]))
                    e = e * g_up * c
                    acc = accum(acc, e, 1 + (j - 1))

            # Walk toward smaller mu: E_{j+1} = E_j * exp(-2*inv2s*delta*sim) * c
            if a < len(tail) - 1:
                g_dn = jnp.exp((-2.0 * inv2s * delta) * sim)
                e = e_anchor
                for j in range(a, len(tail) - 1):
                    c = math.exp(inv2s * delta * (tail[j] + tail[j + 1]))
                    e = e * g_dn * c
                    acc = accum(acc, e, 1 + (j + 1))

    # 0.01 * mask_q applied ONCE, after the log (do not fold earlier), reduce
    # over Lq, dense bias, tanh.  `score` is already lane-major, so this is a
    # relayout-free, full-lane store when bB is a multiple of 128.
    score = jnp.sum(acc * (0.01 * mq), axis=0) + b_ref[0]       # [bB]
    out_ref[...] = jnp.tanh(score).reshape(1, 1, bB)


# ------------------------------------------------------------------ wrapper
def knrm_forward(inputs_q, inputs_d, mask_q, mask_d, w, b, mus, sigmas,
                 block_b=128):
    B, Lq, D = inputs_q.shape
    _, Ld, _ = inputs_d.shape

    # ---- choose the batch block -------------------------------------------
    # Per-step working set: double-buffered embedding blocks + the handful of
    # [Lq, Ld, bB] f32 slabs the Gaussian chain touches + masks.  Budget it
    # against the smallest scoped-VMEM generation (v7x: 32 MiB scoped).
    def step_bytes(bb):
        return (2 * bb * (Lq + Ld) * D * 4          # dbl-buffered q/d blocks
                + 8 * bb * Lq * Ld * 4              # sim / exp / recurrence slabs
                + 4 * bb * (Lq + Ld) * 4)           # masks (+ transposed copies)

    block_b = max(8, (int(block_b) // 8) * 8)
    while block_b > 8 and step_bytes(block_b) > 20 * 1024 * 1024:
        block_b = max(8, (block_b // 2 // 8) * 8)

    if B <= block_b:
        bB = B                       # whole batch in one grid step, no padding
    else:
        # Prefer a multiple-of-8 block that DIVIDES B, so the big embedding
        # tensors never take an extra HBM round-trip through jnp.pad.
        bB = 0
        for cand in range(block_b, 7, -8):
            if B % cand == 0:
                bB = cand
                break
        if bB < max(8, block_b // 4):
            bB = block_b             # awkward batch size: pad the tail block
    nblk = pl.cdiv(B, bB)
    Bp = nblk * bB

    q = inputs_q.astype(jnp.float32)
    d = inputs_d.astype(jnp.float32)
    mq = mask_q.astype(jnp.float32).reshape(B, Lq)
    md = mask_d.astype(jnp.float32).reshape(B, Ld)

    if Bp != B:
        # TODO(synk): replace this fallback with an overlapped/clamped tail
        # block so the embedding tensors never need an extra HBM copy.
        pad = Bp - B
        q = jnp.pad(q, ((0, pad), (0, 0), (0, 0)))
        d = jnp.pad(d, ((0, pad), (0, 0), (0, 0)))
        mq = jnp.pad(mq, ((0, pad), (0, 0)))
        md = jnp.pad(md, ((0, pad), (0, 0)))

    kernel = functools.partial(knrm_kernel,
                               mus=tuple(float(m) for m in mus),
                               sigmas=tuple(float(s) for s in sigmas))

    out = pl.pallas_call(
        kernel,
        out_shape=jax.ShapeDtypeStruct((nblk, 1, bB), jnp.float32),
        grid=(nblk,),
        in_specs=[
            pl.BlockSpec((bB, Lq, D), lambda i: (i, 0, 0)),
            pl.BlockSpec((bB, Ld, D), lambda i: (i, 0, 0)),
            pl.BlockSpec((bB, Lq), lambda i: (i, 0)),
            pl.BlockSpec((bB, Ld), lambda i: (i, 0)),
            pl.BlockSpec(memory_space=pltpu.MemorySpace.SMEM),   # dense weight
            pl.BlockSpec(memory_space=pltpu.MemorySpace.SMEM),   # dense bias
        ],
        out_specs=pl.BlockSpec((1, 1, bB), lambda i: (i, 0, 0)),
        compiler_params=pltpu.CompilerParams(
            dimension_semantics=("parallel",)),
    )(q, d, mq, md,
      w.astype(jnp.float32).reshape(-1), b.astype(jnp.float32).reshape(-1))

    return out.reshape(Bp)[:B].reshape(B, 1)


# ------------------------------------------------------------------ pure-JAX reference
def knrm_reference(inputs_q, inputs_d, mask_q, mask_d, w, b, mus, sigmas):
    B, Lq, D = inputs_q.shape
    _, Ld, _ = inputs_d.shape
    qn = inputs_q / jnp.maximum(
        jnp.sqrt(jnp.sum(inputs_q * inputs_q, axis=2, keepdims=True)), 1e-12)
    dn = inputs_d / jnp.maximum(
        jnp.sqrt(jnp.sum(inputs_d * inputs_d, axis=2, keepdims=True)), 1e-12)
    sim = jnp.einsum('bqd,bkd->bqk', qn, dn)[..., None]           # [B,Lq,Ld,1]
    mu = jnp.asarray(mus, jnp.float32).reshape(1, 1, 1, -1)
    sigma = jnp.asarray(sigmas, jnp.float32).reshape(1, 1, 1, -1)
    md = mask_d.astype(jnp.float32).reshape(B, 1, Ld, 1)
    mq = mask_q.astype(jnp.float32).reshape(B, Lq, 1)
    pv = jnp.exp(-((sim - mu) ** 2) / (sigma ** 2) / 2.0) * md    # [B,Lq,Ld,K]
    ps = jnp.sum(pv, axis=2)                                      # [B,Lq,K]
    lps = jnp.log(jnp.maximum(ps, 1e-10)) * 0.01 * mq             # [B,Lq,K]
    feats = jnp.sum(lps, axis=1)                                  # [B,K]
    return jnp.tanh(feats @ w + b[0]).reshape(B, 1)


def _check(tag, out, ref):
    out = np.asarray(jax.block_until_ready(out))
    ref = np.asarray(ref)
    if out.shape != ref.shape:
        raise AssertionError(f"{tag}: shape {out.shape} vs {ref.shape}")
    if not np.allclose(out, ref, atol=1e-3, rtol=1e-3):
        raise AssertionError(f"{tag}: mismatch\npallas={out}\nref={ref}")


# ------------------------------------------------------------------ main
if __name__ == "__main__":
    Lq, Ld, D, K = 8, 16, 32, 11
    mus = kernel_mus(K)
    sigmas = kernel_sigmas(K)

    key = jax.random.PRNGKey(0)
    kq, kd, kw, kb, k2 = jax.random.split(key, 5)

    # nn.Linear(K, 1) parameters, deterministic (uniform(-1/sqrt(K), 1/sqrt(K)))
    bound = 1.0 / math.sqrt(K)
    w = jax.random.uniform(kw, (K,), jnp.float32, -bound, bound)
    b = jax.random.uniform(kb, (1,), jnp.float32, -bound, bound)

    # --- check 1: tiny batch (B=2), single block, partial masks -------------
    B = 2
    inputs_q = jax.random.normal(kq, (B, Lq, D), jnp.float32)
    inputs_d = jax.random.normal(kd, (B, Ld, D), jnp.float32)
    mask_q = jnp.array([[1.0] * Lq,
                        [1.0] * 6 + [0.0] * (Lq - 6)], jnp.float32)
    mask_d = jnp.array([[1.0] * Ld,
                        [1.0] * 10 + [0.0] * (Ld - 10)], jnp.float32)

    out = knrm_forward(inputs_q, inputs_d, mask_q, mask_d, w, b, mus, sigmas)
    ref = knrm_reference(inputs_q, inputs_d, mask_q, mask_d, w, b, mus, sigmas)
    _check("small", out, ref)

    # --- check 2: B=256 -> two full lane-dense blocks (bB=128), no padding --
    B2 = 256
    k2q, k2d, k2mq, k2md = jax.random.split(k2, 4)
    q2 = jax.random.normal(k2q, (B2, Lq, D), jnp.float32)
    d2 = jax.random.normal(k2d, (B2, Ld, D), jnp.float32)
    mq2 = (jax.random.uniform(k2mq, (B2, Lq)) > 0.2).astype(jnp.float32)
    md2 = (jax.random.uniform(k2md, (B2, Ld)) > 0.2).astype(jnp.float32)

    out2 = knrm_forward(q2, d2, mq2, md2, w, b, mus, sigmas)
    ref2 = knrm_reference(q2, d2, mq2, md2, w, b, mus, sigmas)
    _check("multi-block", out2, ref2)

    # --- check 3: ragged batch (B=20, block_b=8) exercising the pad fallback -
    B3 = 20
    k3q, k3d, k3mq, k3md = jax.random.split(jax.random.PRNGKey(1), 4)
    q3 = jax.random.normal(k3q, (B3, Lq, D), jnp.float32)
    d3 = jax.random.normal(k3d, (B3, Ld, D), jnp.float32)
    mq3 = (jax.random.uniform(k3mq, (B3, Lq)) > 0.2).astype(jnp.float32)
    md3 = (jax.random.uniform(k3md, (B3, Ld)) > 0.2).astype(jnp.float32)

    out3 = knrm_forward(q3, d3, mq3, md3, w, b, mus, sigmas, block_b=8)
    ref3 = knrm_reference(q3, d3, mq3, md3, w, b, mus, sigmas)
    _check("ragged", out3, ref3)

    print("KERNEL_OK")
</pallas_src>

<mosaic_0001>
module attributes {stable_mosaic.version = 11 : i64} {
  func.func @knrm_kernel(%arg0: i32, %arg1: memref<2x8x32xf32, #tpu.memory_space<vmem>>, %arg2: memref<2x16x32xf32, #tpu.memory_space<vmem>>, %arg3: memref<2x8xf32, #tpu.memory_space<vmem>>, %arg4: memref<2x16xf32, #tpu.memory_space<vmem>>, %arg5: memref<11xf32, #tpu.memory_space<smem>>, %arg6: memref<1xf32, #tpu.memory_space<smem>>, %arg7: memref<1x1x2xf32, #tpu.memory_space<vmem>>) attributes {dimension_semantics = [#tpu.dimension_semantics<parallel>], iteration_bounds = array<i64: 1>, scalar_prefetch = 0 : i64, scratch_operands = 0 : i64, tpu.core_type = #tpu.core_type<tc>, window_params = [{transform_indices = @transform_0, window_bounds = array<i64: 2, 8, 32>}, {transform_indices = @transform_1, window_bounds = array<i64: 2, 16, 32>}, {transform_indices = @transform_2, window_bounds = array<i64: 2, 8>}, {transform_indices = @transform_3, window_bounds = array<i64: 2, 16>}, {transform_indices = @transform_4, window_bounds = array<i64: 11>}, {transform_indices = @transform_5, window_bounds = array<i64: 1>}, {transform_indices = @transform_6, window_bounds = array<i64: 1, 1, 2>}]} {
    %c0 = arith.constant 0 : index
    %c0_0 = arith.constant 0 : index
    %c0_1 = arith.constant 0 : index
    %0 = vector.load %arg1[%c0, %c0_0, %c0_1] : memref<2x8x32xf32, #tpu.memory_space<vmem>>, vector<2x8x32xf32>
    %c0_2 = arith.constant 0 : index
    %c0_3 = arith.constant 0 : index
    %c0_4 = arith.constant 0 : index
    %1 = vector.load %arg2[%c0_2, %c0_3, %c0_4] : memref<2x16x32xf32, #tpu.memory_space<vmem>>, vector<2x16x32xf32>
    %2 = arith.mulf %0, %0 : vector<2x8x32xf32>
    %cst = arith.constant dense<0.000000e+00> : vector<2x8xf32>
    %3 = vector.multi_reduction <add>, %2, %cst [2] : vector<2x8x32xf32> to vector<2x8xf32>
    %4 = vector.shape_cast %3 : vector<2x8xf32> to vector<2x8x1xf32>
    %cst_5 = arith.constant 1.000000e-24 : f32
    %5 = vector.broadcast %cst_5 : f32 to vector<2x8x1xf32>
    %6 = arith.maximumf %4, %5 : vector<2x8x1xf32>
    %7 = math.rsqrt %6 : vector<2x8x1xf32>
    %8 = vector.broadcast %7 : vector<2x8x1xf32> to vector<2x8x32xf32>
    %9 = arith.mulf %0, %8 : vector<2x8x32xf32>
    %10 = arith.mulf %1, %1 : vector<2x16x32xf32>
    %cst_6 = arith.constant dense<0.000000e+00> : vector<2x16xf32>
    %11 = vector.multi_reduction <add>, %10, %cst_6 [2] : vector<2x16x32xf32> to vector<2x16xf32>
    %12 = vector.shape_cast %11 : vector<2x16xf32> to vector<2x16x1xf32>
    %cst_7 = arith.constant 1.000000e-24 : f32
    %13 = vector.broadcast %cst_7 : f32 to vector<2x16x1xf32>
    %14 = arith.maximumf %12, %13 : vector<2x16x1xf32>
    %15 = math.rsqrt %14 : vector<2x16x1xf32>
    %16 = vector.broadcast %15 : vector<2x16x1xf32> to vector<2x16x32xf32>
    %17 = arith.mulf %1, %16 : vector<2x16x32xf32>
    "tpu.trace_start"() <{level = 10 : i32, message = "bqd,bkd->qkb"}> : () -> ()
    %cst_8 = arith.constant dense<0.000000e+00> : vector<2x16x8xf32>
    %18 = tpu.matmul %17, %9, %cst_8 {dimension_numbers = #tpu.dot_dimension_numbers<[2], [2], [1], [1], [0, 0, 0, 1, 1, 1], [0], [0]>} : vector<2x16x32xf32>, vector<2x8x32xf32>, vector<2x16x8xf32> -> vector<2x16x8xf32>
    %19 = tpu.transpose %18, [2, 1, 0] : vector<2x16x8xf32> -> vector<8x16x2xf32>
    "tpu.trace_stop"() : () -> ()
    %c0_9 = arith.constant 0 : index
    %c0_10 = arith.constant 0 : index
    %20 = vector.load %arg3[%c0_9, %c0_10] : memref<2x8xf32, #tpu.memory_space<vmem>>, vector<2x8xf32>
    %21 = tpu.transpose %20, [1, 0] : vector<2x8xf32> -> vector<8x2xf32>
    %c0_11 = arith.constant 0 : index
    %c0_12 = arith.constant 0 : index
    %22 = vector.load %arg4[%c0_11, %c0_12] : memref<2x16xf32, #tpu.memory_space<vmem>>, vector<2x16xf32>
    %23 = tpu.transpose %22, [1, 0] : vector<2x16xf32> -> vector<16x2xf32>
    %24 = vector.shape_cast %23 : vector<16x2xf32> to vector<1x16x2xf32>
    %cst_13 = arith.constant 0.000000e+00 : f32
    %25 = vector.broadcast %cst_13 : f32 to vector<8x2xf32>
    %cst_14 = arith.constant 1.000000e+00 : f32
    %26 = vector.broadcast %cst_14 : f32 to vector<8x16x2xf32>
    %27 = arith.subf %19, %26 : vector<8x16x2xf32>
    %28 = arith.mulf %27, %27 : vector<8x16x2xf32>
    %cst_15 = arith.constant -5.000000e+05 : f32
    %29 = vector.broadcast %cst_15 : f32 to vector<8x16x2xf32>
    %30 = arith.mulf %29, %28 : vector<8x16x2xf32>
    %31 = math.exp %30 : vector<8x16x2xf32>
    %32 = vector.broadcast %24 : vector<1x16x2xf32> to vector<8x16x2xf32>
    %33 = arith.mulf %31, %32 : vector<8x16x2xf32>
    %cst_16 = arith.constant dense<0.000000e+00> : vector<8x2xf32>
    %34 = vector.multi_reduction <add>, %33, %cst_16 [1] : vector<8x16x2xf32> to vector<8x2xf32>
    %c0_17 = arith.constant 0 : index
    %35 = memref.load %arg5[%c0_17] : memref<11xf32, #tpu.memory_space<smem>>
    %cst_18 = arith.constant 1.000000e-10 : f32
    %36 = vector.broadcast %cst_18 : f32 to vector<8x2xf32>
    %37 = arith.maximumf %34, %36 : vector<8x2xf32>
    %38 = math.log %37 : vector<8x2xf32>
    %39 = vector.broadcast %35 : f32 to vector<8x2xf32>
    %40 = arith.mulf %39, %38 : vector<8x2xf32>
    %41 = arith.addf %25, %40 : vector<8x2xf32>
    %cst_19 = arith.constant 1.000000e-01 : f32
    %42 = vector.broadcast %cst_19 : f32 to vector<8x16x2xf32>
    %43 = arith.subf %19, %42 : vector<8x16x2xf32>
    %44 = arith.mulf %43, %43 : vector<8x16x2xf32>
    %cst_20 = arith.constant -5.000000e+01 : f32
    %45 = vector.broadcast %cst_20 : f32 to vector<8x16x2xf32>
    %46 = arith.mulf %45, %44 : vector<8x16x2xf32>
    %47 = math.exp %46 : vector<8x16x2xf32>
    %48 = vector.broadcast %24 : vector<1x16x2xf32> to vector<8x16x2xf32>
    %49 = arith.mulf %47, %48 : vector<8x16x2xf32>
    %cst_21 = arith.constant dense<0.000000e+00> : vector<8x2xf32>
    %50 = vector.multi_reduction <add>, %49, %cst_21 [1] : vector<8x16x2xf32> to vector<8x2xf32>
    %c5 = arith.constant 5 : index
    %51 = memref.load %arg5[%c5] : memref<11xf32, #tpu.memory_space<smem>>
    %cst_22 = arith.constant 1.000000e-10 : f32
    %52 = vector.broadcast %cst_22 : f32 to vector<8x2xf32>
    %53 = arith.maximumf %50, %52 : vector<8x2xf32>
    %54 = math.log %53 : vector<8x2xf32>
    %55 = vector.broadcast %51 : f32 to vector<8x2xf32>
    %56 = arith.mulf %55, %54 : vector<8x2xf32>
    %57 = arith.addf %41, %56 : vector<8x2xf32>
    %cst_23 = arith.constant 2.000000e+01 : f32
    %58 = vector.broadcast %cst_23 : f32 to vector<8x16x2xf32>
    %59 = arith.mulf %58, %19 : vector<8x16x2xf32>
    %60 = math.exp %59 : vector<8x16x2xf32>
    %61 = arith.mulf %49, %60 : vector<8x16x2xf32>
    %cst_24 = arith.constant 0.0183156393 : f32
    %62 = vector.broadcast %cst_24 : f32 to vector<8x16x2xf32>
    %63 = arith.mulf %61, %62 : vector<8x16x2xf32>
    %cst_25 = arith.constant dense<0.000000e+00> : vector<8x2xf32>
    %64 = vector.multi_reduction <add>, %63, %cst_25 [1] : vector<8x16x2xf32> to vector<8x2xf32>
    %c4 = arith.constant 4 : index
    %65 = memref.load %arg5[%c4] : memref<11xf32, #tpu.memory_space<smem>>
    %cst_26 = arith.constant 1.000000e-10 : f32
    %66 = vector.broadcast %cst_26 : f32 to vector<8x2xf32>
    %67 = arith.maximumf %64, %66 : vector<8x2xf32>
    %68 = math.log %67 : vector<8x2xf32>
    %69 = vector.broadcast %65 : f32 to vector<8x2xf32>
    %70 = arith.mulf %69, %68 : vector<8x2xf32>
    %71 = arith.addf %57, %70 : vector<8x2xf32>
    %72 = arith.mulf %63, %60 : vector<8x16x2xf32>
    %cst_27 = arith.constant 3.35462624E-4 : f32
    %73 = vector.broadcast %cst_27 : f32 to vector<8x16x2xf32>
    %74 = arith.mulf %72, %73 : vector<8x16x2xf32>
    %cst_28 = arith.constant dense<0.000000e+00> : vector<8x2xf32>
    %75 = vector.multi_reduction <add>, %74, %cst_28 [1] : vector<8x16x2xf32> to vector<8x2xf32>
    %c3 = arith.constant 3 : index
    %76 = memref.load %arg5[%c3] : memref<11xf32, #tpu.memory_space<smem>>
    %cst_29 = arith.constant 1.000000e-10 : f32
    %77 = vector.broadcast %cst_29 : f32 to vector<8x2xf32>
    %78 = arith.maximumf %75, %77 : vector<8x2xf32>
    %79 = math.log %78 : vector<8x2xf32>
    %80 = vector.broadcast %76 : f32 to vector<8x2xf32>
    %81 = arith.mulf %80, %79 : vector<8x2xf32>
    %82 = arith.addf %71, %81 : vector<8x2xf32>
    %83 = arith.mulf %74, %60 : vector<8x16x2xf32>
    %cst_30 = arith.constant 6.14421242E-6 : f32
    %84 = vector.broadcast %cst_30 : f32 to vector<8x16x2xf32>
    %85 = arith.mulf %83, %84 : vector<8x16x2xf32>
    %cst_31 = arith.constant dense<0.000000e+00> : vector<8x2xf32>
    %86 = vector.multi_reduction <add>, %85, %cst_31 [1] : vector<8x16x2xf32> to vector<8x2xf32>
    %c2 = arith.constant 2 : index
    %87 = memref.load %arg5[%c2] : memref<11xf32, #tpu.memory_space<smem>>
    %cst_32 = arith.constant 1.000000e-10 : f32
    %88 = vector.broadcast %cst_32 : f32 to vector<8x2xf32>
    %89 = arith.maximumf %86, %88 : vector<8x2xf32>
    %90 = math.log %89 : vector<8x2xf32>
    %91 = vector.broadcast %87 : f32 to vector<8x2xf32>
    %92 = arith.mulf %91, %90 : vector<8x2xf32>
    %93 = arith.addf %82, %92 : vector<8x2xf32>
    %94 = arith.mulf %85, %60 : vector<8x16x2xf32>
    %cst_33 = arith.constant 1.12535176E-7 : f32
    %95 = vector.broadcast %cst_33 : f32 to vector<8x16x2xf32>
    %96 = arith.mulf %94, %95 : vector<8x16x2xf32>
    %cst_34 = arith.constant dense<0.000000e+00> : vector<8x2xf32>
    %97 = vector.multi_reduction <add>, %96, %cst_34 [1] : vector<8x16x2xf32> to vector<8x2xf32>
    %c1 = arith.constant 1 : index
    %98 = memref.load %arg5[%c1] : memref<11xf32, #tpu.memory_space<smem>>
    %cst_35 = arith.constant 1.000000e-10 : f32
    %99 = vector.broadcast %cst_35 : f32 to vector<8x2xf32>
    %100 = arith.maximumf %97, %99 : vector<8x2xf32>
    %101 = math.log %100 : vector<8x2xf32>
    %102 = vector.broadcast %98 : f32 to vector<8x2xf32>
    %103 = arith.mulf %102, %101 : vector<8x2xf32>
    %104 = arith.addf %93, %103 : vector<8x2xf32>
    %cst_36 = arith.constant -2.000000e+01 : f32
    %105 = vector.broadcast %cst_36 : f32 to vector<8x16x2xf32>
    %106 = arith.mulf %105, %19 : vector<8x16x2xf32>
    %107 = math.exp %106 : vector<8x16x2xf32>
    %108 = arith.mulf %49, %107 : vector<8x16x2xf32>
    %cst_37 = arith.constant 1.000000e+00 : f32
    %109 = vector.broadcast %cst_37 : f32 to vector<8x16x2xf32>
    %110 = arith.mulf %108, %109 : vector<8x16x2xf32>
    %cst_38 = arith.constant dense<0.000000e+00> : vector<8x2xf32>
    %111 = vector.multi_reduction <add>, %110, %cst_38 [1] : vector<8x16x2xf32> to vector<8x2xf32>
    %c6 = arith.constant 6 : index
    %112 = memref.load %arg5[%c6] : memref<11xf32, #tpu.memory_space<smem>>
    %cst_39 = arith.constant 1.000000e-10 : f32
    %113 = vector.broadcast %cst_39 : f32 to vector<8x2xf32>
    %114 = arith.maximumf %111, %113 : vector<8x2xf32>
    %115 = math.log %114 : vector<8x2xf32>
    %116 = vector.broadcast %112 : f32 to vector<8x2xf32>
    %117 = arith.mulf %116, %115 : vector<8x2xf32>
    %118 = arith.addf %104, %117 : vector<8x2xf32>
    %119 = arith.mulf %110, %107 : vector<8x16x2xf32>
    %cst_40 = arith.constant 0.0183156393 : f32
    %120 = vector.broadcast %cst_40 : f32 to vector<8x16x2xf32>
    %121 = arith.mulf %119, %120 : vector<8x16x2xf32>
    %cst_41 = arith.constant dense<0.000000e+00> : vector<8x2xf32>
    %122 = vector.multi_reduction <add>, %121, %cst_41 [1] : vector<8x16x2xf32> to vector<8x2xf32>
    %c7 = arith.constant 7 : index
    %123 = memref.load %arg5[%c7] : memref<11xf32, #tpu.memory_space<smem>>
    %cst_42 = arith.constant 1.000000e-10 : f32
    %124 = vector.broadcast %cst_42 : f32 to vector<8x2xf32>
    %125 = arith.maximumf %122, %124 : vector<8x2xf32>
    %126 = math.log %125 : vector<8x2xf32>
    %127 = vector.broadcast %123 : f32 to vector<8x2xf32>
    %128 = arith.mulf %127, %126 : vector<8x2xf32>
    %129 = arith.addf %118, %128 : vector<8x2xf32>
    %130 = arith.mulf %121, %107 : vector<8x16x2xf32>
    %cst_43 = arith.constant 3.35462624E-4 : f32
    %131 = vector.broadcast %cst_43 : f32 to vector<8x16x2xf32>
    %132 = arith.mulf %130, %131 : vector<8x16x2xf32>
    %cst_44 = arith.constant dense<0.000000e+00> : vector<8x2xf32>
    %133 = vector.multi_reduction <add>, %132, %cst_44 [1] : vector<8x16x2xf32> to vector<8x2xf32>
    %c8 = arith.constant 8 : index
    %134 = memref.load %arg5[%c8] : memref<11xf32, #tpu.memory_space<smem>>
    %cst_45 = arith.constant 1.000000e-10 : f32
    %135 = vector.broadcast %cst_45 : f32 to vector<8x2xf32>
    %136 = arith.maximumf %133, %135 : vector<8x2xf32>
    %137 = math.log %136 : vector<8x2xf32>
    %138 = vector.broadcast %134 : f32 to vector<8x2xf32>
    %139 = arith.mulf %138, %137 : vector<8x2xf32>
    %140 = arith.addf %129, %139 : vector<8x2xf32>
    %141 = arith.mulf %132, %107 : vector<8x16x2xf32>
    %cst_46 = arith.constant 6.14421242E-6 : f32
    %142 = vector.broadcast %cst_46 : f32 to vector<8x16x2xf32>
    %143 = arith.mulf %141, %142 : vector<8x16x2xf32>
    %cst_47 = arith.constant dense<0.000000e+00> : vector<8x2xf32>
    %144 = vector.multi_reduction <add>, %143, %cst_47 [1] : vector<8x16x2xf32> to vector<8x2xf32>
    %c9 = arith.constant 9 : index
    %145 = memref.load %arg5[%c9] : memref<11xf32, #tpu.memory_space<smem>>
    %cst_48 = arith.constant 1.000000e-10 : f32
    %146 = vector.broadcast %cst_48 : f32 to vector<8x2xf32>
    %147 = arith.maximumf %144, %146 : vector<8x2xf32>
    %148 = math.log %147 : vector<8x2xf32>
    %149 = vector.broadcast %145 : f32 to vector<8x2xf32>
    %150 = arith.mulf %149, %148 : vector<8x2xf32>
    %151 = arith.addf %140, %150 : vector<8x2xf32>
    %152 = arith.mulf %143, %107 : vector<8x16x2xf32>
    %cst_49 = arith.constant 1.12535176E-7 : f32
    %153 = vector.broadcast %cst_49 : f32 to vector<8x16x2xf32>
    %154 = arith.mulf %152, %153 : vector<8x16x2xf32>
    %cst_50 = arith.constant dense<0.000000e+00> : vector<8x2xf32>
    %155 = vector.multi_reduction <add>, %154, %cst_50 [1] : vector<8x16x2xf32> to vector<8x2xf32>
    %c10 = arith.constant 10 : index
    %156 = memref.load %arg5[%c10] : memref<11xf32, #tpu.memory_space<smem>>
    %cst_51 = arith.constant 1.000000e-10 : f32
    %157 = vector.broadcast %cst_51 : f32 to vector<8x2xf32>
    %158 = arith.maximumf %155, %157 : vector<8x2xf32>
    %159 = math.log %158 : vector<8x2xf32>
    %160 = vector.broadcast %156 : f32 to vector<8x2xf32>
    %161 = arith.mulf %160, %159 : vector<8x2xf32>
    %162 = arith.addf %151, %161 : vector<8x2xf32>
    %cst_52 = arith.constant 0.00999999977 : f32
    %163 = vector.broadcast %cst_52 : f32 to vector<8x2xf32>
    %164 = arith.mulf %163, %21 : vector<8x2xf32>
    %165 = arith.mulf %162, %164 : vector<8x2xf32>
    %cst_53 = arith.constant dense<0.000000e+00> : vector<2xf32>
    %166 = vector.multi_reduction <add>, %165, %cst_53 [0] : vector<8x2xf32> to vector<2xf32>
    %c0_54 = arith.constant 0 : index
    %167 = memref.load %arg6[%c0_54] : memref<1xf32, #tpu.memory_space<smem>>
    %168 = vector.broadcast %167 : f32 to vector<2xf32>
    %169 = arith.addf %166, %168 : vector<2xf32>
    %170 = math.tanh %169 : vector<2xf32>
    %171 = vector.shape_cast %170 : vector<2xf32> to vector<1x1x2xf32>
    %c0_55 = arith.constant 0 : index
    %c0_56 = arith.constant 0 : index
    %c0_57 = arith.constant 0 : index
    %172 = vector.load %arg7[%c0_55, %c0_56, %c0_57] : memref<1x1x2xf32, #tpu.memory_space<vmem>>, vector<1x1x2xf32>
    tpu.vector_store %arg7[%c0_55, %c0_56, %c0_57], %171 {strides = array<i32>} : memref<1x1x2xf32, #tpu.memory_space<vmem>>, vector<1x1x2xf32>,
    return
  }
  func.func @transform_0(%arg0: i32) -> (i32, i32, i32) {
    %c0_i32 = arith.constant 0 : i32
    %c0_i32_0 = arith.constant 0 : i32
    %c0_i32_1 = arith.constant 0 : i32
    return %arg0, %c0_i32, %c0_i32_0 : i32, i32, i32
  }
  func.func @transform_1(%arg0: i32) -> (i32, i32, i32) {
    %c0_i32 = arith.constant 0 : i32
    %c0_i32_0 = arith.constant 0 : i32
    %c0_i32_1 = arith.constant 0 : i32
    return %arg0, %c0_i32, %c0_i32_0 : i32, i32, i32
  }
  func.func @transform_2(%arg0: i32) -> (i32, i32) {
    %c0_i32 = arith.constant 0 : i32
    %c0_i32_0 = arith.constant 0 : i32
    return %arg0, %c0_i32 : i32, i32
  }
  func.func @transform_3(%arg0: i32) -> (i32, i32) {
    %c0_i32 = arith.constant 0 : i32
    %c0_i32_0 = arith.constant 0 : i32
    return %arg0, %c0_i32 : i32, i32
  }
  func.func @transform_4(%arg0: i32) -> i32 {
    %c0_i32 = arith.constant 0 : i32
    %c0_i32_0 = arith.constant 0 : i32
    return %c0_i32 : i32
  }
  func.func @transform_5(%arg0: i32) -> i32 {
    %c0_i32 = arith.constant 0 : i32
    %c0_i32_0 = arith.constant 0 : i32
    return %c0_i32 : i32
  }
  func.func @transform_6(%arg0: i32) -> (i32, i32, i32) {
    %c0_i32 = arith.constant 0 : i32
    %c0_i32_0 = arith.constant 0 : i32
    %c0_i32_1 = arith.constant 0 : i32
    return %arg0, %c0_i32, %c0_i32_0 : i32, i32, i32
  }
}

</mosaic_0001>

<bundles_post_ra>
// kernel: tpu_custom_call.1
= control target key start
LH: loop header
LB: loop body
LE: loop exit
PB: predicated region body
PF: predicated region fallthrough
CT: control target
= control target key end

     0   :  { %12 = vsyncpa [#allocation4], 0  ;;  %s4302_s0 = inlined_call_operand.hbm [shape: f32[2,8,32], index: 0, kind: input, shape index: {}]   ;;  %s4303_s1 = inlined_call_operand.hbm [shape: f32[2,16,32], index: 1, kind: input, shape index: {}]   ;;  %s4304_s2 = inlined_call_operand.vmem [shape: f32[2,8], index: 2, kind: input, shape index: {}]   ;;  %s4305_s3 = inlined_call_operand.vmem [shape: f32[2,16], index: 3, kind: input, shape index: {}]   ;;  %s4306_s4 = inlined_call_operand.vmem [shape: f32[11], index: 4, kind: input, shape index: {}]   ;;  %s4307_s5 = inlined_call_operand.<no memory space> [shape: f32[1], index: 5, kind: input, shape index: {}]   ;;  %s4308_s6 = inlined_call_operand.hbm [shape: f32[1,1,2], index: 6, kind: output, shape index: {}]  }
   0x1   :  { %13 = vsyncpa [#allocation8], 0 }
   0x2   :  { %14 = vsyncpa [#allocation6], 0 }
   0x3   :  { %15 = vsyncpa [#allocation5], 0  ;;  %s3112_s21 = smov [#allocation3]   ;;  %s3026_s25 = scalar_lea.hbm %s4302_s0, 256 }
   0x4   :  { %s21_s22 = sshll.u32 %s3112_s21, 4  ;;  %p3027_p0 = scmp.ne.s32.totalorder %s4302_s0, %s3026_s25  ;;  %s22_s22 = int_to_ptr.vmem [resolvable:$true] %s21_s22 }
   0x5   :  { %p3030_p1 = scmp.lt.u32.totalorder %s3026_s25, %s4302_s0 }
   0x7   :  { %p3032_p2 = pnand %p3030_p1, %p3027_p0 }
   0x9   :  { %3035 = shalt.err (!%p3032_p2)
}
   0xa   :  { %s3036_s30 = scalar_lea.vmem %s22_s22, 256  ;;  %p3041_p4 = scmp.lt.s32.totalorder %s22_s22, %s22_s22 }
   0xb   :  { %p3037_p3 = scmp.ne.s32.totalorder %s22_s22, %s3036_s30  ;;  %p3042_p5 = scmp.lt.s32.totalorder %s3036_s30, %s3036_s30 }
   0xd   :  { %p3043_p6 = por %p3042_p5, %p3041_p4 }
   0xf   :  { %p3044_p7 = pnand %p3043_p6, %p3037_p3 }
  0x11   :  { %3047 = shalt.err (!%p3044_p7)
}
  0x12   :  { %s3113_s7 = smov 128   ;;  %s3114_s8 = smov 8  }
  0x13   :  { %27 = dma.hbm_to_vmem [thread:$0]  %s4302_s0, 256, %s22_s22, [#allocation4], %s3113_s7, %s3113_s7, %s3114_s8  }
  0x14   :  { %s3115_s11 = smov [#allocation7]   ;;  %s50_s15 = sshll.u32 %s4306_s4, 4  ;;  %s51_s15 = int_to_ptr.vmem [resolvable:$true] %s50_s15 }
  0x15   :  { %s33_s12 = sshll.u32 %s3115_s11, 4  ;;  %s3048_s18 = scalar_lea.hbm %s4303_s1, 512  ;;  %s34_s12 = int_to_ptr.vmem [resolvable:$true] %s33_s12 }
  0x16   :  { %p3049_p8 = scmp.ne.s32.totalorder %s4303_s1, %s3048_s18  ;;  %p3052_p9 = scmp.lt.u32.totalorder %s3048_s18, %s4303_s1 }
  0x18   :  { %p3054_p10 = pnand %p3052_p9, %p3049_p8 }
  0x1a   :  { %3057 = shalt.err (!%p3054_p10)
}
  0x1b   :  { %s3058_s0 = scalar_lea.vmem %s34_s12, 512  ;;  %p3063_p12 = scmp.lt.s32.totalorder %s34_s12, %s34_s12 }
  0x1c   :  { %p3059_p11 = scmp.ne.s32.totalorder %s34_s12, %s3058_s0  ;;  %p3064_p13 = scmp.lt.s32.totalorder %s3058_s0, %s3058_s0 }
  0x1e   :  { %p3065_p0 = por %p3064_p13, %p3063_p12 }
  0x20   :  { %p3066_p1 = pnand %p3065_p0, %p3059_p11 }
  0x22   :  { %3069 = shalt.err (!%p3066_p1)
}
  0x23   :  { %39 = dma.hbm_to_vmem [thread:$0]  %s4303_s1, 512, %s34_s12, [#allocation8], %s3113_s7, %s3113_s7, %s3114_s8  }
  0x24   :  { %s3070_s24 = scalar_lea.vmem %s51_s15, 16  ;;  %p3075_p3 = scmp.lt.s32.totalorder %s51_s15, %s51_s15 }
  0x25   :  { %p3071_p2 = scmp.ne.s32.totalorder %s51_s15, %s3070_s24  ;;  %p3076_p4 = scmp.lt.s32.totalorder %s3070_s24, %s3070_s24 }
  0x27   :  { %p3077_p5 = por %p3076_p4, %p3075_p3 }
  0x29   :  { %p3078_p6 = pnand %p3077_p5, %p3071_p2 }
  0x2b   :  { %3081 = shalt.err (!%p3078_p6)
}
  0x2c   :  { %s3116_s25 = smov [#allocation9]  }
  0x2d   :  { %53 = dma.vmem_to_smem %s51_s15, 16, %s3116_s25, [#allocation6]  }
  0x2e   :  { %3104 = dma.done.wait [#allocation4], 256  }
  0x2f   :  { %3105 = vsyncadd [#allocation4], 4294967040 }
  0x30   :  { %3106 = dma.done.wait [#allocation8], 512  }
  0x31   :  { %3107 = vsyncadd [#allocation8], 4294966784 }
  0x32   :  { %3108 = dma.done.wait [#allocation6], 16  }
  0x33   :  { %3109 = vsyncadd [#allocation6], 4294967280 }
  0x34   :  { %65 = sfence }
  0x35   :  { %v68_v0 = vld [vmem:[#allocation7] sm:$0xff]  ;;  %vm74_vm0 = vcmask 261120   ;;  %v66_v1 = vld [vmem:[#allocation3] sm:$0xff]  ;;  %v67_v6 = vld [vmem:[#allocation3 + $0x8] sm:$0xff]  ;;  %v3117_v46 = vmov 1983009808   ;;  %v351_v48 = vlaneseq }
  0x36   :  { %v70_v2 = vld [vmem:[#allocation7 + $0x10] sm:$0xff]  ;;  %v87_v3 = vmul.f32 %v68_v0, %v68_v0  ;;  %v72_v4 = vmul.f32 %v66_v1, %v66_v1  ;;  %v73_v7 = vmul.f32 %v67_v6, %v67_v6  ;;  %v71_v8 = vld [vmem:[#allocation7 + $0x18] sm:$0xff]  ;;  %v69_v9 = vld [vmem:[#allocation7 + $0x8] sm:$0xff]  ;;  %v349_v47 = vunpack.c.l.s4 %v3117_v46  ;;  %s3294_s29 = sld [smem:[#allocation9 + $0x6]]  ;;  %s3299_s30 = sld [smem:[#allocation9 + $0x4]] }
  0x37   :  { %v89_v5 = vmul.f32 %v70_v2, %v70_v2  ;;  %v90_v14 = vmul.f32 %v71_v8, %v71_v8  ;;  %v88_v15 = vmul.f32 %v69_v9, %v69_v9  ;;  %v3118_v49 = vmov 1934713408   ;;  %s3303_s7 = sld [smem:[#allocation9 + $0x3]]  ;;  %s3307_s8 = sld [smem:[#allocation9 + $0x2]] }
  0x38   :  { %v91_v10 = vsel %vm74_vm0, %v87_v3, 0.0  ;;  %v75_v11 = vsel %vm74_vm0, %v72_v4, 0.0  ;;  %v78_v13 = vsel %vm74_vm0, %v73_v7, 0.0  ;;  %v380_v50 = vunpack.c.l.s4 %v3118_v49  ;;  %s3809_s9 = sld [smem:[#allocation9 + $0x1]]  ;;  %s3926_s10 = sld [smem:[#allocation9 + $0x7]] }
  0x39   :  { %92 = vadd.xlane.f32.xlu1 %v91_v10  ;;  %76 = vadd.xlane.f32.xlu0 %v75_v11  ;;  %v97_v12 = vsel %vm74_vm0, %v89_v5, 0.0  ;;  %v100_v16 = vsel %vm74_vm0, %v90_v14, 0.0  ;;  %v94_v17 = vsel %vm74_vm0, %v88_v15, 0.0  ;;  %v350_v51 = vunpack.c.0.s8 %v349_v47  ;;  %v702_v11 = vld [vmem:[%s4305_s3] sm:$0x3]  ;;  %s3288_s3 = sld [smem:[#allocation9 + $0x5]] }
  0x3a   :  { %v352_v52 = vshrl.u32 %v351_v48, 7  ;;  %v381_v53 = vunpack.c.0.s8 %v380_v50  ;;  %v3119_v58 = vmov 0.0   ;;  %v669_v14 = vld [vmem:[%s4304_s2] sm:$0x3]  ;;  %s3284_s2 = sld [smem:[#allocation9]]  ;;  %vm831_vm1 = vcmask 15360  }
  0x3b   :  { %s3978_s11 = sld [smem:[#allocation9 + $0x8]]  ;;  %s3995_s12 = sld [smem:[#allocation9 + $0x9]]  ;;  %vm2584_vm2 = vcmask 1041409   ;;  %vm2587_vm3 = vcmask 1042434   ;;  %vm2590_vm4 = vcmask 1043459   ;;  %vm2593_vm5 = vcmask 1044484  }
  0x3c   :  { %v353_v54 = vsub.s32 %v350_v51, %v352_v52  ;;  %v384_v57 = vsub.s32 %v381_v53, %v352_v52  ;;  %s4089_s13 = sld [smem:[#allocation9 + $0xa]]  ;;  %vm2596_vm6 = vcmask 1045509   ;;  %vm2599_vm7 = vcmask 1046534   ;;  %s3120_s16 = smov [#allocation10]  }
  0x3d   :  { %98 = vadd.xlane.f32.xlu1 %v97_v12  ;;  %79 = vadd.xlane.f32.xlu0 %v78_v13  ;;  %vm2602_vm8 = vcmask 1047559   ;;  %s2624_s17 = sshll.u32 %s3120_s16, 4  ;;  %vm2616_vm9 = vcmask 8192   ;;  %s2625_s17 = int_to_ptr.vmem [resolvable:$true] %s2624_s17 }
  0x3e   :  { %s3082_s18 = scalar_lea.vmem %s2625_s17, 16  ;;  %s3086_s19 = scalar_lea.vmem %s2625_s17, 32 }
  0x3f   :  { %p3083_p7 = scmp.ne.s32.totalorder %s2625_s17, %s3082_s18  ;;  %p3087_p8 = scmp.lt.s32.totalorder %s2625_s17, %s2625_s17 }
  0x40   :  { %p3088_p9 = scmp.lt.s32.totalorder %s3086_s19, %s3082_s18 }
  0x41   :  { %101 = vadd.xlane.f32.xlu1 %v100_v16  ;;  %95 = vadd.xlane.f32.xlu0 %v94_v17 }
  0x42   :  { %p3089_p10 = por %p3088_p9, %p3087_p8 }
  0x44   :  { %p3090_p11 = pnand %p3089_p10, %p3083_p7 }
  0xc6   :  { %v93_v18 = vpop.xlane.xlu1 %92  ;;  %v77_v19 = vpop.xlane.xlu0 %76 }
  0xc7   :  { %v103_v20 = vmax.f32 %v93_v18, 1e-24  ;;  %v81_v21 = vmax.f32 %v77_v19, 1e-24 }
  0xc9   :  { %2708 = vrsqrt.f32 %v103_v20 }
  0xca   :  { %2710 = vrsqrt.f32 %v81_v21  ;;  %v99_v22 = vpop.xlane.xlu1 %98  ;;  %v80_v23 = vpop.xlane.xlu0 %79 }
  0xcb   :  { %v105_v24 = vmax.f32 %v99_v22, 1e-24  ;;  %v82_v25 = vmax.f32 %v80_v23, 1e-24 }
  0xcd   :  { %2712 = vrsqrt.f32 %v105_v24 }
  0xce   :  { %2714 = vrsqrt.f32 %v82_v25  ;;  %v102_v26 = vpop.xlane.xlu1 %101  ;;  %v96_v27 = vpop.xlane.xlu0 %95 }
  0xcf   :  { %v106_v28 = vmax.f32 %v102_v26, 1e-24  ;;  %v104_v29 = vmax.f32 %v96_v27, 1e-24 }
  0xd1   :  { %2716 = vrsqrt.f32 %v106_v28 }
  0xd2   :  { %2718 = vrsqrt.f32 %v104_v29 }
  0xd3   :  { %v2709_v30 = vpop.eup %2708 }
  0xd4   :  { %v2711_v31 = vpop.eup %2710  ;;  %v111_v32 = vmul.f32 %v2709_v30, %v68_v0 }
  0xd5   :  { %v85_v33 = vmul.f32 %v2711_v31, %v66_v1 }
  0xd6   :  { %2691 = vmatprep.mubr.msk.f32.mxu0 %vm74_vm0, %v111_v32 }
  0xd7   :  { %v2713_v34 = vpop.eup %2712  ;;  %2689 = vmatprep.subr.msk.mxu0 %vm74_vm0, %v85_v33 }
  0xd8   :  { %v2715_v35 = vpop.eup %2714  ;;  %2690 = vmatpush3.xpose.msk.msra.mxu0 %vm74_vm0, %v85_v33  ;;  %v113_v36 = vmul.f32 %v2713_v34, %v70_v2 }
  0xd9   :  { %v86_v37 = vmul.f32 %v2715_v35, %v67_v6 }
  0xda   :  { %2696 = vmatprep.mubr.msk.f32.mxu1 %vm74_vm0, %v113_v36 }
  0xdb   :  { %v2717_v38 = vpop.eup %2716  ;;  %2694 = vmatprep.subr.msk.mxu1 %vm74_vm0, %v86_v37 }
  0xdc   :  { %v2719_v39 = vpop.eup %2718  ;;  %2695 = vmatpush3.xpose.msk.msra.mxu1 %vm74_vm0, %v86_v37  ;;  %v114_v40 = vmul.f32 %v2717_v38, %v71_v8 }
  0xdd   :  { %v112_v41 = vmul.f32 %v2719_v39, %v69_v9 }
  0xdf   :  { %2692 = vmatmul.mubr.msk.f32.vlgmr.msra.gmra.mrb[0].mxu0 %vm74_vm0, %v112_v41  ;;  %2697 = vmatmul.mubr.msk.f32.vlgmr.msra.gmra.mrb[0].mxu1 %vm74_vm0, %v114_v40 }
 0x1b2   :  { %v2693_v42 = vpop.f32.mrb[0].mxu0  ;;  %v2698_v43 = vpop.f32.mrb[0].mxu1 }
 0x1b3   :  { %v190_v44 = vpop.f32.mrb[1].mxu0  ;;  %v274_v45 = vpop.f32.mrb[1].mxu1 }
 0x1b4   :  { %315 = vxpose.xlu1.b32.start [1/2] (short) (narrow) %v274_v45, 8  ;;  %283 = vxpose.xlu0.b32.start [1/2] (short) (narrow) %v190_v44, 8 }
 0x1b8   :  { %316 = vxpose.xlu1.b32.end [2/2] (short) (narrow) %v2698_v43, 8  ;;  %284 = vxpose.xlu0.b32.end [2/2] (short) (narrow) %v2693_v42, 8 }
 0x234   :  { %v331_v55 = vpop.trf.xlu1  ;;  %v299_v56 = vpop.trf.xlu0 }
 0x235   :  { %v362_v59 = vcombine.high %v331_v55, %v3119_v58  ;;  %v369_v60 = vrot.slane %v331_v55, %v353_v54  ;;  %v347_v61 = vcombine.high %v299_v56, %v3119_v58  ;;  %v354_v62 = vrot.slane %v299_v56, %v353_v54 }
 0x237   :  { %v376_v63 = vrot.slane %v362_v59, %v353_v54  ;;  %v361_v0 = vrot.slane %v347_v61, %v353_v54  ;;  %v378_v1 = vcombine.high %v354_v62, %v369_v60  ;;  %v377_v2 = vcombine.low %v354_v62, %v369_v60 }
 0x239   :  { %v392_v3 = vrot.slane %v378_v1, %v384_v57  ;;  %v385_v4 = vrot.slane %v377_v2, %v384_v57  ;;  %v393_v5 = vcombine.low %v361_v0, %v376_v63  ;;  %v394_v8 = vcombine.high %v361_v0, %v376_v63 }
 0x23b   :  { %477 = vxpose.xlu0.b32.start.end [1/1] (short) (narrow) %v392_v3, 16  ;;  %413 = vxpose.xlu1.b32.start.end [1/1] (short) (narrow) %v385_v4, 16  ;;  %v409_v6 = vcombine.high %v385_v4, %v3119_v58  ;;  %v401_v7 = vrot.slane %v393_v5, %v384_v57  ;;  %v410_v9 = vcombine.high %v392_v3, %v3119_v58 }
 0x23c   :  { %v408_v10 = vrot.slane %v394_v8, %v384_v57 }
 0x23d   :  { %v411_v12 = vcombine.high %v401_v7, %v3119_v58 }
 0x23e   :  { %v412_v13 = vcombine.high %v408_v10, %v3119_v58 }
 0x240   :  { %445 = vxpose.xlu0.b32.start.end [1/1] (short) (narrow) %v409_v6, 16  ;;  %541 = vxpose.xlu1.b32.start.end [1/1] (short) (narrow) %v401_v7, 16 }
 0x245   :  { %509 = vxpose.xlu0.b32.start.end [1/1] (short) (narrow) %v410_v9, 16  ;;  %605 = vxpose.xlu1.b32.start.end [1/1] (short) (narrow) %v408_v10, 16 }
 0x24a   :  { %573 = vxpose.xlu0.b32.start.end [1/1] (short) (narrow) %v411_v12, 16  ;;  %703 = vxpose.xlu1.b32.start.end [1/1] (short) (narrow) %v702_v11, 16 }
 0x24f   :  { %637 = vxpose.xlu0.b32.start.end [1/1] (short) (narrow) %v412_v13, 16 }
 0x254   :  { %670 = vxpose.xlu0.b32.start.end [1/1] (short) (narrow) %v669_v14, 8 }
 0x2bb   :  { %v493_v15 = vpop.trf.xlu0  ;;  %v429_v18 = vpop.trf.xlu1 }
 0x2bc   :  { %v2645_v16 = vadd.f32 -1.0, %v493_v15  ;;  %v2661_v17 = vadd.f32 -0.1, %v493_v15  ;;  %v2641_v19 = vadd.f32 -1.0, %v429_v18  ;;  %v1160_v20 = vmul.f32 20.0, %v493_v15 }
 0x2bd   :  { %v2657_v21 = vadd.f32 -0.1, %v429_v18  ;;  %v1792_v23 = vmul.f32 -20.0, %v493_v15  ;;  %v1156_v26 = vmul.f32 20.0, %v429_v18  ;;  %v1788_v32 = vmul.f32 -20.0, %v429_v18 }
 0x2be   :  { %v755_v22 = vmul.f32 %v2645_v16, %v2645_v16  ;;  %v966_v25 = vmul.f32 %v2661_v17, %v2661_v17  ;;  %v751_v28 = vmul.f32 %v2641_v19, %v2641_v19  ;;  %v1180_v30 = vmul.f32 1.442695, %v1160_v20 }
 0x2bf   :  { %v494_v24 = vpop.trf.xlu0  ;;  %v962_v31 = vmul.f32 %v2657_v21, %v2657_v21  ;;  %v1812_v34 = vmul.f32 1.442695, %v1792_v23  ;;  %v1172_v37 = vmul.f32 1.442695, %v1156_v26  ;;  %v430_v39 = vpop.trf.xlu1  ;;  %v1804_v44 = vmul.f32 1.442695, %v1788_v32 }
 0x2c0   :  { %v2646_v27 = vadd.f32 -1.0, %v494_v24  ;;  %v2662_v29 = vadd.f32 -0.1, %v494_v24  ;;  %v771_v33 = vmul.f32 -500000.0, %v755_v22  ;;  %v982_v36 = vmul.f32 -50.0, %v966_v25 }
 0x2c1   :  { %v767_v40 = vmul.f32 -500000.0, %v751_v28  ;;  %v2642_v41 = vadd.f32 -1.0, %v430_v39  ;;  %2720 = vpow2.f32 %v1180_v30  ;;  %v978_v43 = vmul.f32 -50.0, %v962_v31 }
 0x2c2   :  { %v756_v35 = vmul.f32 %v2646_v27, %v2646_v27  ;;  %v967_v38 = vmul.f32 %v2662_v29, %v2662_v29  ;;  %v2658_v45 = vadd.f32 -0.1, %v430_v39  ;;  %v791_v46 = vmul.f32 1.442695, %v771_v33 }
 0x2c3   :  { %v461_v42 = vpop.trf.xlu0  ;;  %2722 = vpow2.f32 %v1812_v34  ;;  %v1002_v48 = vmul.f32 1.442695, %v982_v36  ;;  %v783_v51 = vmul.f32 1.442695, %v767_v40  ;;  %v1161_v52 = vmul.f32 20.0, %v494_v24  ;;  %v557_v62 = vpop.trf.xlu1 }
 0x2c4   :  { %v772_v47 = vmul.f32 -500000.0, %v756_v35  ;;  %2724 = vpow2.f32 %v1172_v37  ;;  %v983_v49 = vmul.f32 -50.0, %v967_v38  ;;  %v2643_v50 = vadd.f32 -1.0, %v461_v42 }
 0x2c5   :  { %v752_v53 = vmul.f32 %v2642_v41, %v2642_v41  ;;  %v2659_v54 = vadd.f32 -0.1, %v461_v42  ;;  %v994_v55 = vmul.f32 1.442695, %v978_v43  ;;  %2726 = vpow2.f32 %v1804_v44 }
 0x2c6   :  { %v963_v56 = vmul.f32 %v2658_v45, %v2658_v45  ;;  %2728 = vpow2.f32 %v791_v46  ;;  %v793_v57 = vmul.f32 1.442695, %v772_v47  ;;  %v1793_v58 = vmul.f32 -20.0, %v494_v24 }
 0x2c7   :  { %2730 = vpow2.f32 %v1002_v48  ;;  %v1004_v59 = vmul.f32 1.442695, %v983_v49  ;;  %v1157_v60 = vmul.f32 20.0, %v430_v39  ;;  %v753_v61 = vmul.f32 %v2643_v50, %v2643_v50  ;;  %v3203_v4 = vpop.trf.xlu0  ;;  %v558_v29 = vpop.trf.xlu1 }
 0x2c8   :  { %2732 = vpow2.f32 %v783_v51  ;;  %v1182_v63 = vmul.f32 1.442695, %v1161_v52  ;;  %v768_v0 = vmul.f32 -500000.0, %v752_v53  ;;  %v964_v1 = vmul.f32 %v2659_v54, %v2659_v54 }
 0x2c9   :  { %2734 = vpow2.f32 %v994_v55  ;;  %v979_v2 = vmul.f32 -50.0, %v963_v56  ;;  %v2649_v3 = vadd.f32 -1.0, %v557_v62  ;;  %v1814_v5 = vmul.f32 1.442695, %v1793_v58 }
 0x2ca   :  { %2736 = vpow2.f32 %v793_v57  ;;  %v1789_v6 = vmul.f32 -20.0, %v430_v39  ;;  %v2665_v7 = vadd.f32 -0.1, %v557_v62  ;;  %v1174_v9 = vmul.f32 1.442695, %v1157_v60 }
 0x2cb   :  { %v3205_v8 = vpop.eup %2720  ;;  %2738 = vpow2.f32 %v1004_v59  ;;  %v769_v10 = vmul.f32 -500000.0, %v753_v61  ;;  %v785_v12 = vmul.f32 1.442695, %v768_v0  ;;  %v980_v13 = vmul.f32 -50.0, %v964_v1  ;;  %v525_v41 = vpop.trf.xlu0 }
 0x2cc   :  { %4355 = vst [vmem:[#allocation15_spill] sm:$0xff] %v3205_v8  ;;  %2740 = vpow2.f32 %v1182_v63  ;;  %v2644_v14 = vadd.f32 -1.0, %v3203_v4  ;;  %v996_v16 = vmul.f32 1.442695, %v979_v2  ;;  %v1158_v17 = vmul.f32 20.0, %v461_v42  ;;  %v621_v2 = vpop.trf.xlu1 }
 0x2cd   :  { %v3207_v11 = vpop.eup %2722  ;;  %v759_v18 = vmul.f32 %v2649_v3, %v2649_v3  ;;  %v2660_v19 = vadd.f32 -0.1, %v3203_v4  ;;  %2742 = vpow2.f32 %v1814_v5  ;;  %v1806_v20 = vmul.f32 1.442695, %v1789_v6 }
 0x2ce   :  { %4356 = vst [vmem:[#allocation16_spill] sm:$0xff] %v3207_v11  ;;  %v3210_v15 = vpop.eup %2724  ;;  %v970_v21 = vmul.f32 %v2665_v7, %v2665_v7  ;;  %2744 = vpow2.f32 %v1174_v9  ;;  %v787_v23 = vmul.f32 1.442695, %v769_v10  ;;  %v1790_v24 = vmul.f32 -20.0, %v461_v42 }
 0x2cf   :  { %4357 = vst [vmem:[#allocation17_spill] sm:$0xff] %v3210_v15  ;;  %v3213_v22 = vpop.eup %2726  ;;  %2746 = vpow2.f32 %v785_v12  ;;  %v998_v26 = vmul.f32 1.442695, %v980_v13  ;;  %v1164_v27 = vmul.f32 20.0, %v557_v62  ;;  %v754_v28 = vmul.f32 %v2644_v14, %v2644_v14  ;;  %v3239_v9 = vpop.trf.xlu0 }
 0x2d0   :  { %4358 = vst [vmem:[#allocation18_spill] sm:$0xff] %v3213_v22  ;;  %v3215_v25 = vpop.eup %2728  ;;  %2748 = vpow2.f32 %v996_v16  ;;  %v1176_v31 = vmul.f32 1.442695, %v1158_v17  ;;  %v775_v32 = vmul.f32 -500000.0, %v759_v18  ;;  %v965_v33 = vmul.f32 %v2660_v19, %v2660_v19 }
 0x2d1   :  { %v3217_v30 = vpop.eup %2730  ;;  %2750 = vpow2.f32 %v1806_v20  ;;  %v986_v35 = vmul.f32 -50.0, %v970_v21  ;;  %v2650_v36 = vadd.f32 -1.0, %v558_v29  ;;  %v1808_v38 = vmul.f32 1.442695, %v1790_v24 }
 0x2d2   :  { %v3219_v34 = vpop.eup %2732  ;;  %2752 = vpow2.f32 %v787_v23  ;;  %v1796_v39 = vmul.f32 -20.0, %v557_v62  ;;  %v2666_v40 = vadd.f32 -0.1, %v558_v29  ;;  %v1188_v43 = vmul.f32 1.442695, %v1164_v27 }
 0x2d3   :  { %v3221_v37 = vpop.eup %2734  ;;  %2754 = vpow2.f32 %v998_v26  ;;  %v770_v44 = vmul.f32 -500000.0, %v754_v28  ;;  %v799_v46 = vmul.f32 1.442695, %v775_v32  ;;  %v981_v47 = vmul.f32 -50.0, %v965_v33 }
 0x2d4   :  { %v3223_v42 = vpop.eup %2736  ;;  %2756 = vpow2.f32 %v1176_v31  ;;  %v1010_v49 = vmul.f32 1.442695, %v986_v35  ;;  %v1159_v50 = vmul.f32 20.0, %v3203_v4  ;;  %v760_v51 = vmul.f32 %v2650_v36, %v2650_v36  ;;  %v589_v35 = vpop.trf.xlu0 }
 0x2d5   :  { %v3225_v45 = vpop.eup %2738  ;;  %v2647_v52 = vadd.f32 -1.0, %v525_v41  ;;  %2758 = vpow2.f32 %v1808_v38  ;;  %v1820_v53 = vmul.f32 1.442695, %v1796_v39  ;;  %v971_v54 = vmul.f32 %v2666_v40, %v2666_v40 }
 0x2d6   :  { %v3227_v48 = vpop.eup %2740  ;;  %v2663_v55 = vadd.f32 -0.1, %v525_v41  ;;  %2760 = vpow2.f32 %v1188_v43  ;;  %v789_v57 = vmul.f32 1.442695, %v770_v44  ;;  %v1791_v58 = vmul.f32 -20.0, %v3203_v4 }
 0x2d7   :  { %4359 = vst [vmem:[#allocation19_spill] sm:$0xff] %v3227_v48  ;;  %v3230_v56 = vpop.eup %2742  ;;  %2762 = vpow2.f32 %v799_v46  ;;  %v1000_v60 = vmul.f32 1.442695, %v981_v47  ;;  %v1165_v61 = vmul.f32 20.0, %v558_v29  ;;  %v1178_v63 = vmul.f32 1.442695, %v1159_v50 }
 0x2d8   :  { %4360 = vst [vmem:[#allocation20_spill] sm:$0xff] %v3230_v56  ;;  %v3233_v59 = vpop.eup %2744  ;;  %2764 = vpow2.f32 %v1010_v49  ;;  %v776_v0 = vmul.f32 -500000.0, %v760_v51  ;;  %v757_v1 = vmul.f32 %v2647_v52, %v2647_v52  ;;  %v987_v5 = vmul.f32 -50.0, %v971_v54  ;;  %v3259_v51 = vpop.trf.xlu1 }
 0x2d9   :  { %4361 = vst [vmem:[#allocation21_spill] sm:$0xff] %v3233_v59  ;;  %v3235_v62 = vpop.eup %2746  ;;  %2766 = vpow2.f32 %v1820_v53  ;;  %v968_v6 = vmul.f32 %v2663_v55, %v2663_v55  ;;  %v2653_v7 = vadd.f32 -1.0, %v621_v2  ;;  %v1810_v10 = vmul.f32 1.442695, %v1791_v58 }
 0x2da   :  { %v3237_v3 = vpop.eup %2748  ;;  %2768 = vpow2.f32 %v789_v57  ;;  %v1190_v13 = vmul.f32 1.442695, %v1165_v61  ;;  %v1797_v14 = vmul.f32 -20.0, %v558_v29  ;;  %v2669_v16 = vadd.f32 -0.1, %v621_v2 }
 0x2db   :  { %v3241_v4 = vpop.eup %2750  ;;  %2770 = vpow2.f32 %v1000_v60  ;;  %v801_v18 = vmul.f32 1.442695, %v776_v0  ;;  %v773_v19 = vmul.f32 -500000.0, %v757_v1  ;;  %v1012_v21 = vmul.f32 1.442695, %v987_v5 }
 0x2dc   :  { %4362 = vst [vmem:[#allocation22_spill] sm:$0xff] %v3241_v4  ;;  %v3243_v12 = vpop.eup %2752  ;;  %2772 = vpow2.f32 %v1178_v63  ;;  %v984_v23 = vmul.f32 -50.0, %v968_v6  ;;  %v763_v24 = vmul.f32 %v2653_v7, %v2653_v7  ;;  %v2648_v26 = vadd.f32 -1.0, %v3239_v9 }
 0x2dd   :  { %v3245_v17 = vpop.eup %2754  ;;  %2774 = vpow2.f32 %v1810_v10  ;;  %v1162_v27 = vmul.f32 20.0, %v525_v41  ;;  %v2664_v28 = vadd.f32 -0.1, %v3239_v9  ;;  %v1822_v29 = vmul.f32 1.442695, %v1797_v14 }
 0x2de   :  { %v3247_v20 = vpop.eup %2756  ;;  %2776 = vpow2.f32 %v1190_v13  ;;  %v1794_v32 = vmul.f32 -20.0, %v525_v41  ;;  %v974_v33 = vmul.f32 %v2669_v16, %v2669_v16  ;;  %v795_v38 = vmul.f32 1.442695, %v773_v19 }
 0x2df   :  { %4363 = vst [vmem:[#allocation23_spill] sm:$0xff] %v3247_v20  ;;  %v3251_v31 = vpop.eup %2758  ;;  %2778 = vpow2.f32 %v801_v18  ;;  %v1168_v39 = vmul.f32 20.0, %v621_v2  ;;  %v1006_v43 = vmul.f32 1.442695, %v984_v23  ;;  %v779_v44 = vmul.f32 -500000.0, %v763_v24 }
 0x2e0   :  { %4364 = vst [vmem:[#allocation24_spill] sm:$0xff] %v3251_v31  ;;  %v3253_v36 = vpop.eup %2760  ;;  %2780 = vpow2.f32 %v1012_v21  ;;  %v758_v46 = vmul.f32 %v2648_v26, %v2648_v26  ;;  %v1184_v49 = vmul.f32 1.442695, %v1162_v27  ;;  %v969_v50 = vmul.f32 %v2664_v28, %v2664_v28 }
 0x2e1   :  { %4365 = vst [vmem:[#allocation25_spill] sm:$0xff] %v3253_v36  ;;  %v3255_v40 = vpop.eup %2762  ;;  %v2651_v41 = vadd.f32 -1.0, %v589_v35  ;;  %v2667_v52 = vadd.f32 -0.1, %v589_v35  ;;  %2782 = vpow2.f32 %v1822_v29  ;;  %v1816_v54 = vmul.f32 1.442695, %v1794_v32 }
 0x2e2   :  { %4366 = vst [vmem:[#allocation26_spill] sm:$0xff] %v3255_v40  ;;  %v3257_v47 = vpop.eup %2764  ;;  %v990_v55 = vmul.f32 -50.0, %v974_v33  ;;  %2784 = vpow2.f32 %v795_v38  ;;  %v1196_v58 = vmul.f32 1.442695, %v1168_v39  ;;  %v1800_v60 = vmul.f32 -20.0, %v621_v2 }
 0x2e3   :  { %4367 = vst [vmem:[#allocation27_spill] sm:$0xff] %v3257_v47  ;;  %v3261_v53 = vpop.eup %2766  ;;  %v972_v61 = vmul.f32 %v2667_v52, %v2667_v52  ;;  %2786 = vpow2.f32 %v1006_v43  ;;  %v807_v0 = vmul.f32 1.442695, %v779_v44  ;;  %v774_v1 = vmul.f32 -500000.0, %v758_v46  ;;  %v590_v46 = vpop.trf.xlu0 }
 0x2e4   :  { %4368 = vst [vmem:[#allocation28_spill] sm:$0xff] %v3261_v53  ;;  %v3263_v57 = vpop.eup %2768  ;;  %v2654_v5 = vadd.f32 -1.0, %v3259_v51  ;;  %2788 = vpow2.f32 %v1184_v49  ;;  %v985_v7 = vmul.f32 -50.0, %v969_v50  ;;  %v761_v10 = vmul.f32 %v2651_v41, %v2651_v41 }
 0x2e5   :  { %v3265_v63 = vpop.eup %2770  ;;  %v988_v13 = vmul.f32 -50.0, %v972_v61  ;;  %2790 = vpow2.f32 %v1816_v54  ;;  %v1018_v14 = vmul.f32 1.442695, %v990_v55  ;;  %v1163_v16 = vmul.f32 20.0, %v3239_v9 }
 0x2e6   :  { %v3268_v6 = vpop.eup %2772  ;;  %v2670_v2 = vadd.f32 -0.1, %v3259_v51  ;;  %2792 = vpow2.f32 %v1196_v58  ;;  %v1828_v19 = vmul.f32 1.442695, %v1800_v60  ;;  %v1166_v23 = vmul.f32 20.0, %v589_v35 }
 0x2e7   :  { %4369 = vst [vmem:[#allocation29_spill] sm:$0xff] %v3268_v6  ;;  %v3272_v18 = vpop.eup %2774  ;;  %v1014_v21 = vmul.f32 1.442695, %v988_v13  ;;  %2794 = vpow2.f32 %v807_v0  ;;  %v797_v26 = vmul.f32 1.442695, %v774_v1  ;;  %v1795_v27 = vmul.f32 -20.0, %v3239_v9 }
 0x2e8   :  { %4370 = vst [vmem:[#allocation30_spill] sm:$0xff] %v3272_v18  ;;  %v3274_v24 = vpop.eup %2776  ;;  %v764_v28 = vmul.f32 %v2654_v5, %v2654_v5  ;;  %v1008_v32 = vmul.f32 1.442695, %v985_v7  ;;  %v777_v33 = vmul.f32 -500000.0, %v761_v10  ;;  %v975_v43 = vmul.f32 %v2670_v2, %v2670_v2 }
 0x2e9   :  { %4371 = vst [vmem:[#allocation31_spill] sm:$0xff] %v3274_v24  ;;  %v3277_v29 = vpop.eup %2778  ;;  %2796 = vpow2.f32 %v1014_v21  ;;  %v1186_v39 = vmul.f32 1.442695, %v1163_v16  ;;  %v1169_v44 = vmul.f32 20.0, %v3259_v51  ;;  %v1192_v49 = vmul.f32 1.442695, %v1166_v23 }
 0x2ea   :  { %v3279_v38 = vpop.eup %2780  ;;  %2798 = vpow2.f32 %v1018_v14  ;;  %v1798_v50 = vmul.f32 -20.0, %v589_v35  ;;  %v1818_v9 = vmul.f32 1.442695, %v1795_v27  ;;  %v780_v52 = vmul.f32 -500000.0, %v764_v28  ;;  %v3292_v35 = vpop.trf.xlu1 }
 0x2eb   :  { %4372 = vst [vmem:[#allocation32_spill] sm:$0xff] %v3279_v38  ;;  %2800 = vpow2.f32 %v1828_v19  ;;  %v3282_v41 = vpop.eup %2782  ;;  %v803_v55 = vmul.f32 1.442695, %v777_v33  ;;  %v2652_v58 = vadd.f32 -1.0, %v590_v46  ;;  %v991_v61 = vmul.f32 -50.0, %v975_v43  ;;  %4376 = vst [vmem:[#allocation36_spill] sm:$0xff] %v3292_v35 }
 0x2ec   :  { %4373 = vst [vmem:[#allocation33_spill] sm:$0xff] %v3282_v41  ;;  %2802 = vpow2.f32 %v797_v26  ;;  %v2785_v54 = vpop.eup %2784  ;;  %v1198_v0 = vmul.f32 1.442695, %v1169_v44  ;;  %v1824_v5 = vmul.f32 1.442695, %v1798_v50  ;;  %v1801_v16 = vmul.f32 -20.0, %v3259_v51 }
 0x2ed   :  { %2804 = vpow2.f32 %v1008_v32  ;;  %v3286_v60 = vpop.eup %2786  ;;  %v762_v7 = vmul.f32 %v2652_v58, %v2652_v58  ;;  %v2668_v10 = vadd.f32 -0.1, %v590_v46  ;;  %v809_v14 = vmul.f32 1.442695, %v780_v52 }
 0x2ee   :  { %4374 = vst [vmem:[#allocation34_spill] sm:$0xff] %v3286_v60  ;;  %2806 = vpow2.f32 %v1186_v39  ;;  %v3290_v1 = vpop.eup %2788  ;;  %v1167_v23 = vmul.f32 20.0, %v590_v46  ;;  %v1020_v27 = vmul.f32 1.442695, %v991_v61  ;;  %v1799_v28 = vmul.f32 -20.0, %v590_v46 }
 0x2ef   :  { %4375 = vst [vmem:[#allocation35_spill] sm:$0xff] %v3290_v1  ;;  %2808 = vpow2.f32 %v1192_v49  ;;  %v3296_v13 = vpop.eup %2790  ;;  %v778_v19 = vmul.f32 -500000.0, %v762_v7  ;;  %v973_v21 = vmul.f32 %v2668_v10, %v2668_v10  ;;  %v1830_v43 = vmul.f32 1.442695, %v1801_v16  ;;  %v3313_v49 = vpop.trf.xlu1 }
 0x2f0   :  { %4377 = vst [vmem:[#allocation37_spill] sm:$0xff] %v3296_v13  ;;  %2810 = vpow2.f32 %v1818_v9  ;;  %v3301_v2 = vpop.eup %2792  ;;  %4382 = vst [vmem:[#allocation42_spill] sm:$0xff] %v3313_v49  ;;  %v3316_v50 = vstv %s3284_s2  ;;  %v1194_v46 = vmul.f32 1.442695, %v1167_v23  ;;  %v3322_v58 = vstv %s3288_s3 }
 0x2f1   :  { %4378 = vst [vmem:[#allocation38_spill] sm:$0xff] %v3301_v2  ;;  %2812 = vpow2.f32 %v803_v55  ;;  %v3305_v26 = vpop.eup %2794  ;;  %v805_v51 = vmul.f32 1.442695, %v778_v19  ;;  %v989_v33 = vmul.f32 -50.0, %v973_v21  ;;  %4383 = vst [vmem:[#allocation43_spill] sm:$0xff] %v3316_v50  ;;  %v818_v7 = vmul.f32 %v3263_v57, %v3313_v49 }
 0x2f2   :  { %4379 = vst [vmem:[#allocation39_spill] sm:$0xff] %v3305_v26  ;;  %2814 = vpow2.f32 %v1198_v0  ;;  %4384 = vst [vmem:[#allocation44_spill] sm:$0xff] %v3322_v58  ;;  %v1826_v61 = vmul.f32 1.442695, %v1799_v28  ;;  %v3329_v10 = vstv %s3294_s29  ;;  %v819_v16 = vmul.f32 %v3215_v25, %v3292_v35  ;;  %v653_v28 = vpop.trf.xlu0 }
 0x2f3   :  { %v2797_v32 = vpop.eup %2796  ;;  %2816 = vpow2.f32 %v1824_v5  ;;  %v1016_v9 = vmul.f32 1.442695, %v989_v33  ;;  %v817_v5 = vmul.f32 %v3243_v12, %v3292_v35  ;;  %4385 = vst [vmem:[#allocation45_spill] sm:$0xff] %v3329_v10  ;;  %v821_v19 = vmul.f32 %v2785_v54, %v3292_v35 }
 0x2f4   :  { %v3309_v39 = vpop.eup %2798  ;;  %2818 = vpow2.f32 %v809_v14  ;;  %v3319_v55 = vmul.f32 %v2797_v32, %v3292_v35  ;;  %v820_v21 = vmul.f32 %v3223_v42, %v3313_v49  ;;  %v816_v57 = vmul.f32 %v3235_v62, %v3313_v49 }
 0x2f5   :  { %4380 = vst [vmem:[#allocation40_spill] sm:$0xff] %v3309_v39  ;;  %v3311_v44 = vpop.eup %2800  ;;  %2820 = vpow2.f32 %v805_v51  ;;  %v3351_v54 = vstv %s3303_s7  ;;  %v3354_v51 = vstv %s3307_s8  ;;  %v841_v33 = vsel %vm831_vm1, %v817_v5, 0.0 }
 0x2f6   :  { %4381 = vst [vmem:[#allocation41_spill] sm:$0xff] %v3311_v44  ;;  %v2803_v52 = vpop.eup %2802  ;;  %2822 = vpow2.f32 %v1020_v27  ;;  %v3344_v27 = vstv %s3299_s30  ;;  %v824_v62 = vmul.f32 %v3277_v29, %v3313_v49  ;;  %v859_v44 = vsel %vm831_vm1, %v821_v19, 0.0 }
 0x2f7   :  { %v2805_v0 = vpop.eup %2804  ;;  %2824 = vpow2.f32 %v1016_v9  ;;  %v822_v23 = vmul.f32 %v2803_v52, %v3313_v49  ;;  %v3362_v9 = vmul.f32 %v3265_v63, %v3313_v49  ;;  %v850_v52 = vsel %vm831_vm1, %v819_v16, 0.0 }
 0x2f8   :  { %v3331_v14 = vpop.eup %2806  ;;  %2826 = vpow2.f32 %v1830_v43  ;;  %v842_v43 = vsel %vm831_vm1, %v818_v7, 0.0  ;;  %v2671_v53 = vadd.f32 -0.1, %v653_v28  ;;  %v3372_v5 = vsel %vm831_vm1, %v816_v57, 0.0 }
 0x2f9   :  { %4386 = vst [vmem:[#allocation46_spill] sm:$0xff] %v3331_v14  ;;  %v3338_v12 = vpop.eup %2808  ;;  %2828 = vpow2.f32 %v1194_v46  ;;  %4388 = vst [vmem:[#allocation48_spill] sm:$0xff] %v3362_v9  ;;  %v860_v29 = vsel %vm831_vm1, %v822_v23, 0.0  ;;  %v3377_v63 = vmul.f32 %v3225_v45, %v3313_v49  ;;  %v3380_v7 = vmul.f32 %v2805_v0, %v3313_v49 }
 0x2fa   :  { %v3346_v32 = vpop.eup %2810  ;;  %v1214_v25 = vmul.f32 %v3338_v12, %v3319_v55  ;;  %2830 = vpow2.f32 %v1826_v61  ;;  %v851_v61 = vsel %vm831_vm1, %v820_v21, 0.0  ;;  %v3385_v2 = vadd.f32 %v842_v43, %v841_v33 }
 0x2fb   :  { %4387 = vst [vmem:[#allocation47_spill] sm:$0xff] %v3346_v32  ;;  %v2813_v42 = vpop.eup %2812  ;;  %4390 = vst [vmem:[#allocation50_spill] sm:$0xff] %v3377_v63  ;;  %v3387_v24 = vadd.f32 %v851_v61, %v850_v52  ;;  %v3390_v23 = vsel %vm831_vm1, %v824_v62, 0.0  ;;  %v3394_v45 = vsel %vm831_vm1, %v3362_v9, 0.0  ;;  %v3398_v0 = vmul.f32 %v3268_v6, %v3362_v9 }
 0x2fc   :  { %v3364_v46 = vpop.eup %2814  ;;  %4391 = vst [vmem:[#allocation51_spill] sm:$0xff] %v3380_v7  ;;  %v825_v19 = vmul.f32 %v2813_v42, %v3292_v35  ;;  %4392 = vst [vmem:[#allocation52_spill] sm:$0xff] %v3390_v23  ;;  %v3402_v42 = vadd.f32 %v860_v29, %v859_v44  ;;  %v2655_v43 = vadd.f32 -1.0, %v653_v28  ;;  %v976_v52 = vmul.f32 %v2671_v53, %v2671_v53 }
 0x2fd   :  { %4389 = vst [vmem:[#allocation49_spill] sm:$0xff] %v3364_v46  ;;  %v3369_v41 = vpop.eup %2816  ;;  %v1230_v46 = vmul.f32 0.01831564, %v1214_v25  ;;  %4393 = vst [vmem:[#allocation53_spill] sm:$0xff] %v3398_v0  ;;  %v3407_v62 = vsel %vm831_vm1, %v3377_v63, 0.0  ;;  %v3411_v36 = vsel %vm831_vm1, %v3380_v7, 0.0  ;;  %v3415_v39 = vmul.f32 %v3227_v48, %v3377_v63 }
 0x2fe   :  { %v2819_v16 = vpop.eup %2818  ;;  %v1846_v21 = vmul.f32 %v3369_v41, %v3319_v55  ;;  %4395 = vst [vmem:[#allocation55_spill] sm:$0xff] %v3407_v62  ;;  %4396 = vst [vmem:[#allocation56_spill] sm:$0xff] %v3411_v36  ;;  %v3419_v44 = vmul.f32 %v3331_v14, %v3380_v7  ;;  %v877_v53 = vsel %vm831_vm1, %v825_v19, 0.0  ;;  %v1170_v13 = vmul.f32 20.0, %v653_v28 }
 0x2ff   :  { %v2821_v57 = vpop.eup %2820  ;;  %4397 = vst [vmem:[#allocation57_spill] sm:$0xff] %v3415_v39  ;;  %v3430_v23 = vmul.f32 %v2819_v16, %v3313_v49  ;;  %v1087_v19 = vsel %vm831_vm1, %v3319_v55, 0.0  ;;  %v992_v7 = vmul.f32 -50.0, %v976_v52  ;;  %v3437_v11 = vmul.f32 -20.0, %v653_v28  ;;  %v3445_v28 = vpop.trf.xlu0 }
 0x300   :  { %v3400_v25 = vpop.eup %2822  ;;  %v826_v33 = vmul.f32 %v2821_v57, %v3313_v49  ;;  %4398 = vst [vmem:[#allocation58_spill] sm:$0xff] %v3419_v44  ;;  %v1360_v57 = vmul.f32 %v3338_v12, %v1230_v46  ;;  %v1281_v52 = vsel %vm831_vm1, %v1230_v46, 0.0  ;;  %v1200_v4 = vmul.f32 1.442695, %v1170_v13 }
 0x301   :  { %4394 = vst [vmem:[#allocation54_spill] sm:$0xff] %v3400_v25  ;;  %v2825_v61 = vpop.eup %2824  ;;  %v1976_v25 = vmul.f32 %v3369_v41, %v1846_v21  ;;  %4400 = vst [vmem:[#allocation60_spill] sm:$0xff] %v3430_v23  ;;  %v1171_v20 = vmul.f32 20.0, %v3445_v28 }
 0x302   :  { %v3421_v29 = vpop.eup %2826  ;;  %v878_v38 = vsel %vm831_vm1, %v826_v33, 0.0  ;;  %v1037_v40 = vmul.f32 %v2825_v61, %v3313_v49  ;;  %v1897_v61 = vsel %vm831_vm1, %v1846_v21, 0.0 }
 0x303   :  { %4399 = vst [vmem:[#allocation59_spill] sm:$0xff] %v3421_v29  ;;  %v3427_v47 = vpop.eup %2828  ;;  %v879_v26 = vadd.f32 %v878_v38, %v877_v53  ;;  %v765_v29 = vmul.f32 %v2655_v43, %v2655_v43  ;;  %v1376_v38 = vmul.f32 0.00033546262, %v1360_v57  ;;  %v1992_v53 = vmul.f32 0.01831564, %v1976_v25 }
 0x304   :  { %v3433_v32 = vpop.eup %2830  ;;  %v1088_v33 = vsel %vm831_vm1, %v1037_v40, 0.0  ;;  %v1215_v63 = vmul.f32 %v3427_v47, %v1037_v40 }
 0x305   :  { %v880_v56 = vrot.slane %v879_v26, 4  ;;  %v1847_v16 = vmul.f32 %v3433_v32, %v1037_v40  ;;  %v1089_v23 = vadd.f32 %v1088_v33, %v1087_v19  ;;  %v781_v22 = vmul.f32 -500000.0, %v765_v29 }
 0x306   :  { %v1231_v18 = vmul.f32 0.01831564, %v1215_v63  ;;  %v2656_v63 = vadd.f32 -1.0, %v3445_v28  ;;  %v1506_v19 = vmul.f32 %v3338_v12, %v1376_v38  ;;  %v2043_v33 = vsel %vm831_vm1, %v1992_v53, 0.0 }
 0x307   :  { %v881_v31 = vadd.f32 %v880_v56, %v879_v26  ;;  %v1898_v55 = vsel %vm831_vm1, %v1847_v16, 0.0  ;;  %v1977_v43 = vmul.f32 %v3433_v32, %v1847_v16  ;;  %v1090_v14 = vrot.slane %v1089_v23, 4 }
 0x308   :  { %v1899_v9 = vadd.f32 %v1898_v55, %v1897_v61  ;;  %v1282_v40 = vsel %vm831_vm1, %v1231_v18, 0.0  ;;  %v1361_v21 = vmul.f32 %v3427_v47, %v1231_v18  ;;  %v1022_v26 = vmul.f32 1.442695, %v992_v7 }
 0x309   :  { %v1993_v25 = vmul.f32 0.01831564, %v1977_v43  ;;  %v882_v57 = vrot.slane %v881_v31, 2  ;;  %v1283_v56 = vadd.f32 %v1282_v40, %v1281_v52  ;;  %v1427_v13 = vsel %vm831_vm1, %v1376_v38, 0.0 }
 0x30a   :  { %v1377_v16 = vmul.f32 0.00033546262, %v1361_v21  ;;  %v1900_v29 = vrot.slane %v1899_v9, 4  ;;  %v2672_v55 = vadd.f32 -0.1, %v3445_v28  ;;  %v1091_v18 = vadd.f32 %v1090_v14, %v1089_v23 }
 0x30b   :  { %v2044_v46 = vsel %vm831_vm1, %v1993_v25, 0.0  ;;  %v1284_v43 = vrot.slane %v1283_v56, 4  ;;  %v883_v40 = vadd.f32 %v882_v57, %v881_v31  ;;  %2832 = vpow2.f32 %v1022_v26 }
 0x30c   :  { %v2045_v61 = vadd.f32 %v2044_v46, %v2043_v33  ;;  %v1428_v52 = vsel %vm831_vm1, %v1377_v16, 0.0  ;;  %v1507_v7 = vmul.f32 %v3427_v47, %v1377_v16  ;;  %v766_v6 = vmul.f32 %v2656_v63, %v2656_v63 }
 0x30d   :  { %v1429_v48 = vadd.f32 %v1428_v52, %v1427_v13  ;;  %v1522_v44 = vmul.f32 6.1442124e-06, %v1506_v19  ;;  %v2122_v21 = vmul.f32 %v3369_v41, %v1992_v53  ;;  %v1901_v8 = vadd.f32 %v1900_v29, %v1899_v9 }
 0x30e   :  { %v1523_v1 = vmul.f32 6.1442124e-06, %v1507_v7  ;;  %v2046_v39 = vrot.slane %v2045_v61, 4  ;;  %v2123_v33 = vmul.f32 %v3433_v32, %v1993_v25  ;;  %v811_v46 = vmul.f32 1.442695, %v781_v22 }
 0x30f   :  { %v1430_v38 = vrot.slane %v1429_v48, 4  ;;  %v1092_v14 = vrot.slane %v1091_v18, 2  ;;  %v1285_v23 = vadd.f32 %v1284_v43, %v1283_v56  ;;  %v977_v0 = vmul.f32 %v2672_v55, %v2672_v55 }
 0x310   :  { %v884_v16 = vrot.slane %v883_v40, 1  ;;  %v1574_v31 = vsel %vm831_vm1, %v1523_v1, 0.0  ;;  %v1653_v57 = vmul.f32 %v3427_v47, %v1523_v1  ;;  %v2047_v26 = vadd.f32 %v2046_v39, %v2045_v61 }
 0x311   :  { %v1573_v53 = vsel %vm831_vm1, %v1522_v44, 0.0  ;;  %v2138_v63 = vmul.f32 0.00033546262, %v2122_v21  ;;  %2834 = vpow2.f32 %v1200_v4  ;;  %v782_v19 = vmul.f32 -500000.0, %v766_v6 }
 0x312   :  { %v1652_v9 = vmul.f32 %v3338_v12, %v1522_v44  ;;  %v1431_v25 = vadd.f32 %v1430_v38, %v1429_v48  ;;  %v1902_v22 = vrot.slane %v1901_v8, 2  ;;  %v2139_v13 = vmul.f32 0.00033546262, %v2123_v33 }
 0x313   :  { %v1286_v56 = vrot.slane %v1285_v23, 2  ;;  %v1575_v29 = vadd.f32 %v1574_v31, %v1573_v53  ;;  %2836 = vpow2.f32 %v811_v46  ;;  %v993_v55 = vmul.f32 -50.0, %v977_v0 }
 0x314   :  { %v885_v43 = vadd.f32 %v884_v16, %v883_v40  ;;  %v1093_v52 = vadd.f32 %v1092_v14, %v1091_v18  ;;  %v1669_v7 = vmul.f32 1.12535176e-07, %v1653_v57  ;;  %v2048_v15 = vrot.slane %v2047_v26, 2 }
 0x315   :  { %v2268_v47 = vmul.f32 %v3369_v41, %v2138_v63  ;;  %v1832_v1 = vmul.f32 1.442695, %v3437_v11  ;;  %v813_v39 = vmul.f32 1.442695, %v782_v19  ;;  %v1202_v4 = vmul.f32 1.442695, %v1171_v20  ;;  %v2833_v6 = vpop.eup %2832 }
 0x316   :  { %v1668_v61 = vmul.f32 1.12535176e-07, %v1652_v9  ;;  %v1432_v12 = vrot.slane %v1431_v25, 2  ;;  %v1903_v48 = vadd.f32 %v1902_v22, %v1901_v8  ;;  %v2190_v44 = vsel %vm831_vm1, %v2139_v13, 0.0 }
 0x317   :  { %v2189_v21 = vsel %vm831_vm1, %v2138_v63, 0.0  ;;  %v1287_v38 = vadd.f32 %v1286_v56, %v1285_v23  ;;  %v1576_v0 = vrot.slane %v1575_v29, 4  ;;  %v1024_v40 = vmul.f32 1.442695, %v993_v55 }
 0x318   :  { %v910_v18 = vmax.f32 %v885_v43, 1e-10  ;;  %v1094_v33 = vrot.slane %v1093_v52, 1  ;;  %v1720_v46 = vsel %vm831_vm1, %v1669_v7, 0.0  ;;  %v2049_v14 = vadd.f32 %v2048_v15, %v2047_v26 }
 0x319   :  { %v2191_v16 = vadd.f32 %v2190_v44, %v2189_v21  ;;  %v3471_v11 = vmul.f32 %v2833_v6, %v3292_v35  ;;  %2838 = vpow2.f32 %v813_v39  ;;  %v1803_v20 = vmul.f32 -20.0, %v3445_v28 }
 0x31a   :  { %v1719_v8 = vsel %vm831_vm1, %v1668_v61, 0.0  ;;  %v2284_v31 = vmul.f32 6.1442124e-06, %v2268_v47  ;;  %v1433_v57 = vadd.f32 %v1432_v12, %v1431_v25  ;;  %v1904_v53 = vrot.slane %v1903_v48, 1 }
 0x31b   :  { %v3475_v23 = vpop.eup %2834  ;;  %v1288_v63 = vrot.slane %v1287_v38, 1  ;;  %v1577_v19 = vadd.f32 %v1576_v0, %v1575_v29  ;;  %v1721_v9 = vadd.f32 %v1720_v46, %v1719_v8  ;;  %2840 = vpow2.f32 %v1024_v40 }
 0x31c   :  { %2842 = vlog2.f32 %v910_v18  ;;  %v1095_v15 = vadd.f32 %v1094_v33, %v1093_v52  ;;  %v2050_v26 = vrot.slane %v2049_v14, 1  ;;  %v815_v22 = vmul.f32 %v3219_v34, %v3292_v35 }
 0x31d   :  { %v2837_v56 = vpop.eup %2836  ;;  %v2192_v55 = vrot.slane %v2191_v16, 4  ;;  %v1218_v28 = vmul.f32 %v3475_v23, %v3471_v11  ;;  %2844 = vpow2.f32 %v1832_v1  ;;  %v1834_v25 = vmul.f32 1.442695, %v1803_v20 }
 0x31e   :  { %v2414_v43 = vmul.f32 %v3369_v41, %v2284_v31  ;;  %v1434_v7 = vrot.slane %v1433_v57, 1  ;;  %v1905_v47 = vadd.f32 %v1904_v53, %v1903_v48  ;;  %v2269_v29 = vmul.f32 %v3433_v32, %v2139_v13 }
 0x31f   :  { %v1289_v39 = vadd.f32 %v1288_v63, %v1287_v38  ;;  %v1578_v6 = vrot.slane %v1577_v19, 2  ;;  %v1722_v52 = vrot.slane %v1721_v9, 4  ;;  %2846 = vpow2.f32 %v1202_v4 }
 0x320   :  { %v1120_v61 = vmax.f32 %v1095_v15, 1e-10  ;;  %v2051_v12 = vadd.f32 %v2050_v26, %v2049_v14  ;;  %v832_v34 = vsel %vm831_vm1, %v815_v22, 0.0  ;;  %v844_v44 = vrot.slane %v3385_v2, 4 }
 0x321   :  { %v2193_v21 = vadd.f32 %v2192_v55, %v2191_v16  ;;  %v829_v1 = vmul.f32 %v2837_v56, %v3292_v35  ;;  %v1234_v0 = vmul.f32 0.01831564, %v1218_v28  ;;  %2848 = vpow2.f32 %v1834_v25 }
 0x322   :  { %v2430_v41 = vmul.f32 1.12535176e-07, %v2414_v43  ;;  %v1435_v40 = vadd.f32 %v1434_v7, %v1433_v57  ;;  %v1930_v48 = vmax.f32 %v1905_v47, 1e-10  ;;  %v2285_v18 = vmul.f32 6.1442124e-06, %v2269_v29 }
 0x323   :  { %v2839_v13 = vpop.eup %2838  ;;  %v1314_v38 = vmax.f32 %v1289_v39, 1e-10  ;;  %v1579_v33 = vadd.f32 %v1578_v6, %v1577_v19  ;;  %v1723_v46 = vadd.f32 %v1722_v52, %v1721_v9  ;;  %v3487_v4 = vadd.f32 %v3372_v5, %v832_v34 }
 0x324   :  { %2850 = vlog2.f32 %v1120_v61  ;;  %v2076_v14 = vmax.f32 %v2051_v12, 1e-10  ;;  %v3490_v20 = vadd.f32 %v844_v44, %v3385_v2  ;;  %v2335_v53 = vsel %vm831_vm1, %v2284_v31, 0.0 }
 0x325   :  { %v2841_v8 = vpop.eup %2840  ;;  %v2194_v57 = vrot.slane %v2193_v21, 2  ;;  %v895_v63 = vsel %vm831_vm1, %v829_v1, 0.0  ;;  %v1364_v15 = vmul.f32 %v3475_v23, %v1234_v0  ;;  %v3497_v9 = vsel %vm831_vm1, %v2430_v41, 0.0 }
 0x326   :  { %v2843_v19 = vpop.eup %2842  ;;  %v1460_v5 = vmax.f32 %v1435_v40, 1e-10  ;;  %2852 = vlog2.f32 %v1930_v48  ;;  %v2336_v26 = vsel %vm831_vm1, %v2285_v18, 0.0  ;;  %v1580_v22 = vrot.slane %v1579_v33, 1 }
 0x327   :  { %v3500_v2 = vpop.eup %2844  ;;  %2854 = vlog2.f32 %v1314_v38  ;;  %v1724_v56 = vrot.slane %v1723_v46, 2  ;;  %v2415_v31 = vmul.f32 %v3433_v32, %v2285_v18  ;;  %v1105_v55 = vsel %vm831_vm1, %v3471_v11, 0.0 }
 0x328   :  { %2856 = vlog2.f32 %v2076_v14  ;;  %v830_v28 = vmul.f32 %v2839_v13, %v3313_v49  ;;  %v1041_v25 = vmul.f32 %v2841_v8, %v3313_v49  ;;  %v924_v7 = vmul.f32 0.6931472, %v2843_v19 }
 0x329   :  { %v2847_v43 = vpop.eup %2846  ;;  %v2195_v47 = vadd.f32 %v2194_v57, %v2193_v21  ;;  %v2337_v29 = vadd.f32 %v2336_v26, %v2335_v53  ;;  %v1380_v39 = vmul.f32 0.00033546262, %v1364_v15  ;;  %2858 = vlog2.f32 %v1460_v5 }
 0x32a   :  { %v896_v6 = vsel %vm831_vm1, %v830_v28, 0.0  ;;  %v1106_v52 = vsel %vm831_vm1, %v1041_v25, 0.0  ;;  %v1219_v61 = vmul.f32 %v2847_v43, %v1041_v25  ;;  %v1581_v12 = vadd.f32 %v1580_v22, %v1579_v33 }
 0x32b   :  { %v3509_v32 = vpop.eup %2848  ;;  %v1725_v34 = vadd.f32 %v1724_v56, %v1723_v46  ;;  %v2431_v44 = vmul.f32 1.12535176e-07, %v2415_v31  ;;  %v1850_v1 = vmul.f32 %v3500_v2, %v3471_v11  ;;  %v897_v41 = vadd.f32 %v896_v6, %v895_v63 }
 0x32c   :  { %v1107_v40 = vadd.f32 %v1106_v52, %v1105_v55  ;;  %v1235_v48 = vmul.f32 0.01831564, %v1219_v61  ;;  %v1851_v21 = vmul.f32 %v3509_v32, %v1041_v25  ;;  %v2196_v18 = vrot.slane %v2195_v47, 1 }
 0x32d   :  { %v2338_v13 = vrot.slane %v2337_v29, 4  ;;  %v1299_v38 = vsel %vm831_vm1, %v1234_v0, 0.0  ;;  %v1510_v14 = vmul.f32 %v3475_v23, %v1380_v39  ;;  %v898_v53 = vrot.slane %v897_v41, 4 }
 0x32e   :  { %v2851_v8 = vpop.eup %2850  ;;  %v1108_v57 = vrot.slane %v1107_v40, 4  ;;  %v1300_v33 = vsel %vm831_vm1, %v1235_v48, 0.0  ;;  %v1365_v46 = vmul.f32 %v2847_v43, %v1235_v48  ;;  %v935_v15 = vmul.f32 %v3316_v50, %v924_v7 }
 0x32f   :  { %v1606_v11 = vmax.f32 %v1581_v12, 1e-10  ;;  %v1301_v63 = vadd.f32 %v1300_v33, %v1299_v38  ;;  %v1916_v19 = vsel %vm831_vm1, %v1851_v21, 0.0  ;;  %v2482_v26 = vsel %vm831_vm1, %v2431_v44, 0.0 }
 0x330   :  { %v2853_v5 = vpop.eup %2852  ;;  %v1915_v22 = vsel %vm831_vm1, %v1850_v1, 0.0  ;;  %v1980_v0 = vmul.f32 %v3500_v2, %v1850_v1  ;;  %v1381_v56 = vmul.f32 0.00033546262, %v1365_v46  ;;  %v1134_v55 = vmul.f32 0.6931472, %v2851_v8 }
 0x331   :  { %v2855_v31 = vpop.eup %2854  ;;  %v1445_v28 = vsel %vm831_vm1, %v1380_v39, 0.0  ;;  %v899_v25 = vadd.f32 %v898_v53, %v897_v41  ;;  %v1917_v6 = vadd.f32 %v1916_v19, %v1915_v22  ;;  %v1526_v7 = vmul.f32 6.1442124e-06, %v1510_v14 }
 0x332   :  { %v3523_v52 = vpop.eup %2856  ;;  %v1109_v61 = vadd.f32 %v1108_v57, %v1107_v40  ;;  %v1446_v12 = vsel %vm831_vm1, %v1381_v56, 0.0  ;;  %v1511_v48 = vmul.f32 %v2847_v43, %v1381_v56  ;;  %v1726_v38 = vrot.slane %v1725_v34, 1 }
 0x333   :  { %v2197_v44 = vadd.f32 %v2196_v18, %v2195_v47  ;;  %v1302_v33 = vrot.slane %v1301_v63, 4  ;;  %v1447_v16 = vadd.f32 %v1446_v12, %v1445_v28  ;;  %v2859_v36 = vpop.eup %2858  ;;  %v2339_v1 = vadd.f32 %v2338_v13, %v2337_v29 }
 0x334   :  { %v1996_v46 = vmul.f32 0.01831564, %v1980_v0  ;;  %v1527_v59 = vmul.f32 6.1442124e-06, %v1511_v48  ;;  %v1918_v8 = vrot.slane %v1917_v6, 4  ;;  %2860 = vlog2.f32 %v1606_v11 }
 0x335   :  { %v900_v39 = vrot.slane %v899_v25, 2  ;;  %v1448_v41 = vrot.slane %v1447_v16, 4  ;;  %v1981_v53 = vmul.f32 %v3509_v32, %v1851_v21  ;;  %v1591_v14 = vsel %vm831_vm1, %v1526_v7, 0.0 }
 0x336   :  { %v1110_v40 = vrot.slane %v1109_v61, 2  ;;  %v1592_v57 = vsel %vm831_vm1, %v1527_v59, 0.0  ;;  %v1657_v19 = vmul.f32 %v2847_v43, %v1527_v59  ;;  %v2483_v47 = vadd.f32 %v2482_v26, %v3497_v9 }
 0x337   :  { %v1656_v18 = vmul.f32 %v3475_v23, %v1526_v7  ;;  %v1303_v22 = vadd.f32 %v1302_v33, %v1301_v63  ;;  %v1593_v29 = vadd.f32 %v1592_v57, %v1591_v14  ;;  %v1145_v13 = vmul.f32 %v3322_v58, %v1134_v55 }
 0x338   :  { %v1727_v0 = vadd.f32 %v1726_v38, %v1725_v34  ;;  %v2126_v11 = vmul.f32 %v3500_v2, %v1996_v46  ;;  %v1919_v56 = vadd.f32 %v1918_v8, %v1917_v6  ;;  %v901_v28 = vadd.f32 %v900_v39, %v899_v25 }
 0x339   :  { %v1449_v21 = vadd.f32 %v1448_v41, %v1447_v16  ;;  %v1673_v12 = vmul.f32 1.12535176e-07, %v1657_v19  ;;  %v1997_v48 = vmul.f32 0.01831564, %v1981_v53  ;;  %v2222_v50 = vmax.f32 %v2197_v44, 1e-10 }
 0x33a   :  { %v2340_v60 = vrot.slane %v2339_v1, 2  ;;  %v1111_v62 = vadd.f32 %v1110_v40, %v1109_v61  ;;  %v1594_v59 = vrot.slane %v1593_v29, 4  ;;  %v1944_v43 = vmul.f32 0.6931472, %v2853_v5 }
 0x33b   :  { %v2484_v9 = vrot.slane %v2483_v47, 4  ;;  %v1672_v26 = vmul.f32 1.12535176e-07, %v1656_v18  ;;  %v1304_v23 = vrot.slane %v1303_v22, 2  ;;  %v1153_v63 = vadd.f32 %v1145_v13, %v935_v15 }
 0x33c   :  { %v1328_v7 = vmul.f32 0.6931472, %v2855_v31  ;;  %v2142_v33 = vmul.f32 0.00033546262, %v2126_v11  ;;  %v1920_v55 = vrot.slane %v1919_v56, 2  ;;  %v902_v34 = vrot.slane %v901_v28, 1 }
 0x33d   :  { %v1450_v38 = vrot.slane %v1449_v21, 2  ;;  %v1738_v6 = vsel %vm831_vm1, %v1673_v12, 0.0  ;;  %v2062_v16 = vsel %vm831_vm1, %v1997_v48, 0.0  ;;  %v1752_v25 = vmax.f32 %v1727_v0, 1e-10 }
 0x33e   :  { %v2341_v8 = vadd.f32 %v2340_v60, %v2339_v1  ;;  %v1112_v44 = vrot.slane %v1111_v62, 1  ;;  %v1595_v39 = vadd.f32 %v1594_v59, %v1593_v29  ;;  %v2861_v61 = vpop.eup %2860  ;;  %v1737_v5 = vsel %vm831_vm1, %v1672_v26, 0.0 }
 0x33f   :  { %v2061_v41 = vsel %vm831_vm1, %v1996_v46, 0.0  ;;  %v1305_v53 = vadd.f32 %v1304_v23, %v1303_v22  ;;  %v2127_v15 = vmul.f32 %v3509_v32, %v1997_v48  ;;  %v2272_v31 = vmul.f32 %v3500_v2, %v2142_v33 }
 0x340   :  { %v1739_v14 = vadd.f32 %v1738_v6, %v1737_v5  ;;  %v1921_v40 = vadd.f32 %v1920_v55, %v1919_v56  ;;  %v2063_v57 = vadd.f32 %v2062_v16, %v2061_v41  ;;  %2862 = vlog2.f32 %v2222_v50 }
 0x341   :  { %v2485_v19 = vadd.f32 %v2484_v9, %v2483_v47  ;;  %v903_v18 = vadd.f32 %v902_v34, %v901_v28  ;;  %v1451_v13 = vadd.f32 %v1450_v38, %v1449_v21  ;;  %2864 = vlog2.f32 %v1752_v25 }
 0x342   :  { %v2342_v60 = vrot.slane %v2341_v8, 1  ;;  %v1113_v1 = vadd.f32 %v1112_v44, %v1111_v62  ;;  %v1596_v29 = vrot.slane %v1595_v39, 2  ;;  %v1474_v0 = vmul.f32 0.6931472, %v2859_v36 }
 0x343   :  { %v3540_v11 = vmul.f32 %v3329_v10, %v1944_v43  ;;  %v1306_v46 = vrot.slane %v1305_v53, 1  ;;  %v2143_v22 = vmul.f32 0.00033546262, %v2127_v15  ;;  %v2288_v12 = vmul.f32 6.1442124e-06, %v2272_v31 }
 0x344   :  { %v1740_v48 = vrot.slane %v1739_v14, 4  ;;  %v1922_v59 = vrot.slane %v1921_v40, 1  ;;  %v2064_v26 = vrot.slane %v2063_v57, 4  ;;  %v1339_v56 = vmul.f32 %v3344_v27, %v1328_v7 }
 0x345   :  { %4401 = vst [vmem:[#allocation61_spill] sm:$0xff] %v3540_v11  ;;  %v912_v50 = vmax.f32 %v903_v18, 1e-10  ;;  %v1452_v47 = vrot.slane %v1451_v13, 1  ;;  %v835_v28 = vrot.slane %v3487_v4, 4  ;;  %v3544_v21 = vadd.f32 %v2342_v60, %v2341_v8 }
 0x346   :  { %v2486_v62 = vrot.slane %v2485_v19, 2  ;;  %v1122_v9 = vmax.f32 %v1113_v1, 1e-10  ;;  %v1597_v36 = vadd.f32 %v1596_v29, %v1595_v39  ;;  %v1485_v43 = vmul.f32 %v3351_v54, %v1474_v0 }
 0x347   :  { %4402 = vst [vmem:[#allocation62_spill] sm:$0xff] %v3544_v21  ;;  %v1620_v23 = vmul.f32 0.6931472, %v2861_v61  ;;  %v1307_v55 = vadd.f32 %v1306_v46, %v1305_v53  ;;  %v2208_v34 = vsel %vm831_vm1, %v2143_v22, 0.0  ;;  %v2418_v38 = vmul.f32 %v3500_v2, %v2288_v12 }
 0x348   :  { %v1741_v6 = vadd.f32 %v1740_v48, %v1739_v14  ;;  %v1923_v16 = vadd.f32 %v1922_v59, %v1921_v40  ;;  %v2065_v7 = vadd.f32 %v2064_v26, %v2063_v57  ;;  %v2207_v25 = vsel %vm831_vm1, %v2142_v33, 0.0 }
 0x349   :  { %2866 = vlog2.f32 %v912_v50  ;;  %v1453_v44 = vadd.f32 %v1452_v47, %v1451_v13  ;;  %v836_v8 = vadd.f32 %v835_v28, %v3487_v4  ;;  %v1598_v5 = vrot.slane %v1597_v36, 1 }
 0x34a   :  { %2868 = vlog2.f32 %v1122_v9  ;;  %v2209_v39 = vadd.f32 %v2208_v34, %v2207_v25  ;;  %v2273_v41 = vmul.f32 %v3509_v32, %v2143_v22  ;;  %v3552_v61 = vpop.eup %2862  ;;  %v1347_v53 = vadd.f32 %v1339_v56, %v1153_v63 }
 0x34b   :  { %4403 = vst [vmem:[#allocation63_spill] sm:$0xff] %v3552_v61  ;;  %v1631_v15 = vmul.f32 %v3354_v51, %v1620_v23  ;;  %v3556_v2 = vmul.f32 0.6931472, %v3523_v52  ;;  %v1316_v31 = vmax.f32 %v1307_v55, 1e-10  ;;  %v2865_v14 = vpop.eup %2864  ;;  %v1742_v40 = vrot.slane %v1741_v6, 2 }
 0x34c   :  { %v2434_v33 = vmul.f32 1.12535176e-07, %v2418_v38  ;;  %v1932_v57 = vmax.f32 %v1923_v16, 1e-10  ;;  %v2066_v18 = vrot.slane %v2065_v7, 2  ;;  %v1493_v4 = vadd.f32 %v1485_v43, %v1347_v53  ;;  %v4428_v61 = vld [vmem:[#allocation19_spill] sm:$0xff] }
 0x34d   :  { %4404 = vst [vmem:[#allocation64_spill] sm:$0xff] %v3556_v2  ;;  %v3558_v13 = vadd.f32 %v2486_v62, %v2485_v19  ;;  %v1462_v60 = vmax.f32 %v1453_v44, 1e-10  ;;  %v837_v1 = vrot.slane %v836_v8, 2  ;;  %v1599_v0 = vadd.f32 %v1598_v5, %v1597_v36 }
 0x34e   :  { %v2210_v63 = vrot.slane %v2209_v39, 4  ;;  %v2289_v46 = vmul.f32 6.1442124e-06, %v2273_v41  ;;  %v3561_v22 = vadd.f32 %v1631_v15, %v1493_v4  ;;  %v3563_v52 = vmul.f32 0.6931472, %v2865_v14 }
 0x34f   :  { %4405 = vst [vmem:[#allocation65_spill] sm:$0xff] %v3558_v13  ;;  %v2353_v48 = vsel %vm831_vm1, %v2288_v12, 0.0  ;;  %2870 = vlog2.f32 %v1316_v31  ;;  %v3567_v59 = vsel %vm831_vm1, %v2434_v33, 0.0  ;;  %v1743_v26 = vadd.f32 %v1742_v40, %v1741_v6 }
 0x350   :  { %4406 = vst [vmem:[#allocation66_spill] sm:$0xff] %v3561_v22  ;;  %4407 = vst [vmem:[#allocation67_spill] sm:$0xff] %v3563_v52  ;;  %2872 = vlog2.f32 %v1932_v57  ;;  %v2067_v19 = vadd.f32 %v2066_v18, %v2065_v7  ;;  %v838_v56 = vadd.f32 %v837_v1, %v836_v8  ;;  %v846_v50 = vrot.slane %v3490_v20, 2  ;;  %v4410_v1 = vld [vmem:[#allocation34_spill] sm:$0xff] }
 0x351   :  { %2874 = vlog2.f32 %v1462_v60  ;;  %v3572_v47 = vmul.f32 %v3237_v3, %v3313_v49  ;;  %v1608_v28 = vmax.f32 %v1599_v0, 1e-10  ;;  %v2211_v62 = vadd.f32 %v2210_v63, %v2209_v39  ;;  %v4411_v63 = vld [vmem:[#allocation43_spill] sm:$0xff] }
 0x352   :  { %v2354_v9 = vsel %vm831_vm1, %v2289_v46, 0.0  ;;  %v3577_v12 = vmul.f32 %v3221_v37, %v3292_v35  ;;  %v2419_v43 = vmul.f32 %v3509_v32, %v2289_v46  ;;  %v862_v23 = vrot.slane %v3402_v42, 4 }
 0x353   :  { %v2867_v36 = vpop.eup %2866  ;;  %v3583_v55 = vmul.f32 %v3245_v17, %v3292_v35  ;;  %v3587_v3 = vmul.f32 %v3217_v30, %v3292_v35  ;;  %v1744_v38 = vrot.slane %v1743_v26, 1  ;;  %v2068_v6 = vrot.slane %v2067_v19, 1 }
 0x354   :  { %v2869_v34 = vpop.eup %2868  ;;  %v1042_v37 = vsel %vm831_vm1, %v3577_v12, 0.0  ;;  %v1043_v16 = vsel %vm831_vm1, %v3572_v47, 0.0  ;;  %v839_v32 = vrot.slane %v838_v56, 1  ;;  %v4408_v7 = vrot.slane %v3387_v24, 4 }
 0x355   :  { %v1044_v17 = vadd.f32 %v1043_v16, %v1042_v37  ;;  %v1051_v44 = vsel %vm831_vm1, %v3583_v55, 0.0  ;;  %v928_v30 = vmul.f32 0.6931472, %v2867_v36  ;;  %v2212_v8 = vrot.slane %v2211_v62, 2 }
 0x356   :  { %v854_v25 = vadd.f32 %v4408_v7, %v3387_v24  ;;  %v2355_v5 = vadd.f32 %v2354_v9, %v2353_v48  ;;  %v1053_v39 = vadd.f32 %v3394_v45, %v1051_v44  ;;  %v1138_v41 = vmul.f32 0.6931472, %v2869_v34  ;;  %v4409_v24 = vld [vmem:[#allocation55_spill] sm:$0xff] }
 0x357   :  { %v2435_v53 = vmul.f32 1.12535176e-07, %v2419_v43  ;;  %v863_v15 = vadd.f32 %v862_v23, %v3402_v42  ;;  %v1060_v31 = vsel %vm831_vm1, %v3587_v3, 0.0  ;;  %2876 = vlog2.f32 %v1608_v28 }
 0x358   :  { %v1745_v14 = vadd.f32 %v1744_v38, %v1743_v26  ;;  %v1045_v33 = vrot.slane %v1044_v17, 4  ;;  %v1062_v40 = vadd.f32 %v4409_v24, %v1060_v31  ;;  %v2069_v18 = vadd.f32 %v2068_v6, %v2067_v19  ;;  %v4412_v38 = vld [vmem:[#allocation21_spill] sm:$0xff]  ;;  %v4415_v31 = vld [vmem:[#allocation23_spill] sm:$0xff] }
 0x359   :  { %v2871_v57 = vpop.eup %2870  ;;  %v840_v4 = vadd.f32 %v839_v32, %v838_v56  ;;  %v855_v60 = vrot.slane %v854_v25, 2  ;;  %v3605_v0 = vmul.f32 %v4410_v1, %v3292_v35  ;;  %v937_v46 = vmul.f32 %v4411_v63, %v928_v30  ;;  %v4413_v30 = vld [vmem:[#allocation56_spill] sm:$0xff] }
 0x35a   :  { %v2873_v45 = vpop.eup %2872  ;;  %v2213_v42 = vadd.f32 %v2212_v8, %v2211_v62  ;;  %v2356_v48 = vrot.slane %v2355_v5, 4  ;;  %v1054_v9 = vrot.slane %v1053_v39, 4  ;;  %v1147_v26 = vmul.f32 %v3322_v58, %v1138_v41  ;;  %v4414_v41 = vld [vmem:[#allocation17_spill] sm:$0xff] }
 0x35b   :  { %v2875_v36 = vpop.eup %2874  ;;  %v2500_v28 = vsel %vm831_vm1, %v2435_v53, 0.0  ;;  %v847_v43 = vadd.f32 %v846_v50, %v3490_v20  ;;  %v864_v19 = vrot.slane %v863_v15, 2  ;;  %v1332_v56 = vmul.f32 0.6931472, %v2871_v57 }
 0x35c   :  { %v1046_v23 = vadd.f32 %v1045_v33, %v1044_v17  ;;  %v1063_v34 = vrot.slane %v1062_v40, 4  ;;  %v1205_v6 = vmul.f32 %v4412_v38, %v3572_v47  ;;  %v1754_v37 = vmax.f32 %v1745_v14, 1e-10 }
 0x35d   :  { %v856_v16 = vadd.f32 %v855_v60, %v854_v25  ;;  %v905_v32 = vmax.f32 %v840_v4, 1e-10  ;;  %v1069_v62 = vsel %vm831_vm1, %v3605_v0, 0.0  ;;  %v2078_v7 = vmax.f32 %v2069_v18, 1e-10 }
 0x35e   :  { %v1055_v44 = vadd.f32 %v1054_v9, %v1053_v39  ;;  %v1071_v8 = vadd.f32 %v4413_v30, %v1069_v62  ;;  %v1204_v20 = vmul.f32 %v4414_v41, %v3577_v12  ;;  %v2214_v50 = vrot.slane %v2213_v42, 1  ;;  %v4416_v39 = vld [vmem:[#allocation53_spill] sm:$0xff] }
 0x35f   :  { %v848_v53 = vrot.slane %v847_v43, 1  ;;  %v865_v17 = vadd.f32 %v864_v19, %v863_v15  ;;  %v1206_v33 = vmul.f32 %v4415_v31, %v3583_v55  ;;  %v2357_v24 = vadd.f32 %v2356_v48, %v2355_v5 }
 0x360   :  { %v1047_v14 = vrot.slane %v1046_v23, 2  ;;  %v1064_v25 = vadd.f32 %v1063_v34, %v1062_v40  ;;  %v3620_v57 = vmul.f32 0.01831564, %v1205_v6  ;;  %v2501_v4 = vadd.f32 %v2500_v28, %v3567_v59 }
 0x361   :  { %v857_v18 = vrot.slane %v856_v16, 1  ;;  %2878 = vlog2.f32 %v905_v32  ;;  %v3624_v60 = vmul.f32 0.01831564, %v4416_v39  ;;  %v3626_v1 = vpop.eup %2876  ;;  %v1155_v9 = vadd.f32 %v1147_v26, %v937_v46 }
 0x362   :  { %v1056_v62 = vrot.slane %v1055_v44, 2  ;;  %v1072_v15 = vrot.slane %v1071_v8, 4  ;;  %v1220_v19 = vmul.f32 0.01831564, %v1204_v20  ;;  %v1341_v30 = vmul.f32 %v3344_v27, %v1332_v56 }
 0x363   :  { %v849_v5 = vadd.f32 %v848_v53, %v847_v43  ;;  %v866_v48 = vrot.slane %v865_v17, 1  ;;  %v3629_v40 = vmul.f32 0.01831564, %v1206_v33  ;;  %v1048_v34 = vadd.f32 %v1047_v14, %v1046_v23 }
 0x364   :  { %v1065_v6 = vrot.slane %v1064_v25, 2  ;;  %v1236_v59 = vsel %vm831_vm1, %v1220_v19, 0.0  ;;  %v1237_v28 = vsel %vm831_vm1, %v3620_v57, 0.0  ;;  %2880 = vlog2.f32 %v1754_v37 }
 0x365   :  { %v3634_v32 = vmul.f32 0.6931472, %v2873_v45  ;;  %v858_v46 = vadd.f32 %v857_v18, %v856_v16  ;;  %v1246_v26 = vsel %vm831_vm1, %v3624_v60, 0.0  ;;  %2882 = vlog2.f32 %v2078_v7  ;;  %v4419_v7 = vld [vmem:[#allocation15_spill] sm:$0xff] }
 0x366   :  { %v3638_v56 = vadd.f32 %v2214_v50, %v2213_v42  ;;  %v1057_v43 = vadd.f32 %v1056_v62, %v1055_v44  ;;  %v1073_v20 = vadd.f32 %v1072_v15, %v1071_v8  ;;  %v2358_v53 = vrot.slane %v2357_v24, 2 }
 0x367   :  { %4417 = vst [vmem:[#allocation55_spill] sm:$0xff] %v3634_v32  ;;  %v906_v23 = vmax.f32 %v849_v5, 1e-10  ;;  %v1238_v33 = vadd.f32 %v1237_v28, %v1236_v59  ;;  %v1245_v14 = vsel %vm831_vm1, %v3629_v40, 0.0  ;;  %v867_v39 = vadd.f32 %v866_v48, %v865_v17  ;;  %v4421_v17 = vld [vmem:[#allocation57_spill] sm:$0xff]  ;;  %v4422_v28 = vld [vmem:[#allocation35_spill] sm:$0xff] }
 0x368   :  { %4418 = vst [vmem:[#allocation34_spill] sm:$0xff] %v3638_v56  ;;  %v1049_v29 = vrot.slane %v1048_v34, 1  ;;  %v1066_v37 = vadd.f32 %v1065_v6, %v1064_v25  ;;  %v1247_v45 = vadd.f32 %v1246_v26, %v1245_v14  ;;  %v3642_v2 = vadd.f32 %v1341_v30, %v1155_v9 }
 0x369   :  { %v1478_v16 = vmul.f32 0.6931472, %v2875_v36  ;;  %v907_v18 = vmax.f32 %v858_v46, 1e-10  ;;  %v1208_v42 = vmul.f32 %v4419_v7, %v3587_v3  ;;  %v2502_v8 = vrot.slane %v2501_v4, 4 }
 0x36a   :  { %v1058_v50 = vrot.slane %v1057_v43, 1  ;;  %v1074_v62 = vrot.slane %v1073_v20, 2  ;;  %v3647_v5 = vadd.f32 %v2358_v53, %v2357_v24  ;;  %2884 = vlog2.f32 %v906_v23 }
 0x36b   :  { %v2879_v15 = vpop.eup %2878  ;;  %v1225_v48 = vmul.f32 0.01831564, %v4421_v17  ;;  %v1239_v25 = vrot.slane %v1238_v33, 4  ;;  %v908_v6 = vmax.f32 %v867_v39, 1e-10  ;;  %v1050_v9 = vadd.f32 %v1049_v29, %v1048_v34  ;;  %v4425_v39 = vld [vmem:[#allocation58_spill] sm:$0xff] }
 0x36c   :  { %4420 = vst [vmem:[#allocation21_spill] sm:$0xff] %v3647_v5  ;;  %v1067_v30 = vrot.slane %v1066_v37, 1  ;;  %v1248_v36 = vrot.slane %v1247_v45, 4  ;;  %v3651_v59 = vmul.f32 %v3351_v54, %v1478_v16  ;;  %2886 = vlog2.f32 %v907_v18 }
 0x36d   :  { %v1210_v46 = vmul.f32 %v4422_v28, %v3605_v0  ;;  %v1224_v26 = vmul.f32 0.01831564, %v1208_v42  ;;  %v3655_v14 = vadd.f32 %v2502_v8, %v2501_v4  ;;  %v3657_v24 = vmul.f32 0.6931472, %v2879_v15 }
 0x36e   :  { %v1059_v53 = vadd.f32 %v1058_v50, %v1057_v43  ;;  %v1075_v23 = vadd.f32 %v1074_v62, %v1073_v20  ;;  %v3659_v17 = vpop.eup %2880  ;;  %v1227_v29 = vmul.f32 0.01831564, %v4425_v39  ;;  %v1240_v34 = vadd.f32 %v1239_v25, %v1238_v33  ;;  %v4427_v50 = vld [vmem:[#allocation29_spill] sm:$0xff] }
 0x36f   :  { %4423 = vst [vmem:[#allocation56_spill] sm:$0xff] %v3655_v14  ;;  %4424 = vst [vmem:[#allocation17_spill] sm:$0xff] %v3659_v17  ;;  %v1255_v44 = vsel %vm831_vm1, %v1225_v48, 0.0  ;;  %v1351_v16 = vmul.f32 %v4412_v38, %v3620_v57  ;;  %v3665_v18 = vpop.eup %2882  ;;  %2888 = vlog2.f32 %v908_v6  ;;  %v1068_v42 = vadd.f32 %v1067_v30, %v1066_v37 }
 0x370   :  { %4426 = vst [vmem:[#allocation23_spill] sm:$0xff] %v3665_v18  ;;  %v1115_v4 = vmax.f32 %v1050_v9, 1e-10  ;;  %v1249_v8 = vadd.f32 %v1248_v36, %v1247_v45  ;;  %v1226_v15 = vmul.f32 0.01831564, %v1210_v46  ;;  %v1254_v43 = vsel %vm831_vm1, %v1224_v26, 0.0 }
 0x371   :  { %v1350_v20 = vmul.f32 %v4414_v41, %v1220_v19  ;;  %v1353_v62 = vmul.f32 %v4427_v50, %v3624_v60  ;;  %v1076_v33 = vrot.slane %v1075_v23, 1  ;;  %v1116_v25 = vmax.f32 %v1059_v53, 1e-10  ;;  %v4429_v36 = vld [vmem:[#allocation46_spill] sm:$0xff] }
 0x372   :  { %v1256_v39 = vadd.f32 %v1255_v44, %v1254_v43  ;;  %v1355_v21 = vmul.f32 %v4428_v61, %v1225_v48  ;;  %v1241_v57 = vrot.slane %v1240_v34, 2  ;;  %v1264_v18 = vsel %vm831_vm1, %v1227_v29, 0.0 }
 0x373   :  { %v1352_v37 = vmul.f32 %v4415_v31, %v3629_v40  ;;  %v1367_v45 = vmul.f32 0.00033546262, %v1351_v16  ;;  %v1117_v6 = vmax.f32 %v1068_v42, 1e-10  ;;  %2890 = vlog2.f32 %v1115_v4 }
 0x374   :  { %v1250_v9 = vrot.slane %v1249_v8, 2  ;;  %v1354_v19 = vmul.f32 %v4419_v7, %v1224_v26  ;;  %v2885_v30 = vpop.eup %2884  ;;  %v1263_v60 = vsel %vm831_vm1, %v1226_v15, 0.0  ;;  %v1357_v46 = vmul.f32 %v4429_v36, %v1227_v29 }
 0x375   :  { %v1366_v44 = vmul.f32 0.00033546262, %v1350_v20  ;;  %v1369_v53 = vmul.f32 0.00033546262, %v1353_v62  ;;  %2892 = vlog2.f32 %v1116_v25  ;;  %v1257_v48 = vrot.slane %v1256_v39, 4 }
 0x376   :  { %v1265_v43 = vadd.f32 %v1264_v18, %v1263_v60  ;;  %v1371_v14 = vmul.f32 0.00033546262, %v1355_v21  ;;  %v2887_v13 = vpop.eup %2886  ;;  %v1242_v56 = vadd.f32 %v1241_v57, %v1240_v34  ;;  %v1356_v40 = vmul.f32 %v4422_v28, %v1226_v15 }
 0x377   :  { %v1368_v16 = vmul.f32 0.00033546262, %v1352_v37  ;;  %v1383_v42 = vsel %vm831_vm1, %v1367_v45, 0.0  ;;  %v916_v4 = vmul.f32 0.6931472, %v2885_v30  ;;  %2894 = vlog2.f32 %v1117_v6 }
 0x378   :  { %v1251_v26 = vadd.f32 %v1250_v9, %v1249_v8  ;;  %v1370_v5 = vmul.f32 0.00033546262, %v1354_v19  ;;  %v1077_v11 = vadd.f32 %v1076_v33, %v1075_v23  ;;  %v1373_v32 = vmul.f32 0.00033546262, %v1357_v46 }
 0x379   :  { %v1382_v29 = vsel %vm831_vm1, %v1366_v44, 0.0  ;;  %v1392_v20 = vsel %vm831_vm1, %v1369_v53, 0.0  ;;  %v2889_v62 = vpop.eup %2888  ;;  %v918_v18 = vmul.f32 0.6931472, %v2887_v13  ;;  %v1258_v21 = vadd.f32 %v1257_v48, %v1256_v39 }
 0x37a   :  { %v1384_v25 = vadd.f32 %v1383_v42, %v1382_v29  ;;  %v1401_v34 = vsel %vm831_vm1, %v1371_v14, 0.0  ;;  %v1243_v15 = vrot.slane %v1242_v56, 1  ;;  %v1266_v57 = vrot.slane %v1265_v43, 4 }
 0x37b   :  { %v1372_v37 = vmul.f32 0.00033546262, %v1356_v40  ;;  %v1391_v30 = vsel %vm831_vm1, %v1368_v16, 0.0  ;;  %v3686_v8 = vadd.f32 %v3651_v59, %v3642_v2  ;;  %v1252_v23 = vrot.slane %v1251_v26, 1 }
 0x37c   :  { %v1393_v33 = vadd.f32 %v1392_v20, %v1391_v30  ;;  %v1400_v6 = vsel %vm831_vm1, %v1370_v5, 0.0  ;;  %v3690_v9 = vmul.f32 0.6931472, %v3626_v1  ;;  %v1118_v13 = vmax.f32 %v1077_v11, 1e-10 }
 0x37d   :  { %4430 = vst [vmem:[#allocation53_spill] sm:$0xff] %v3686_v8  ;;  %v1402_v39 = vadd.f32 %v1401_v34, %v1400_v6  ;;  %v1410_v19 = vsel %vm831_vm1, %v1373_v32, 0.0  ;;  %v2891_v60 = vpop.eup %2890  ;;  %v3695_v46 = vmul.f32 %v4411_v63, %v3657_v24  ;;  %v3698_v48 = vmul.f32 %v4411_v63, %v916_v4 }
 0x37e   :  { %4431 = vst [vmem:[#allocation15_spill] sm:$0xff] %v3690_v9  ;;  %v1259_v2 = vrot.slane %v1258_v21, 2  ;;  %v1385_v59 = vrot.slane %v1384_v25, 4  ;;  %v3701_v40 = vmul.f32 %v4411_v63, %v918_v18  ;;  %v1244_v42 = vadd.f32 %v1243_v15, %v1242_v56 }
 0x37f   :  { %v1267_v1 = vadd.f32 %v1266_v57, %v1265_v43  ;;  %v1409_v11 = vsel %vm831_vm1, %v1372_v37, 0.0  ;;  %v2893_v29 = vpop.eup %2892  ;;  %v920_v20 = vmul.f32 0.6931472, %v2889_v62  ;;  %v1253_v34 = vadd.f32 %v1252_v23, %v1251_v26 }
 0x380   :  { %v1394_v30 = vrot.slane %v1393_v33, 4  ;;  %v1411_v6 = vadd.f32 %v1410_v19, %v1409_v11  ;;  %v1124_v22 = vmul.f32 0.6931472, %v2891_v60  ;;  %2896 = vlog2.f32 %v1118_v13 }
 0x381   :  { %v1403_v24 = vrot.slane %v1402_v39, 4  ;;  %v1497_v4 = vmul.f32 %v4412_v38, %v1367_v45  ;;  %v2895_v52 = vpop.eup %2894  ;;  %v1260_v17 = vadd.f32 %v1259_v2, %v1258_v21  ;;  %v1386_v8 = vadd.f32 %v1385_v59, %v1384_v25 }
 0x382   :  { %v1496_v18 = vmul.f32 %v4414_v41, %v1366_v44  ;;  %v1499_v56 = vmul.f32 %v4427_v50, %v1369_v53  ;;  %v1126_v43 = vmul.f32 0.6931472, %v2893_v29  ;;  %v1268_v15 = vrot.slane %v1267_v1, 2 }
 0x383   :  { %v1309_v57 = vmax.f32 %v1244_v42, 1e-10  ;;  %v1501_v62 = vmul.f32 %v4428_v61, %v1371_v14  ;;  %v1310_v26 = vmax.f32 %v1253_v34, 1e-10  ;;  %v1395_v23 = vadd.f32 %v1394_v30, %v1393_v33 }
 0x384   :  { %v1412_v19 = vrot.slane %v1411_v6, 4  ;;  %v1498_v13 = vmul.f32 %v4415_v31, %v1368_v16  ;;  %v1128_v60 = vmul.f32 0.6931472, %v2895_v52  ;;  %v1404_v11 = vadd.f32 %v1403_v24, %v1402_v39 }
 0x385   :  { %v1500_v45 = vmul.f32 %v4419_v7, %v1370_v5  ;;  %v1513_v21 = vmul.f32 6.1442124e-06, %v1497_v4  ;;  %v1261_v25 = vrot.slane %v1260_v17, 1  ;;  %v1387_v2 = vrot.slane %v1386_v8, 2 }
 0x386   :  { %v1512_v44 = vmul.f32 6.1442124e-06, %v1496_v18  ;;  %v1515_v59 = vmul.f32 6.1442124e-06, %v1499_v56  ;;  %v1269_v53 = vadd.f32 %v1268_v15, %v1267_v1  ;;  %2898 = vlog2.f32 %v1309_v57 }
 0x387   :  { %v1503_v42 = vmul.f32 %v4429_v36, %v1373_v32  ;;  %v3711_v29 = vmul.f32 6.1442124e-06, %v1501_v62  ;;  %2900 = vlog2.f32 %v1310_v26  ;;  %v1396_v14 = vrot.slane %v1395_v23, 2 }
 0x388   :  { %v1413_v33 = vadd.f32 %v1412_v19, %v1411_v6  ;;  %v1514_v34 = vmul.f32 6.1442124e-06, %v1498_v13  ;;  %v1405_v16 = vrot.slane %v1404_v11, 2  ;;  %v1502_v52 = vmul.f32 %v4422_v28, %v1372_v37 }
 0x389   :  { %v3714_v39 = vmul.f32 6.1442124e-06, %v1500_v45  ;;  %v1529_v5 = vsel %vm831_vm1, %v1513_v21, 0.0  ;;  %v1140_v30 = vmul.f32 %v3322_v58, %v1124_v22  ;;  %v1388_v24 = vadd.f32 %v1387_v2, %v1386_v8 }
 0x38a   :  { %v1528_v1 = vsel %vm831_vm1, %v1512_v44, 0.0  ;;  %v1538_v32 = vsel %vm831_vm1, %v1515_v59, 0.0  ;;  %v2897_v4 = vpop.eup %2896  ;;  %v1270_v18 = vrot.slane %v1269_v53, 1  ;;  %v1519_v56 = vmul.f32 6.1442124e-06, %v1503_v42 }
 0x38b   :  { %v1530_v15 = vadd.f32 %v1529_v5, %v1528_v1  ;;  %v1547_v6 = vsel %vm831_vm1, %v3711_v29, 0.0  ;;  %v1262_v57 = vadd.f32 %v1261_v25, %v1260_v17  ;;  %v1397_v37 = vadd.f32 %v1396_v14, %v1395_v23 }
 0x38c   :  { %v1414_v62 = vrot.slane %v1413_v33, 2  ;;  %v1537_v26 = vsel %vm831_vm1, %v1514_v34, 0.0  ;;  %v1406_v19 = vadd.f32 %v1405_v16, %v1404_v11  ;;  %v1518_v13 = vmul.f32 6.1442124e-06, %v1502_v52 }
 0x38d   :  { %v1539_v22 = vadd.f32 %v1538_v32, %v1537_v26  ;;  %v1546_v8 = vsel %vm831_vm1, %v3714_v39, 0.0  ;;  %v3726_v45 = vmul.f32 %v4411_v63, %v920_v20  ;;  %v1130_v2 = vmul.f32 0.6931472, %v2897_v4 }
 0x38e   :  { %v1389_v42 = vrot.slane %v1388_v24, 1  ;;  %v1548_v5 = vadd.f32 %v1547_v6, %v1546_v8  ;;  %v3729_v1 = vmul.f32 %v3322_v58, %v1126_v43  ;;  %v1271_v17 = vadd.f32 %v1270_v18, %v1269_v53 }
 0x38f   :  { %v1531_v23 = vrot.slane %v1530_v15, 4  ;;  %v1556_v25 = vsel %vm831_vm1, %v1519_v56, 0.0  ;;  %v3733_v11 = vmul.f32 %v3322_v58, %v1128_v60  ;;  %v3736_v14 = vadd.f32 %v1140_v30, %v3695_v46 }
 0x390   :  { %v1398_v16 = vrot.slane %v1397_v37, 1  ;;  %v1415_v52 = vadd.f32 %v1414_v62, %v1413_v33  ;;  %v2899_v20 = vpop.eup %2898  ;;  %v1311_v32 = vmax.f32 %v1262_v57, 1e-10  ;;  %v1407_v4 = vrot.slane %v1406_v19, 1 }
 0x391   :  { %v1540_v26 = vrot.slane %v1539_v22, 4  ;;  %v1555_v6 = vsel %vm831_vm1, %v1518_v13, 0.0  ;;  %v2901_v43 = vpop.eup %2900  ;;  %v3740_v53 = vmul.f32 %v3322_v58, %v1130_v2  ;;  %v1390_v18 = vadd.f32 %v1389_v42, %v1388_v24 }
 0x392   :  { %v1549_v8 = vrot.slane %v1548_v5, 4  ;;  %v1557_v63 = vadd.f32 %v1556_v25, %v1555_v6  ;;  %v1312_v60 = vmax.f32 %v1271_v17, 1e-10  ;;  %v1532_v9 = vadd.f32 %v1531_v23, %v1530_v15 }
 0x393   :  { %v1642_v46 = vmul.f32 %v4414_v41, %v1512_v44  ;;  %v1643_v30 = vmul.f32 %v4412_v38, %v1513_v21  ;;  %v1399_v33 = vadd.f32 %v1398_v16, %v1397_v37  ;;  %v1416_v62 = vrot.slane %v1415_v52, 1 }
 0x394   :  { %v1644_v57 = vmul.f32 %v4415_v31, %v1514_v34  ;;  %v1645_v49 = vmul.f32 %v4427_v50, %v1515_v59  ;;  %v1318_v35 = vmul.f32 0.6931472, %v2899_v20  ;;  %2902 = vlog2.f32 %v1311_v32 }
 0x395   :  { %v1408_v10 = vadd.f32 %v1407_v4, %v1406_v19  ;;  %v1541_v2 = vadd.f32 %v1540_v26, %v1539_v22  ;;  %v1320_v58 = vmul.f32 0.6931472, %v2901_v43  ;;  %v1455_v24 = vmax.f32 %v1390_v18, 1e-10 }
 0x396   :  { %v1550_v42 = vadd.f32 %v1549_v8, %v1548_v5  ;;  %v1558_v25 = vrot.slane %v1557_v63, 4  ;;  %2904 = vlog2.f32 %v1312_v60  ;;  %v1533_v15 = vrot.slane %v1532_v9, 2 }
 0x397   :  { %v1658_v17 = vmul.f32 1.12535176e-07, %v1642_v46  ;;  %v1659_v41 = vmul.f32 1.12535176e-07, %v1643_v30  ;;  %v1417_v44 = vadd.f32 %v1416_v62, %v1415_v52  ;;  %v1456_v38 = vmax.f32 %v1399_v33, 1e-10 }
 0x398   :  { %v1660_v21 = vmul.f32 1.12535176e-07, %v1644_v57  ;;  %v1661_v37 = vmul.f32 1.12535176e-07, %v1645_v49  ;;  %v1457_v23 = vmax.f32 %v1408_v10, 1e-10  ;;  %v1647_v50 = vmul.f32 %v4428_v61, %v3711_v29 }
 0x399   :  { %v1542_v31 = vrot.slane %v1541_v2, 2  ;;  %v1649_v59 = vmul.f32 %v4429_v36, %v1519_v56  ;;  %2906 = vlog2.f32 %v1455_v24  ;;  %v1551_v34 = vrot.slane %v1550_v42, 2 }
 0x39a   :  { %v1559_v19 = vadd.f32 %v1558_v25, %v1557_v63  ;;  %v1646_v22 = vmul.f32 %v4419_v7, %v3714_v39  ;;  %v1534_v5 = vadd.f32 %v1533_v15, %v1532_v9  ;;  %v1648_v16 = vmul.f32 %v4422_v28, %v1518_v13 }
 0x39b   :  { %v1674_v52 = vsel %vm831_vm1, %v1658_v17, 0.0  ;;  %v1675_v49 = vsel %vm831_vm1, %v1659_v41, 0.0  ;;  %v1458_v10 = vmax.f32 %v1417_v44, 1e-10  ;;  %v1683_v32 = vsel %vm831_vm1, %v1660_v21, 0.0 }
 0x39c   :  { %v1676_v20 = vadd.f32 %v1675_v49, %v1674_v52  ;;  %v1684_v61 = vsel %vm831_vm1, %v1661_v37, 0.0  ;;  %v1543_v36 = vadd.f32 %v1542_v31, %v1541_v2  ;;  %v1663_v29 = vmul.f32 1.12535176e-07, %v1647_v50  ;;  %v4434_v49 = vld [vmem:[#allocation48_spill] sm:$0xff] }
 0x39d   :  { %v1665_v56 = vmul.f32 1.12535176e-07, %v1649_v59  ;;  %v1685_v63 = vadd.f32 %v1684_v61, %v1683_v32  ;;  %2908 = vlog2.f32 %v1456_v38  ;;  %v1552_v4 = vadd.f32 %v1551_v34, %v1550_v42 }
 0x39e   :  { %v1560_v7 = vrot.slane %v1559_v19, 2  ;;  %v1677_v9 = vrot.slane %v1676_v20, 4  ;;  %v2903_v39 = vpop.eup %2902  ;;  %2910 = vlog2.f32 %v1457_v23  ;;  %v1535_v28 = vrot.slane %v1534_v5, 1 }
 0x39f   :  { %v1662_v13 = vmul.f32 1.12535176e-07, %v1646_v22  ;;  %v1664_v26 = vmul.f32 1.12535176e-07, %v1648_v16  ;;  %v1149_v6 = vadd.f32 %v3729_v1, %v3698_v48  ;;  %v3760_v43 = vadd.f32 %v3733_v11, %v3701_v40  ;;  %v4432_v11 = vld [vmem:[#allocation22_spill] sm:$0xff] }
 0x3a0   :  { %2912 = vlog2.f32 %v1458_v10  ;;  %v1686_v18 = vrot.slane %v1685_v63, 4  ;;  %v2905_v8 = vpop.eup %2904  ;;  %v1544_v60 = vrot.slane %v1543_v36, 1  ;;  %v1678_v46 = vadd.f32 %v1677_v9, %v1676_v20 }
 0x3a1   :  { %v1693_v30 = vsel %vm831_vm1, %v1663_v29, 0.0  ;;  %v1702_v33 = vsel %vm831_vm1, %v1665_v56, 0.0  ;;  %v1334_v62 = vmul.f32 %v3344_v27, %v1318_v35  ;;  %v1335_v57 = vmul.f32 %v3344_v27, %v1320_v58  ;;  %v4433_v58 = vld [vmem:[#allocation18_spill] sm:$0xff] }
 0x3a2   :  { %v1553_v2 = vrot.slane %v1552_v4, 1  ;;  %v1561_v24 = vadd.f32 %v1560_v7, %v1559_v19  ;;  %v1536_v48 = vadd.f32 %v1535_v28, %v1534_v5  ;;  %v1692_v1 = vsel %vm831_vm1, %v1662_v13, 0.0  ;;  %v4437_v28 = vld [vmem:[#allocation50_spill] sm:$0xff]  ;;  %v4438_v13 = vld [vmem:[#allocation20_spill] sm:$0xff] }
 0x3a3   :  { %v1701_v40 = vsel %vm831_vm1, %v1664_v26, 0.0  ;;  %v3770_v42 = vmul.f32 %v4432_v11, %v3572_v47  ;;  %v2907_v25 = vpop.eup %2906  ;;  %v1322_v15 = vmul.f32 0.6931472, %v2903_v39  ;;  %v1687_v17 = vadd.f32 %v1686_v18, %v1685_v63  ;;  %v4436_v63 = vld [vmem:[#allocation24_spill] sm:$0xff] }
 0x3a4   :  { %v1694_v41 = vadd.f32 %v1693_v30, %v1692_v1  ;;  %v1703_v44 = vadd.f32 %v1702_v33, %v1701_v40  ;;  %v1324_v38 = vmul.f32 0.6931472, %v2905_v8  ;;  %v1545_v35 = vadd.f32 %v1544_v60, %v1543_v36  ;;  %v4441_v1 = vld [vmem:[#allocation47_spill] sm:$0xff] }
 0x3a5   :  { %v1679_v21 = vrot.slane %v1678_v46, 2  ;;  %v3774_v37 = vmul.f32 %v4433_v58, %v3577_v12  ;;  %v1151_v23 = vadd.f32 %v3740_v53, %v3726_v45  ;;  %v3779_v31 = vadd.f32 %v1334_v62, %v3736_v14  ;;  %v4435_v45 = vld [vmem:[#allocation30_spill] sm:$0xff] }
 0x3a6   :  { %v3781_v47 = vadd.f32 %v1335_v57, %v1149_v6  ;;  %v1554_v50 = vadd.f32 %v1553_v2, %v1552_v4  ;;  %v1562_v59 = vrot.slane %v1561_v24, 1  ;;  %v1601_v34 = vmax.f32 %v1536_v48, 1e-10  ;;  %v4440_v48 = vld [vmem:[#allocation51_spill] sm:$0xff] }
 0x3a7   :  { %v1852_v19 = vsel %vm831_vm1, %v3774_v37, 0.0  ;;  %v1853_v22 = vsel %vm831_vm1, %v3770_v42, 0.0  ;;  %v2909_v5 = vpop.eup %2908  ;;  %v1688_v12 = vrot.slane %v1687_v17, 2  ;;  %v1695_v16 = vrot.slane %v1694_v41, 4 }
 0x3a8   :  { %v1704_v52 = vrot.slane %v1703_v44, 4  ;;  %v3789_v53 = vmul.f32 %v4435_v45, %v4434_v49  ;;  %v2911_v14 = vpop.eup %2910  ;;  %v1336_v10 = vmul.f32 %v3344_v27, %v1322_v15  ;;  %v1337_v20 = vmul.f32 %v3344_v27, %v1324_v38 }
 0x3a9   :  { %v1602_v32 = vmax.f32 %v1545_v35, 1e-10  ;;  %v1680_v61 = vadd.f32 %v1679_v21, %v1678_v46  ;;  %v1464_v29 = vmul.f32 0.6931472, %v2907_v25  ;;  %v1603_v56 = vmax.f32 %v1554_v50, 1e-10 }
 0x3aa   :  { %v2913_v36 = vpop.eup %2912  ;;  %v3795_v4 = vmul.f32 %v4436_v63, %v3583_v55  ;;  %v1854_v7 = vadd.f32 %v1853_v22, %v1852_v19  ;;  %v1466_v9 = vmul.f32 0.6931472, %v2909_v5  ;;  %v1563_v39 = vadd.f32 %v1562_v59, %v1561_v24  ;;  %v4439_v55 = vld [vmem:[#allocation16_spill] sm:$0xff]  ;;  %v4442_v21 = vld [vmem:[#allocation37_spill] sm:$0xff] }
 0x3ab   :  { %2914 = vlog2.f32 %v1601_v34  ;;  %v3799_v26 = vmul.f32 %v4438_v13, %v4437_v28  ;;  %v1689_v6 = vadd.f32 %v1688_v12, %v1687_v17  ;;  %v1696_v18 = vadd.f32 %v1695_v16, %v1694_v41 }
 0x3ac   :  { %v1705_v8 = vadd.f32 %v1704_v52, %v1703_v44  ;;  %v1862_v60 = vsel %vm831_vm1, %v3789_v53, 0.0  ;;  %v1468_v46 = vmul.f32 0.6931472, %v2911_v14  ;;  %2916 = vlog2.f32 %v1602_v32 }
 0x3ad   :  { %v1681_v30 = vrot.slane %v1680_v61, 1  ;;  %v3805_v33 = vmul.f32 %v4439_v55, %v3587_v3  ;;  %v1470_v62 = vmul.f32 0.6931472, %v2913_v36  ;;  %2918 = vlog2.f32 %v1603_v56 }
 0x3ae   :  { %v1855_v57 = vrot.slane %v1854_v7, 4  ;;  %v1861_v2 = vsel %vm831_vm1, %v3795_v4, 0.0  ;;  %v1604_v24 = vmax.f32 %v1563_v39, 1e-10  ;;  %v1843_v40 = vmul.f32 %v4441_v1, %v4440_v48 }
 0x3af   :  { %v1863_v25 = vadd.f32 %v1862_v60, %v1861_v2  ;;  %v1871_v15 = vsel %vm831_vm1, %v3799_v26, 0.0  ;;  %v1344_v17 = vadd.f32 %v1336_v10, %v3760_v43  ;;  %v1690_v3 = vrot.slane %v1689_v6, 1 }
 0x3b0   :  { %v1697_v41 = vrot.slane %v1696_v18, 2  ;;  %v1706_v44 = vrot.slane %v1705_v8, 2  ;;  %v1480_v38 = vmul.f32 %v3351_v54, %v1464_v29  ;;  %v1682_v35 = vadd.f32 %v1681_v30, %v1680_v61 }
 0x3b1   :  { %v1842_v50 = vmul.f32 %v4442_v21, %v3605_v0  ;;  %v1870_v59 = vsel %vm831_vm1, %v3805_v33, 0.0  ;;  %v1481_v34 = vmul.f32 %v3351_v54, %v1466_v9  ;;  %v1482_v19 = vmul.f32 %v3351_v54, %v1468_v46 }
 0x3b2   :  { %v1856_v22 = vadd.f32 %v1855_v57, %v1854_v7  ;;  %v1872_v5 = vadd.f32 %v1871_v15, %v1870_v59  ;;  %v1483_v43 = vmul.f32 %v3351_v54, %v1470_v62  ;;  %2920 = vlog2.f32 %v1604_v24 }
 0x3b3   :  { %v1864_v12 = vrot.slane %v1863_v25, 4  ;;  %v1880_v16 = vsel %vm831_vm1, %v1843_v40, 0.0  ;;  %v1345_v52 = vadd.f32 %v1337_v20, %v1151_v23  ;;  %v1691_v49 = vadd.f32 %v1690_v3, %v1689_v6 }
 0x3b4   :  { %v1698_v14 = vadd.f32 %v1697_v41, %v1696_v18  ;;  %v1707_v0 = vadd.f32 %v1706_v44, %v1705_v8  ;;  %v3826_v32 = vadd.f32 %v1480_v38, %v3779_v31  ;;  %v1747_v61 = vmax.f32 %v1682_v35, 1e-10 }
 0x3b5   :  { %v2915_v10 = vpop.eup %2914  ;;  %v1879_v36 = vsel %vm831_vm1, %v1842_v50, 0.0  ;;  %v1967_v29 = vmul.f32 %v4432_v11, %v3770_v42  ;;  %v3832_v56 = vadd.f32 %v1481_v34, %v3781_v47  ;;  %v1857_v7 = vrot.slane %v1856_v22, 2 }
 0x3b6   :  { %v1873_v9 = vrot.slane %v1872_v5, 4  ;;  %v1881_v23 = vadd.f32 %v1880_v16, %v1879_v36  ;;  %v2917_v20 = vpop.eup %2916  ;;  %v3834_v39 = vadd.f32 %v1482_v19, %v1344_v17  ;;  %v3836_v28 = vadd.f32 %v1483_v43, %v1345_v52 }
 0x3b7   :  { %v3839_v6 = vstv %s3809_s9  ;;  %v1865_v31 = vadd.f32 %v1864_v12, %v1863_v25  ;;  %v2919_v18 = vpop.eup %2918  ;;  %v1699_v8 = vrot.slane %v1698_v14, 1  ;;  %v1708_v60 = vrot.slane %v1707_v0, 1 }
 0x3b8   :  { %v1748_v46 = vmax.f32 %v1691_v49, 1e-10  ;;  %v1969_v42 = vmul.f32 %v4435_v45, %v3789_v53  ;;  %v1610_v47 = vmul.f32 0.6931472, %v2915_v10  ;;  %2922 = vlog2.f32 %v1747_v61 }
 0x3b9   :  { %v1966_v30 = vmul.f32 %v4433_v58, %v3774_v37  ;;  %v3845_v62 = vmul.f32 0.01831564, %v1967_v29  ;;  %v1858_v57 = vadd.f32 %v1857_v7, %v1856_v22  ;;  %v1874_v2 = vadd.f32 %v1873_v9, %v1872_v5 }
 0x3ba   :  { %v1882_v24 = vrot.slane %v1881_v23, 4  ;;  %v1968_v48 = vmul.f32 %v4436_v63, %v3795_v4  ;;  %v1612_v25 = vmul.f32 0.6931472, %v2917_v20  ;;  %v1614_v15 = vmul.f32 0.6931472, %v2919_v18 }
 0x3bb   :  { %v1866_v17 = vrot.slane %v1865_v31, 2  ;;  %v1971_v3 = vmul.f32 %v4438_v13, %v3799_v26  ;;  %v1700_v53 = vadd.f32 %v1699_v8, %v1698_v14  ;;  %v1709_v41 = vadd.f32 %v1708_v60, %v1707_v0 }
 0x3bc   :  { %2924 = vlog2.f32 %v1748_v46  ;;  %v1985_v44 = vmul.f32 0.01831564, %v1969_v42  ;;  %v2921_v38 = vpop.eup %2920  ;;  %v1970_v37 = vmul.f32 %v4439_v55, %v3805_v33  ;;  %v1973_v35 = vmul.f32 %v4441_v1, %v1843_v40 }
 0x3bd   :  { %v1982_v59 = vmul.f32 0.01831564, %v1966_v30  ;;  %v1999_v4 = vsel %vm831_vm1, %v3845_v62, 0.0  ;;  %v1859_v34 = vrot.slane %v1858_v57, 1  ;;  %v1875_v19 = vrot.slane %v1874_v2, 2 }
 0x3be   :  { %v1883_v22 = vadd.f32 %v1882_v24, %v1881_v23  ;;  %v1984_v5 = vmul.f32 0.01831564, %v1968_v48  ;;  %v1867_v43 = vadd.f32 %v1866_v17, %v1865_v31  ;;  %v1972_v26 = vmul.f32 %v4442_v21, %v1842_v50 }
 0x3bf   :  { %v1987_v12 = vmul.f32 0.01831564, %v1971_v3  ;;  %v1998_v16 = vsel %vm831_vm1, %v1982_v59, 0.0  ;;  %v3858_v52 = vmul.f32 0.6931472, %v2921_v38  ;;  %v2008_v40 = vsel %vm831_vm1, %v1985_v44, 0.0 }
 0x3c0   :  { %v1749_v49 = vmax.f32 %v1700_v53, 1e-10  ;;  %v2000_v33 = vadd.f32 %v1999_v4, %v1998_v16  ;;  %v1626_v14 = vmul.f32 %v3354_v51, %v1610_v47  ;;  %v1750_v0 = vmax.f32 %v1709_v41, 1e-10 }
 0x3c1   :  { %v1986_v10 = vmul.f32 0.01831564, %v1970_v37  ;;  %v1989_v61 = vmul.f32 0.01831564, %v1973_v35  ;;  %v1860_v36 = vadd.f32 %v1859_v34, %v1858_v57  ;;  %v1876_v29 = vadd.f32 %v1875_v19, %v1874_v2 }
 0x3c2   :  { %v1884_v7 = vrot.slane %v1883_v22, 2  ;;  %v2007_v9 = vsel %vm831_vm1, %v1984_v5, 0.0  ;;  %v2923_v50 = vpop.eup %2922  ;;  %v1868_v23 = vrot.slane %v1867_v43, 1  ;;  %v1988_v20 = vmul.f32 0.01831564, %v1972_v26 }
 0x3c3   :  { %v2009_v31 = vadd.f32 %v2008_v40, %v2007_v9  ;;  %v2017_v18 = vsel %vm831_vm1, %v1987_v12, 0.0  ;;  %v3865_v8 = vmul.f32 %v3354_v51, %v1612_v25  ;;  %v3868_v60 = vmul.f32 %v3354_v51, %v1614_v15 }
 0x3c4   :  { %2926 = vlog2.f32 %v1749_v49  ;;  %v2001_v46 = vrot.slane %v2000_v33, 4  ;;  %v3871_v42 = vadd.f32 %v1626_v14, %v3826_v32  ;;  %v2016_v47 = vsel %vm831_vm1, %v1986_v10, 0.0 }
 0x3c5   :  { %2928 = vlog2.f32 %v1750_v0  ;;  %v2026_v30 = vsel %vm831_vm1, %v1989_v61, 0.0  ;;  %v3875_v2 = vmul.f32 0.6931472, %v2923_v50  ;;  %v1877_v24 = vrot.slane %v1876_v29, 1 }
 0x3c6   :  { %v2925_v57 = vpop.eup %2924  ;;  %v1885_v48 = vadd.f32 %v1884_v7, %v1883_v22  ;;  %v2018_v25 = vadd.f32 %v2017_v18, %v2016_v47  ;;  %v1869_v17 = vadd.f32 %v1868_v23, %v1867_v43  ;;  %v1925_v3 = vmax.f32 %v1860_v36, 1e-10 }
 0x3c7   :  { %v2010_v15 = vrot.slane %v2009_v31, 4  ;;  %v2025_v53 = vsel %vm831_vm1, %v1988_v20, 0.0  ;;  %v2002_v41 = vadd.f32 %v2001_v46, %v2000_v33  ;;  %v2112_v32 = vmul.f32 %v4433_v58, %v1982_v59 }
 0x3c8   :  { %v2027_v38 = vadd.f32 %v2026_v30, %v2025_v53  ;;  %v2113_v37 = vmul.f32 %v4432_v11, %v3845_v62  ;;  %v1758_v35 = vmul.f32 0.6931472, %v2925_v57  ;;  %v2114_v4 = vmul.f32 %v4436_v63, %v1984_v5 }
 0x3c9   :  { %v2115_v34 = vmul.f32 %v4435_v45, %v1985_v44  ;;  %v2117_v19 = vmul.f32 %v4438_v13, %v1987_v12  ;;  %v1878_v22 = vadd.f32 %v1877_v24, %v1876_v29  ;;  %v1886_v43 = vrot.slane %v1885_v48, 1 }
 0x3ca   :  { %v2019_v26 = vrot.slane %v2018_v25, 4  ;;  %v2116_v16 = vmul.f32 %v4439_v55, %v1986_v10  ;;  %v1926_v49 = vmax.f32 %v1869_v17, 1e-10  ;;  %v2011_v33 = vadd.f32 %v2010_v15, %v2009_v31 }
 0x3cb   :  { %v2118_v40 = vmul.f32 %v4442_v21, %v1988_v20  ;;  %v2119_v59 = vmul.f32 %v4441_v1, %v1989_v61  ;;  %v2003_v14 = vrot.slane %v2002_v41, 2  ;;  %v2028_v62 = vrot.slane %v2027_v38, 4 }
 0x3cc   :  { %v3887_v0 = vmul.f32 0.00033546262, %v2112_v32  ;;  %v3889_v5 = vmul.f32 0.00033546262, %v2113_v37  ;;  %2930 = vlog2.f32 %v1925_v3  ;;  %v3891_v44 = vmul.f32 0.00033546262, %v2114_v4 }
 0x3cd   :  { %v3893_v12 = vmul.f32 0.00033546262, %v2115_v34  ;;  %v3895_v36 = vmul.f32 0.00033546262, %v2117_v19  ;;  %v1887_v29 = vadd.f32 %v1886_v43, %v1885_v48  ;;  %v1927_v7 = vmax.f32 %v1878_v22, 1e-10 }
 0x3ce   :  { %v2927_v10 = vpop.eup %2926  ;;  %v2020_v9 = vadd.f32 %v2019_v26, %v2018_v25  ;;  %v3897_v50 = vmul.f32 0.00033546262, %v2116_v16  ;;  %2932 = vlog2.f32 %v1926_v49  ;;  %v2012_v23 = vrot.slane %v2011_v33, 2 }
 0x3cf   :  { %v2929_v61 = vpop.eup %2928  ;;  %v3899_v20 = vmul.f32 0.00033546262, %v2118_v40  ;;  %v3901_v31 = vmul.f32 0.00033546262, %v2119_v59  ;;  %v2004_v18 = vadd.f32 %v2003_v14, %v2002_v41  ;;  %v2029_v46 = vadd.f32 %v2028_v62, %v2027_v38 }
 0x3d0   :  { %v2144_v47 = vsel %vm831_vm1, %v3887_v0, 0.0  ;;  %v2145_v30 = vsel %vm831_vm1, %v3889_v5, 0.0  ;;  %v2153_v24 = vsel %vm831_vm1, %v3891_v44, 0.0  ;;  %v2154_v48 = vsel %vm831_vm1, %v3893_v12, 0.0 }
 0x3d1   :  { %v2146_v57 = vadd.f32 %v2145_v30, %v2144_v47  ;;  %v2163_v25 = vsel %vm831_vm1, %v3895_v36, 0.0  ;;  %v1928_v17 = vmax.f32 %v1887_v29, 1e-10  ;;  %v2021_v3 = vrot.slane %v2020_v9, 2 }
 0x3d2   :  { %v2155_v15 = vadd.f32 %v2154_v48, %v2153_v24  ;;  %v2162_v53 = vsel %vm831_vm1, %v3897_v50, 0.0  ;;  %v2171_v32 = vsel %vm831_vm1, %v3899_v20, 0.0  ;;  %v2172_v37 = vsel %vm831_vm1, %v3901_v31, 0.0 }
 0x3d3   :  { %v2147_v41 = vrot.slane %v2146_v57, 4  ;;  %v2164_v38 = vadd.f32 %v2163_v25, %v2162_v53  ;;  %v1629_v4 = vmul.f32 %v3354_v51, %v3858_v52  ;;  %v1760_v34 = vmul.f32 0.6931472, %v2927_v10 }
 0x3d4   :  { %v1762_v19 = vmul.f32 0.6931472, %v2929_v61  ;;  %v2173_v22 = vadd.f32 %v2172_v37, %v2171_v32  ;;  %2934 = vlog2.f32 %v1927_v7  ;;  %v2005_v43 = vrot.slane %v2004_v18, 1  ;;  %v4443_v32 = vld [vmem:[#allocation45_spill] sm:$0xff] }
 0x3d5   :  { %v2013_v26 = vadd.f32 %v2012_v23, %v2011_v33  ;;  %v2030_v16 = vrot.slane %v2029_v46, 2  ;;  %v1635_v49 = vadd.f32 %v3865_v8, %v3832_v56  ;;  %v1772_v40 = vmul.f32 %v3839_v6, %v3875_v2 }
 0x3d6   :  { %v1773_v59 = vmul.f32 %v3839_v6, %v1758_v35  ;;  %v2156_v14 = vrot.slane %v2155_v15, 4  ;;  %v2931_v62 = vpop.eup %2930  ;;  %2936 = vlog2.f32 %v1928_v17  ;;  %v2022_v52 = vadd.f32 %v2021_v3, %v2020_v9 }
 0x3d7   :  { %v2148_v10 = vadd.f32 %v2147_v41, %v2146_v57  ;;  %v2165_v29 = vrot.slane %v2164_v38, 4  ;;  %v1636_v33 = vadd.f32 %v3868_v60, %v3834_v39  ;;  %v1774_v7 = vmul.f32 %v3839_v6, %v1760_v34 }
 0x3d8   :  { %v1775_v56 = vmul.f32 %v3839_v6, %v1762_v19  ;;  %v2174_v8 = vrot.slane %v2173_v22, 4  ;;  %v2933_v61 = vpop.eup %2932  ;;  %v1637_v2 = vadd.f32 %v1629_v4, %v3836_v28  ;;  %v2006_v35 = vadd.f32 %v2005_v43, %v2004_v18 }
 0x3d9   :  { %v2014_v23 = vrot.slane %v2013_v26, 1  ;;  %v2031_v47 = vadd.f32 %v2030_v16, %v2029_v46  ;;  %v1780_v30 = vadd.f32 %v1772_v40, %v3871_v42  ;;  %v1781_v24 = vadd.f32 %v1773_v59, %v1635_v49 }
 0x3da   :  { %v1934_v9 = vmul.f32 0.6931472, %v2931_v62  ;;  %v2157_v57 = vadd.f32 %v2156_v14, %v2155_v15  ;;  %v2023_v48 = vrot.slane %v2022_v52, 1  ;;  %v2149_v25 = vrot.slane %v2148_v10, 2 }
 0x3db   :  { %v2166_v39 = vadd.f32 %v2165_v29, %v2164_v38  ;;  %v2259_v60 = vmul.f32 %v4432_v11, %v3889_v5  ;;  %v1782_v17 = vadd.f32 %v1774_v7, %v1636_v33  ;;  %v3936_v3 = vadd.f32 %v1775_v56, %v1637_v2 }
 0x3dc   :  { %v1936_v53 = vmul.f32 0.6931472, %v2933_v61  ;;  %v2175_v28 = vadd.f32 %v2174_v8, %v2173_v22  ;;  %v2015_v18 = vadd.f32 %v2014_v23, %v2013_v26  ;;  %v2032_v41 = vrot.slane %v2031_v47, 1 }
 0x3dd   :  { %v2071_v46 = vmax.f32 %v2006_v35, 1e-10  ;;  %v2258_v42 = vmul.f32 %v4433_v58, %v3887_v0  ;;  %v1950_v37 = vmul.f32 %v4443_v32, %v1934_v9  ;;  %v3942_v15 = vstv %s3926_s10 }
 0x3de   :  { %v2158_v4 = vrot.slane %v2157_v57, 2  ;;  %v2261_v38 = vmul.f32 %v4435_v45, %v3893_v12  ;;  %v2935_v5 = vpop.eup %2934  ;;  %v2024_v34 = vadd.f32 %v2023_v48, %v2022_v52  ;;  %v2150_v19 = vadd.f32 %v2149_v25, %v2148_v10 }
 0x3df   :  { %v2167_v43 = vrot.slane %v2166_v39, 2  ;;  %v2275_v16 = vmul.f32 6.1442124e-06, %v2259_v60  ;;  %v1951_v22 = vmul.f32 %v4443_v32, %v1936_v53  ;;  %v3947_v26 = vadd.f32 %v1950_v37, %v1780_v30 }
 0x3e0   :  { %v2176_v49 = vrot.slane %v2175_v28, 2  ;;  %v2260_v0 = vmul.f32 %v4436_v63, %v3891_v44  ;;  %v2937_v40 = vpop.eup %2936  ;;  %v2033_v59 = vadd.f32 %v2032_v41, %v2031_v47  ;;  %v2072_v14 = vmax.f32 %v2015_v18, 1e-10 }
 0x3e1   :  { %2938 = vlog2.f32 %v2071_v46  ;;  %v2274_v62 = vmul.f32 6.1442124e-06, %v2258_v42  ;;  %v1938_v29 = vmul.f32 0.6931472, %v2935_v5  ;;  %v2159_v12 = vadd.f32 %v2158_v4, %v2157_v57 }
 0x3e2   :  { %v2263_v52 = vmul.f32 %v4438_v13, %v3895_v36  ;;  %v2277_v10 = vmul.f32 6.1442124e-06, %v2261_v38  ;;  %v2073_v33 = vmax.f32 %v2024_v34, 1e-10  ;;  %v2151_v7 = vrot.slane %v2150_v19, 1 }
 0x3e3   :  { %v2168_v56 = vadd.f32 %v2167_v43, %v2166_v39  ;;  %v2291_v8 = vsel %vm831_vm1, %v2275_v16, 0.0  ;;  %v1940_v61 = vmul.f32 0.6931472, %v2937_v40  ;;  %v2177_v2 = vadd.f32 %v2176_v49, %v2175_v28 }
 0x3e4   :  { %v2262_v44 = vmul.f32 %v4439_v55, %v3897_v50  ;;  %v2276_v35 = vmul.f32 6.1442124e-06, %v2260_v0  ;;  %v2074_v23 = vmax.f32 %v2033_v59, 1e-10  ;;  %2940 = vlog2.f32 %v2072_v14 }
 0x3e5   :  { %v2265_v47 = vmul.f32 %v4441_v1, %v3901_v31  ;;  %v2290_v30 = vsel %vm831_vm1, %v2274_v62, 0.0  ;;  %v2160_v36 = vrot.slane %v2159_v12, 1  ;;  %v2279_v9 = vmul.f32 6.1442124e-06, %v2263_v52 }
 0x3e6   :  { %v2292_v57 = vadd.f32 %v2291_v8, %v2290_v30  ;;  %v2300_v48 = vsel %vm831_vm1, %v2277_v10, 0.0  ;;  %2942 = vlog2.f32 %v2073_v33  ;;  %v2152_v25 = vadd.f32 %v2151_v7, %v2150_v19 }
 0x3e7   :  { %v2169_v39 = vrot.slane %v2168_v56, 1  ;;  %v2264_v60 = vmul.f32 %v4442_v21, %v3899_v20  ;;  %v1952_v50 = vmul.f32 %v4443_v32, %v1938_v29  ;;  %v2178_v53 = vrot.slane %v2177_v2, 1 }
 0x3e8   :  { %v2278_v28 = vmul.f32 6.1442124e-06, %v2262_v44  ;;  %v2299_v18 = vsel %vm831_vm1, %v2276_v35, 0.0  ;;  %v1953_v31 = vmul.f32 %v4443_v32, %v1940_v61  ;;  %v3965_v41 = vadd.f32 %v1951_v22, %v1781_v24 }
 0x3e9   :  { %v2281_v46 = vmul.f32 6.1442124e-06, %v2265_v47  ;;  %v2301_v42 = vadd.f32 %v2300_v48, %v2299_v18  ;;  %v3967_v37 = vadd.f32 %v1952_v50, %v1782_v17  ;;  %v2161_v4 = vadd.f32 %v2160_v36, %v2159_v12 }
 0x3ea   :  { %v2293_v38 = vrot.slane %v2292_v57, 4  ;;  %v2309_v5 = vsel %vm831_vm1, %v2279_v9, 0.0  ;;  %2944 = vlog2.f32 %v2074_v23  ;;  %v2170_v20 = vadd.f32 %v2169_v39, %v2168_v56 }
 0x3eb   :  { %v2939_v34 = vpop.eup %2938  ;;  %v2217_v19 = vmax.f32 %v2152_v25, 1e-10  ;;  %v2280_v43 = vmul.f32 6.1442124e-06, %v2264_v60  ;;  %v3971_v49 = vadd.f32 %v1953_v31, %v3936_v3  ;;  %v2179_v0 = vadd.f32 %v2178_v53, %v2177_v2 }
 0x3ec   :  { %v2308_v24 = vsel %vm831_vm1, %v2278_v28, 0.0  ;;  %v2405_v22 = vmul.f32 %v4432_v11, %v2275_v16  ;;  %v2302_v40 = vrot.slane %v2301_v42, 4  ;;  %v2318_v59 = vsel %vm831_vm1, %v2281_v46, 0.0 }
 0x3ed   :  { %v2310_v17 = vadd.f32 %v2309_v5, %v2308_v24  ;;  %v2407_v14 = vmul.f32 %v4435_v45, %v2277_v10  ;;  %v2080_v29 = vmul.f32 0.6931472, %v2939_v34  ;;  %v2218_v12 = vmax.f32 %v2161_v4, 1e-10 }
 0x3ee   :  { %v2294_v52 = vadd.f32 %v2293_v38, %v2292_v57  ;;  %v2404_v33 = vmul.f32 %v4433_v58, %v2274_v62  ;;  %v2941_v7 = vpop.eup %2940  ;;  %v2219_v3 = vmax.f32 %v2170_v20, 1e-10  ;;  %2946 = vlog2.f32 %v2217_v19 }
 0x3ef   :  { %v2317_v56 = vsel %vm831_vm1, %v2280_v43, 0.0  ;;  %v2406_v11 = vmul.f32 %v4436_v63, %v2276_v35  ;;  %v2220_v16 = vmax.f32 %v2179_v0, 1e-10  ;;  %v2409_v61 = vmul.f32 %v4438_v13, %v2279_v9 }
 0x3f0   :  { %v2319_v8 = vadd.f32 %v2318_v59, %v2317_v56  ;;  %v2421_v2 = vmul.f32 1.12535176e-07, %v2405_v22  ;;  %v2943_v45 = vpop.eup %2942  ;;  %v2303_v10 = vadd.f32 %v2302_v40, %v2301_v42  ;;  %v2311_v44 = vrot.slane %v2310_v17, 4 }
 0x3f1   :  { %v2411_v23 = vmul.f32 %v4441_v1, %v2281_v46  ;;  %v2423_v58 = vmul.f32 1.12535176e-07, %v2407_v14  ;;  %2948 = vlog2.f32 %v2218_v12  ;;  %v2295_v62 = vrot.slane %v2294_v52, 2  ;;  %v4444_v12 = vld [vmem:[#allocation36_spill] sm:$0xff] }
 0x3f2   :  { %v2408_v47 = vmul.f32 %v4439_v55, %v2278_v28  ;;  %v2420_v30 = vmul.f32 1.12535176e-07, %v2404_v33  ;;  %v2082_v36 = vmul.f32 0.6931472, %v2941_v7  ;;  %2950 = vlog2.f32 %v2219_v3 }
 0x3f3   :  { %v2410_v63 = vmul.f32 %v4442_v21, %v2280_v43  ;;  %v2422_v35 = vmul.f32 1.12535176e-07, %v2406_v11  ;;  %v2084_v57 = vmul.f32 0.6931472, %v2943_v45  ;;  %v2320_v13 = vrot.slane %v2319_v8, 4 }
 0x3f4   :  { %v2425_v9 = vmul.f32 1.12535176e-07, %v2409_v61  ;;  %v2437_v48 = vsel %vm831_vm1, %v2421_v2, 0.0  ;;  %v2945_v25 = vpop.eup %2944  ;;  %v2304_v39 = vrot.slane %v2303_v10, 2  ;;  %v2312_v1 = vadd.f32 %v2311_v44, %v2310_v17 }
 0x3f5   :  { %v2427_v60 = vmul.f32 1.12535176e-07, %v2411_v23  ;;  %v2446_v50 = vsel %vm831_vm1, %v2423_v58, 0.0  ;;  %2952 = vlog2.f32 %v2220_v16  ;;  %v2296_v55 = vadd.f32 %v2295_v62, %v2294_v52  ;;  %v4445_v52 = vld [vmem:[#allocation26_spill] sm:$0xff]  ;;  %v4446_v62 = vld [vmem:[#allocation39_spill] sm:$0xff] }
 0x3f6   :  { %v2424_v53 = vmul.f32 1.12535176e-07, %v2408_v47  ;;  %v2436_v28 = vsel %vm831_vm1, %v2420_v30, 0.0  ;;  %v3990_v18 = vstv %s3978_s11  ;;  %v2426_v21 = vmul.f32 1.12535176e-07, %v2410_v63 }
 0x3f7   :  { %v2438_v31 = vadd.f32 %v2437_v48, %v2436_v28  ;;  %v2445_v46 = vsel %vm831_vm1, %v2422_v35, 0.0  ;;  %v2086_v42 = vmul.f32 0.6931472, %v2945_v25  ;;  %v2096_v4 = vmul.f32 %v3942_v15, %v2080_v29 }
 0x3f8   :  { %v2447_v38 = vadd.f32 %v2446_v50, %v2445_v46  ;;  %v2455_v5 = vsel %vm831_vm1, %v2425_v9, 0.0  ;;  %v2947_v34 = vpop.eup %2946  ;;  %v2305_v20 = vadd.f32 %v2304_v39, %v2303_v10  ;;  %v2313_v19 = vrot.slane %v2312_v1, 2 }
 0x3f9   :  { %v2321_v43 = vadd.f32 %v2320_v13, %v2319_v8  ;;  %v2464_v0 = vsel %vm831_vm1, %v2427_v60, 0.0  ;;  %v2097_v24 = vmul.f32 %v3942_v15, %v2082_v36  ;;  %v2098_v22 = vmul.f32 %v3942_v15, %v2084_v57 }
 0x3fa   :  { %v2297_v40 = vrot.slane %v2296_v55, 1  ;;  %v2454_v17 = vsel %vm831_vm1, %v2424_v53, 0.0  ;;  %v2439_v59 = vrot.slane %v2438_v31, 4  ;;  %v2463_v29 = vsel %vm831_vm1, %v2426_v21, 0.0 }
 0x3fb   :  { %v2456_v14 = vadd.f32 %v2455_v5, %v2454_v17  ;;  %v823_v33 = vmul.f32 %v4445_v52, %v4444_v12  ;;  %v2949_v7 = vpop.eup %2948  ;;  %v2099_v3 = vmul.f32 %v3942_v15, %v2086_v42  ;;  %v2104_v56 = vadd.f32 %v2096_v4, %v3947_v26 }
 0x3fc   :  { %v2448_v11 = vrot.slane %v2447_v38, 4  ;;  %v2465_v16 = vadd.f32 %v2464_v0, %v2463_v29  ;;  %v2951_v8 = vpop.eup %2950  ;;  %v4007_v61 = vadd.f32 %v2097_v24, %v3965_v41  ;;  %v2306_v2 = vrot.slane %v2305_v20, 1  ;;  %v4451_v29 = vld [vmem:[#allocation32_spill] sm:$0xff] }
 0x3fd   :  { %v2314_v45 = vadd.f32 %v2313_v19, %v2312_v1  ;;  %v2322_v10 = vrot.slane %v2321_v43, 2  ;;  %v4010_v44 = vadd.f32 %v2098_v22, %v3967_v37  ;;  %v4013_v23 = vadd.f32 %v2099_v3, %v3971_v49  ;;  %v4447_v1 = vld [vmem:[#allocation52_spill] sm:$0xff]  ;;  %v4449_v22 = vld [vmem:[#allocation27_spill] sm:$0xff] }
 0x3fe   :  { %v2298_v58 = vadd.f32 %v2297_v40, %v2296_v55  ;;  %v827_v26 = vmul.f32 %v4446_v62, %v4444_v12  ;;  %v2226_v47 = vmul.f32 0.6931472, %v2947_v34  ;;  %v2440_v30 = vadd.f32 %v2439_v59, %v2438_v31  ;;  %v4448_v55 = vld [vmem:[#allocation60_spill] sm:$0xff] }
 0x3ff   :  { %v2457_v36 = vrot.slane %v2456_v14, 4  ;;  %v868_v41 = vsel %vm831_vm1, %v823_v33, 0.0  ;;  %v2953_v63 = vpop.eup %2952  ;;  %v2228_v35 = vmul.f32 0.6931472, %v2949_v7  ;;  %v2230_v57 = vmul.f32 0.6931472, %v2951_v8 }
 0x400   :  { %v2449_v13 = vadd.f32 %v2448_v11, %v2447_v38  ;;  %v2466_v9 = vrot.slane %v2465_v16, 4  ;;  %v2307_v37 = vadd.f32 %v2306_v2, %v2305_v20  ;;  %v2315_v48 = vrot.slane %v2314_v45, 1  ;;  %v4452_v33 = vld [vmem:[#allocation40_spill] sm:$0xff]  ;;  %v4453_v11 = vld [vmem:[#allocation54_spill] sm:$0xff] }
 0x401   :  { %v2323_v25 = vadd.f32 %v2322_v10, %v2321_v43  ;;  %v4019_v39 = vstv %s3995_s12  ;;  %v2363_v49 = vmax.f32 %v2298_v58, 1e-10  ;;  %v870_v60 = vadd.f32 %v4447_v1, %v868_v41  ;;  %v4454_v58 = vld [vmem:[#allocation25_spill] sm:$0xff] }
 0x402   :  { %v886_v50 = vsel %vm831_vm1, %v827_v26, 0.0  ;;  %v887_v53 = vsel %vm831_vm1, %v4448_v55, 0.0  ;;  %v2232_v28 = vmul.f32 0.6931472, %v2953_v63  ;;  %v2242_v21 = vmul.f32 %v3990_v18, %v2226_v47 }
 0x403   :  { %v2441_v31 = vrot.slane %v2440_v30, 2  ;;  %v2458_v46 = vadd.f32 %v2457_v36, %v2456_v14  ;;  %v2243_v42 = vmul.f32 %v3990_v18, %v2228_v35  ;;  %v4028_v4 = vmul.f32 %v3990_v18, %v2230_v57  ;;  %v4450_v14 = vld [vmem:[#allocation42_spill] sm:$0xff] }
 0x404   :  { %v2450_v38 = vrot.slane %v2449_v13, 2  ;;  %v2467_v5 = vadd.f32 %v2466_v9, %v2465_v16  ;;  %v4030_v34 = vadd.f32 %v2242_v21, %v2104_v56  ;;  %v4032_v20 = vadd.f32 %v2315_v48, %v2314_v45  ;;  %v4456_v35 = vld [vmem:[#allocation38_spill] sm:$0xff] }
 0x405   :  { %v2324_v19 = vrot.slane %v2323_v25, 1  ;;  %v888_v43 = vadd.f32 %v887_v53, %v886_v50  ;;  %v2364_v0 = vmax.f32 %v2307_v37, 1e-10  ;;  %2954 = vlog2.f32 %v2363_v49 }
 0x406   :  { %v871_v24 = vrot.slane %v870_v60, 4  ;;  %v4036_v40 = vmul.f32 %v4449_v22, %v4444_v12  ;;  %v2442_v17 = vadd.f32 %v2441_v31, %v2440_v30  ;;  %v2459_v59 = vrot.slane %v2458_v46, 2  ;;  %v4455_v30 = vld [vmem:[#allocation31_spill] sm:$0xff] }
 0x407   :  { %v4040_v52 = vmul.f32 %v4451_v29, %v4450_v14  ;;  %v4044_v7 = vmul.f32 %v4452_v33, %v4444_v12  ;;  %v2451_v3 = vadd.f32 %v2450_v38, %v2449_v13  ;;  %v2468_v56 = vrot.slane %v2467_v5, 2  ;;  %v4457_v13 = vld [vmem:[#allocation49_spill] sm:$0xff] }
 0x408   :  { %v4048_v16 = vmul.f32 %v4453_v11, %v4450_v14  ;;  %v1078_v8 = vsel %vm831_vm1, %v4036_v40, 0.0  ;;  %v889_v2 = vrot.slane %v888_v43, 4  ;;  %v1212_v12 = vmul.f32 %v4454_v58, %v4036_v40 }
 0x409   :  { %v1079_v45 = vsel %vm831_vm1, %v4040_v52, 0.0  ;;  %v1096_v10 = vsel %vm831_vm1, %v4044_v7, 0.0  ;;  %v872_v62 = vadd.f32 %v871_v24, %v870_v60  ;;  %v1213_v36 = vmul.f32 %v4455_v30, %v4040_v52 }
 0x40a   :  { %v1080_v26 = vadd.f32 %v1079_v45, %v1078_v8  ;;  %v1097_v47 = vsel %vm831_vm1, %v4048_v16, 0.0  ;;  %v2443_v41 = vrot.slane %v2442_v17, 1  ;;  %v1216_v57 = vmul.f32 %v4456_v35, %v4044_v7 }
 0x40b   :  { %v1098_v63 = vadd.f32 %v1097_v47, %v1096_v10  ;;  %v1217_v9 = vmul.f32 %v4457_v13, %v4048_v16  ;;  %v2460_v37 = vadd.f32 %v2459_v59, %v2458_v46  ;;  %v1228_v49 = vmul.f32 0.01831564, %v1212_v12 }
 0x40c   :  { %v1081_v48 = vrot.slane %v1080_v26, 4  ;;  %v1229_v1 = vmul.f32 0.01831564, %v1213_v36  ;;  %v890_v60 = vadd.f32 %v889_v2, %v888_v43  ;;  %v1232_v55 = vmul.f32 0.01831564, %v1216_v57 }
 0x40d   :  { %v1099_v50 = vrot.slane %v1098_v63, 4  ;;  %v1233_v53 = vmul.f32 0.01831564, %v1217_v9  ;;  %v873_v21 = vrot.slane %v872_v62, 2  ;;  %v1272_v38 = vsel %vm831_vm1, %v1228_v49, 0.0 }
 0x40e   :  { %v1082_v31 = vadd.f32 %v1081_v48, %v1080_v26  ;;  %v1273_v24 = vsel %vm831_vm1, %v1229_v1, 0.0  ;;  %v2452_v22 = vrot.slane %v2451_v3, 1  ;;  %v2469_v14 = vadd.f32 %v2468_v56, %v2467_v5 }
 0x40f   :  { %v1274_v29 = vadd.f32 %v1273_v24, %v1272_v38  ;;  %v1290_v33 = vsel %vm831_vm1, %v1232_v55, 0.0  ;;  %v2955_v11 = vpop.eup %2954  ;;  %v2325_v46 = vadd.f32 %v2324_v19, %v2323_v25  ;;  %2956 = vlog2.f32 %v2364_v0  ;;  %v686_v19 = vpop.trf.xlu0 }
 0x410   :  { %v1100_v59 = vadd.f32 %v1099_v50, %v1098_v63  ;;  %v1291_v43 = vsel %vm831_vm1, %v1233_v53, 0.0  ;;  %v2245_v8 = vmul.f32 %v3990_v18, %v2232_v28  ;;  %v2444_v2 = vadd.f32 %v2443_v41, %v2442_v17 }
 0x411   :  { %v2461_v45 = vrot.slane %v2460_v37, 1  ;;  %v891_v10 = vrot.slane %v890_v60, 2  ;;  %v874_v12 = vadd.f32 %v873_v21, %v872_v62  ;;  %v1083_v26 = vrot.slane %v1082_v31, 2 }
 0x412   :  { %v1275_v47 = vrot.slane %v1274_v29, 4  ;;  %v1292_v36 = vadd.f32 %v1291_v43, %v1290_v33  ;;  %v4072_v5 = vadd.f32 %v2243_v42, %v4007_v61  ;;  %v2365_v56 = vmax.f32 %v4032_v20, 1e-10 }
 0x413   :  { %v2453_v57 = vadd.f32 %v2452_v22, %v2451_v3  ;;  %v2470_v25 = vrot.slane %v2469_v14, 1  ;;  %v4077_v0 = vadd.f32 %v4028_v4, %v4010_v44  ;;  %v4080_v28 = vadd.f32 %v2245_v8, %v4013_v23 }
 0x414   :  { %v2366_v17 = vmax.f32 %v2325_v46, 1e-10  ;;  %v1101_v62 = vrot.slane %v1100_v59, 2  ;;  %v2462_v41 = vadd.f32 %v2461_v45, %v2460_v37  ;;  %v2509_v63 = vmax.f32 %v2444_v2, 1e-10 }
 0x415   :  { %v892_v9 = vadd.f32 %v891_v10, %v890_v60  ;;  %v1293_v48 = vrot.slane %v1292_v36, 4  ;;  %v4082_v61 = vmul.f32 0.01, %v686_v19  ;;  %v875_v42 = vrot.slane %v874_v12, 1 }
 0x416   :  { %v1084_v20 = vadd.f32 %v1083_v26, %v1082_v31  ;;  %v1276_v3 = vadd.f32 %v1275_v47, %v1274_v29  ;;  %2958 = vlog2.f32 %v2365_v56  ;;  %v2471_v50 = vadd.f32 %v2470_v25, %v2469_v14 }
 0x417   :  { %v2510_v21 = vmax.f32 %v2453_v57, 1e-10  ;;  %v1294_v38 = vadd.f32 %v1293_v48, %v1292_v36  ;;  %2960 = vlog2.f32 %v2366_v17  ;;  %v2552_v44 = vrot.slane %v4082_v61, 1 }
 0x418   :  { %v1102_v23 = vadd.f32 %v1101_v62, %v1100_v59  ;;  %v1358_v4 = vmul.f32 %v4454_v58, %v1228_v49  ;;  %v4086_v24 = vmul.f32 0.6931472, %v2955_v11  ;;  %v2511_v37 = vmax.f32 %v2462_v41, 1e-10 }
 0x419   :  { %2962 = vlog2.f32 %v2509_v63  ;;  %v893_v60 = vrot.slane %v892_v9, 1  ;;  %v2957_v22 = vpop.eup %2956  ;;  %v876_v33 = vadd.f32 %v875_v42, %v874_v12  ;;  %v1085_v46 = vrot.slane %v1084_v20, 1 }
 0x41a   :  { %v1277_v31 = vrot.slane %v1276_v3, 2  ;;  %v1359_v29 = vmul.f32 %v4455_v30, %v1229_v1  ;;  %v2512_v14 = vmax.f32 %v2471_v50, 1e-10  ;;  %2964 = vlog2.f32 %v2510_v21 }
 0x41b   :  { %v1295_v43 = vrot.slane %v1294_v38, 2  ;;  %v1362_v59 = vmul.f32 %v4456_v35, %v1232_v55  ;;  %v1103_v8 = vrot.slane %v1102_v23, 1  ;;  %v1363_v49 = vmul.f32 %v4457_v13, %v1233_v53 }
 0x41c   :  { %v1374_v11 = vmul.f32 0.00033546262, %v1358_v4  ;;  %v1375_v2 = vmul.f32 0.00033546262, %v1359_v29  ;;  %v2374_v45 = vmul.f32 0.6931472, %v2957_v22  ;;  %2966 = vlog2.f32 %v2511_v37 }
 0x41d   :  { %v894_v10 = vadd.f32 %v893_v60, %v892_v9  ;;  %v1378_v12 = vmul.f32 0.00033546262, %v1362_v59  ;;  %v909_v26 = vmax.f32 %v876_v33, 1e-10  ;;  %v1086_v47 = vadd.f32 %v1085_v46, %v1084_v20 }
 0x41e   :  { %v1278_v36 = vadd.f32 %v1277_v31, %v1276_v3  ;;  %v1379_v1 = vmul.f32 0.00033546262, %v1363_v49  ;;  %v1296_v56 = vadd.f32 %v1295_v43, %v1294_v38  ;;  %v1418_v57 = vsel %vm831_vm1, %v1374_v11, 0.0 }
 0x41f   :  { %v1419_v25 = vsel %vm831_vm1, %v1375_v2, 0.0  ;;  %v1504_v55 = vmul.f32 %v4454_v58, %v1374_v11  ;;  %2968 = vlog2.f32 %v2512_v14  ;;  %v1104_v19 = vadd.f32 %v1103_v8, %v1102_v23 }
 0x420   :  { %v1436_v53 = vsel %vm831_vm1, %v1378_v12, 0.0  ;;  %v1437_v17 = vsel %vm831_vm1, %v1379_v1, 0.0  ;;  %v2959_v62 = vpop.eup %2958  ;;  %v911_v41 = vmax.f32 %v894_v10, 1e-10  ;;  %v1420_v63 = vadd.f32 %v1419_v25, %v1418_v57 }
 0x421   :  { %v1505_v9 = vmul.f32 %v4455_v30, %v1375_v2  ;;  %v1508_v48 = vmul.f32 %v4456_v35, %v1378_v12  ;;  %v2961_v42 = vpop.eup %2960  ;;  %2970 = vlog2.f32 %v909_v26  ;;  %v1119_v20 = vmax.f32 %v1086_v47, 1e-10 }
 0x422   :  { %v1279_v3 = vrot.slane %v1278_v36, 1  ;;  %v1509_v50 = vmul.f32 %v4457_v13, %v1379_v1  ;;  %v1297_v38 = vrot.slane %v1296_v56, 1  ;;  %v1438_v23 = vadd.f32 %v1437_v17, %v1436_v53 }
 0x423   :  { %v2963_v21 = vpop.eup %2962  ;;  %v1520_v4 = vmul.f32 6.1442124e-06, %v1504_v55  ;;  %v1521_v37 = vmul.f32 6.1442124e-06, %v1505_v9  ;;  %v4102_v60 = vstv %s4089_s13  ;;  %v1121_v22 = vmax.f32 %v1104_v19, 1e-10 }
 0x424   :  { %v1524_v33 = vmul.f32 6.1442124e-06, %v1508_v48  ;;  %v1525_v46 = vmul.f32 6.1442124e-06, %v1509_v50  ;;  %v2965_v31 = vpop.eup %2964  ;;  %v2376_v29 = vmul.f32 0.6931472, %v2959_v62  ;;  %2972 = vlog2.f32 %v911_v41 }
 0x425   :  { %v1421_v14 = vrot.slane %v1420_v63, 4  ;;  %v1565_v43 = vsel %vm831_vm1, %v1521_v37, 0.0  ;;  %v2378_v59 = vmul.f32 0.6931472, %v2961_v42  ;;  %2974 = vlog2.f32 %v1119_v20 }
 0x426   :  { %v1280_v8 = vadd.f32 %v1279_v3, %v1278_v36  ;;  %v1583_v49 = vsel %vm831_vm1, %v1525_v46, 0.0  ;;  %v2967_v11 = vpop.eup %2966  ;;  %v1298_v2 = vadd.f32 %v1297_v38, %v1296_v56  ;;  %v1439_v10 = vrot.slane %v1438_v23, 4 }
 0x427   :  { %v1564_v12 = vsel %vm831_vm1, %v1520_v4, 0.0  ;;  %v1651_v26 = vmul.f32 %v4455_v30, %v1521_v37  ;;  %v2388_v47 = vmul.f32 %v4019_v39, %v4086_v24  ;;  %2976 = vlog2.f32 %v1121_v22 }
 0x428   :  { %v1566_v1 = vadd.f32 %v1565_v43, %v1564_v12  ;;  %v1582_v57 = vsel %vm831_vm1, %v1524_v33, 0.0  ;;  %v2554_v25 = vrot.slane %v4082_v61, 3  ;;  %v1422_v55 = vadd.f32 %v1421_v14, %v1420_v63 }
 0x429   :  { %v1584_v36 = vadd.f32 %v1583_v49, %v1582_v57  ;;  %v1650_v19 = vmul.f32 %v4454_v58, %v1520_v4  ;;  %v2969_v53 = vpop.eup %2968  ;;  %v2389_v56 = vmul.f32 %v4019_v39, %v2374_v45  ;;  %v2390_v17 = vmul.f32 %v4019_v39, %v2376_v29  ;;  %v4458_v57 = vld [vmem:[#allocation15_spill] sm:$0xff] }
 0x42a   :  { %v4116_v30 = vadd.f32 %v2388_v47, %v4030_v34  ;;  %v1313_v62 = vmax.f32 %v1280_v8, 1e-10  ;;  %v2391_v24 = vmul.f32 %v4019_v39, %v2378_v59  ;;  %v1315_v41 = vmax.f32 %v1298_v2, 1e-10 }
 0x42b   :  { %v1440_v9 = vadd.f32 %v1439_v10, %v1438_v23  ;;  %v1667_v48 = vmul.f32 1.12535176e-07, %v1651_v26  ;;  %v2971_v42 = vpop.eup %2970  ;;  %v2397_v63 = vadd.f32 %v2389_v56, %v4072_v5  ;;  %v2518_v20 = vmul.f32 0.6931472, %v2963_v21 }
 0x42c   :  { %v2520_v3 = vmul.f32 0.6931472, %v2965_v31  ;;  %v1567_v58 = vrot.slane %v1566_v1, 4  ;;  %v4121_v50 = vadd.f32 %v2390_v17, %v4077_v0  ;;  %v1423_v45 = vrot.slane %v1422_v55, 2 }
 0x42d   :  { %v1585_v38 = vrot.slane %v1584_v36, 4  ;;  %v1666_v4 = vmul.f32 1.12535176e-07, %v1650_v19  ;;  %v4124_v34 = vadd.f32 %v2391_v24, %v4080_v28  ;;  %v2522_v37 = vmul.f32 0.6931472, %v2967_v11 }
 0x42e   :  { %v2524_v22 = vmul.f32 0.6931472, %v2969_v53  ;;  %2978 = vlog2.f32 %v1313_v62  ;;  %v2973_v23 = vpop.eup %2972  ;;  %v1441_v29 = vrot.slane %v1440_v9, 2  ;;  %v1655_v5 = vmul.f32 %v4457_v13, %v1525_v46  ;;  %v4460_v53 = vld [vmem:[#allocation33_spill] sm:$0xff] }
 0x42f   :  { %2980 = vlog2.f32 %v1315_v41  ;;  %v1711_v21 = vsel %vm831_vm1, %v1667_v48, 0.0  ;;  %v2975_v31 = vpop.eup %2974  ;;  %v4129_v0 = vmul.f32 %v4102_v60, %v2518_v20  ;;  %v2535_v14 = vmul.f32 %v4102_v60, %v2520_v3  ;;  %v4462_v3 = vld [vmem:[#allocation59_spill] sm:$0xff] }
 0x430   :  { %v922_v43 = vmul.f32 0.6931472, %v2971_v42  ;;  %v1568_v59 = vadd.f32 %v1567_v58, %v1566_v1  ;;  %v1424_v28 = vadd.f32 %v1423_v45, %v1422_v55  ;;  %v1586_v8 = vadd.f32 %v1585_v38, %v1584_v36  ;;  %v4463_v58 = vld [vmem:[#allocation44_spill] sm:$0xff] }
 0x431   :  { %v1654_v49 = vmul.f32 %v4456_v35, %v1524_v33  ;;  %v1710_v11 = vsel %vm831_vm1, %v1666_v4, 0.0  ;;  %v2977_v2 = vpop.eup %2976  ;;  %v4135_v10 = vmul.f32 %v4102_v60, %v2522_v37  ;;  %v4138_v13 = vmul.f32 %v4102_v60, %v2524_v22  ;;  %v4459_v35 = vld [vmem:[#allocation43_spill] sm:$0xff]  ;;  %v4464_v4 = vld [vmem:[#allocation53_spill] sm:$0xff] }
 0x432   :  { %v926_v46 = vmul.f32 0.6931472, %v2973_v23  ;;  %v1712_v12 = vadd.f32 %v1711_v21, %v1710_v11  ;;  %v1132_v26 = vmul.f32 0.6931472, %v2975_v31  ;;  %v1442_v47 = vadd.f32 %v1441_v29, %v1440_v9  ;;  %v4461_v9 = vld [vmem:[#allocation28_spill] sm:$0xff]  ;;  %v4465_v29 = vld [vmem:[#allocation41_spill] sm:$0xff] }
 0x433   :  { %v1633_v1 = vmul.f32 %v3354_v51, %v4458_v57  ;;  %v1671_v55 = vmul.f32 1.12535176e-07, %v1655_v5  ;;  %v4142_v36 = vadd.f32 %v2535_v14, %v2397_v63  ;;  %v934_v33 = vmul.f32 %v4459_v35, %v922_v43 }
 0x434   :  { %v1569_v19 = vrot.slane %v1568_v59, 2  ;;  %v1845_v56 = vmul.f32 %v4460_v53, %v4040_v52  ;;  %v1136_v17 = vmul.f32 0.6931472, %v2977_v2  ;;  %v1425_v62 = vrot.slane %v1424_v28, 1 }
 0x435   :  { %v1587_v24 = vrot.slane %v1586_v8, 2  ;;  %v1670_v41 = vmul.f32 1.12535176e-07, %v1654_v49  ;;  %v936_v48 = vmul.f32 %v4459_v35, %v926_v46  ;;  %v1713_v42 = vrot.slane %v1712_v12, 4 }
 0x436   :  { %v1844_v20 = vmul.f32 %v4461_v9, %v4036_v40  ;;  %v1849_v63 = vmul.f32 %v4462_v3, %v4048_v16  ;;  %v1144_v45 = vmul.f32 %v4463_v58, %v1132_v26  ;;  %v1443_v38 = vrot.slane %v1442_v47, 1 }
 0x437   :  { %v4154_v37 = vadd.f32 %v1633_v1, %v4464_v4  ;;  %v1729_v52 = vsel %vm831_vm1, %v1671_v55, 0.0  ;;  %v1570_v23 = vadd.f32 %v1569_v19, %v1568_v59  ;;  %v1848_v5 = vmul.f32 %v4465_v29, %v4044_v7 }
 0x438   :  { %v2979_v22 = vpop.eup %2978  ;;  %v1888_v21 = vsel %vm831_vm1, %v1844_v20, 0.0  ;;  %v1889_v40 = vsel %vm831_vm1, %v1845_v56, 0.0  ;;  %v1146_v16 = vmul.f32 %v4463_v58, %v1136_v17  ;;  %v1426_v14 = vadd.f32 %v1425_v62, %v1424_v28 }
 0x439   :  { %v2981_v31 = vpop.eup %2980  ;;  %v1588_v43 = vadd.f32 %v1587_v24, %v1586_v8  ;;  %v1728_v49 = vsel %vm831_vm1, %v1670_v41, 0.0  ;;  %v1714_v11 = vadd.f32 %v1713_v42, %v1712_v12  ;;  %v1906_v46 = vsel %vm831_vm1, %v1848_v5, 0.0 }
 0x43a   :  { %v1730_v2 = vadd.f32 %v1729_v52, %v1728_v49  ;;  %v1907_v59 = vsel %vm831_vm1, %v1849_v63, 0.0  ;;  %v1326_v26 = vmul.f32 0.6931472, %v2979_v22  ;;  %v1890_v57 = vadd.f32 %v1889_v40, %v1888_v21 }
 0x43b   :  { %v1974_v7 = vmul.f32 %v4461_v9, %v1844_v20  ;;  %v1975_v1 = vmul.f32 %v4460_v53, %v1845_v56  ;;  %v1152_v55 = vadd.f32 %v1144_v45, %v934_v33  ;;  %v1330_v35 = vmul.f32 0.6931472, %v2981_v31  ;;  %v4466_v45 = vld [vmem:[#allocation17_spill] sm:$0xff] }
 0x43c   :  { %v1444_v19 = vadd.f32 %v1443_v38, %v1442_v47  ;;  %v1571_v17 = vrot.slane %v1570_v23, 1  ;;  %v1154_v28 = vadd.f32 %v1146_v16, %v936_v48  ;;  %v1908_v8 = vadd.f32 %v1907_v59, %v1906_v46 }
 0x43d   :  { %v1978_v62 = vmul.f32 %v4465_v29, %v1848_v5  ;;  %v1979_v12 = vmul.f32 %v4462_v3, %v1849_v63  ;;  %v1459_v24 = vmax.f32 %v1426_v14, 1e-10  ;;  %v1589_v41 = vrot.slane %v1588_v43, 1 }
 0x43e   :  { %v1715_v42 = vrot.slane %v1714_v11, 2  ;;  %v1731_v58 = vrot.slane %v1730_v2, 4  ;;  %v1338_v4 = vmul.f32 %v3344_v27, %v1326_v26  ;;  %v1891_v52 = vrot.slane %v1890_v57, 4 }
 0x43f   :  { %v1990_v20 = vmul.f32 0.01831564, %v1974_v7  ;;  %v1991_v22 = vmul.f32 0.01831564, %v1975_v1  ;;  %v1340_v33 = vmul.f32 %v3344_v27, %v1330_v35  ;;  %v1461_v56 = vmax.f32 %v1444_v19, 1e-10 }
 0x440   :  { %v1572_v47 = vadd.f32 %v1571_v17, %v1570_v23  ;;  %v1770_v48 = vmul.f32 0.6931472, %v4466_v45  ;;  %v1909_v38 = vrot.slane %v1908_v8, 4  ;;  %v1994_v21 = vmul.f32 0.01831564, %v1978_v62  ;;  %v4467_v23 = vld [vmem:[#allocation67_spill] sm:$0xff] }
 0x441   :  { %v1995_v5 = vmul.f32 0.01831564, %v1979_v12  ;;  %v2034_v63 = vsel %vm831_vm1, %v1990_v20, 0.0  ;;  %v1590_v40 = vadd.f32 %v1589_v41, %v1588_v43  ;;  %v1716_v31 = vadd.f32 %v1715_v42, %v1714_v11 }
 0x442   :  { %v1732_v16 = vadd.f32 %v1731_v58, %v1730_v2  ;;  %v2035_v14 = vsel %vm831_vm1, %v1991_v22, 0.0  ;;  %2982 = vlog2.f32 %v1459_v24  ;;  %v1892_v49 = vadd.f32 %v1891_v52, %v1890_v57  ;;  %v4468_v58 = vld [vmem:[#allocation66_spill] sm:$0xff] }
 0x443   :  { %v2036_v46 = vadd.f32 %v2035_v14, %v2034_v63  ;;  %v2052_v59 = vsel %vm831_vm1, %v1994_v21, 0.0  ;;  %2984 = vlog2.f32 %v1461_v56  ;;  %v1605_v27 = vmax.f32 %v1572_v47, 1e-10 }
 0x444   :  { %v1777_v26 = vmul.f32 %v3839_v6, %v4467_v23  ;;  %v2053_v7 = vsel %vm831_vm1, %v1995_v5, 0.0  ;;  %v1779_v1 = vmul.f32 %v3839_v6, %v1770_v48  ;;  %v1910_v35 = vadd.f32 %v1909_v38, %v1908_v8 }
 0x445   :  { %v2037_v43 = vrot.slane %v2036_v46, 4  ;;  %v2054_v11 = vadd.f32 %v2053_v7, %v2052_v59  ;;  %v4179_v2 = vadd.f32 %v1338_v4, %v1152_v55  ;;  %v1607_v19 = vmax.f32 %v1590_v40, 1e-10  ;;  %v4470_v7 = vld [vmem:[#allocation61_spill] sm:$0xff] }
 0x446   :  { %v1717_v17 = vrot.slane %v1716_v31, 1  ;;  %v1733_v57 = vrot.slane %v1732_v16, 2  ;;  %v1893_v62 = vrot.slane %v1892_v49, 2  ;;  %v2120_v41 = vmul.f32 %v4461_v9, %v1990_v20 }
 0x447   :  { %v2038_v12 = vadd.f32 %v2037_v43, %v2036_v46  ;;  %v2055_v24 = vrot.slane %v2054_v11, 4  ;;  %v4182_v42 = vadd.f32 %v1340_v33, %v1154_v28  ;;  %2986 = vlog2.f32 %v1605_v27  ;;  %v4469_v27 = vld [vmem:[#allocation55_spill] sm:$0xff] }
 0x448   :  { %v1785_v52 = vadd.f32 %v1777_v26, %v4468_v58  ;;  %v2121_v56 = vmul.f32 %v4460_v53, %v1991_v22  ;;  %v4187_v8 = vadd.f32 %v1779_v1, %v4154_v37  ;;  %v1911_v55 = vrot.slane %v1910_v35, 2 }
 0x449   :  { %v2056_v4 = vadd.f32 %v2055_v24, %v2054_v11  ;;  %v2124_v47 = vmul.f32 %v4465_v29, %v1994_v21  ;;  %v1734_v45 = vadd.f32 %v1733_v57, %v1732_v16  ;;  %v2125_v48 = vmul.f32 %v4462_v3, %v1995_v5 }
 0x44a   :  { %v2136_v38 = vmul.f32 0.00033546262, %v2120_v41  ;;  %v2137_v63 = vmul.f32 0.00033546262, %v2121_v56  ;;  %2988 = vlog2.f32 %v1607_v19  ;;  %v1718_v28 = vadd.f32 %v1717_v17, %v1716_v31 }
 0x44b   :  { %v1894_v20 = vadd.f32 %v1893_v62, %v1892_v49  ;;  %v2039_v33 = vrot.slane %v2038_v12, 2  ;;  %v2140_v40 = vmul.f32 0.00033546262, %v2124_v47  ;;  %v2141_v14 = vmul.f32 0.00033546262, %v2125_v48 }
 0x44c   :  { %v2180_v22 = vsel %vm831_vm1, %v2136_v38, 0.0  ;;  %v2181_v37 = vsel %vm831_vm1, %v2137_v63, 0.0  ;;  %v2983_v46 = vpop.eup %2982  ;;  %v1912_v59 = vadd.f32 %v1911_v55, %v1910_v35  ;;  %v4195_v21 = vmul.f32 %v4443_v32, %v4469_v27 }
 0x44d   :  { %v2057_v16 = vrot.slane %v2056_v4, 2  ;;  %v2182_v5 = vadd.f32 %v2181_v37, %v2180_v22  ;;  %v2985_v23 = vpop.eup %2984  ;;  %v1735_v26 = vrot.slane %v1734_v45, 1  ;;  %v4198_v31 = vadd.f32 %v4470_v7, %v1785_v52 }
 0x44e   :  { %v2198_v49 = vsel %vm831_vm1, %v2140_v40, 0.0  ;;  %v2199_v1 = vsel %vm831_vm1, %v2141_v14, 0.0  ;;  %v1751_v43 = vmax.f32 %v1718_v28, 1e-10  ;;  %v1895_v11 = vrot.slane %v1894_v20, 1 }
 0x44f   :  { %v2040_v19 = vadd.f32 %v2039_v33, %v2038_v12  ;;  %v2183_v17 = vrot.slane %v2182_v5, 4  ;;  %v1472_v35 = vmul.f32 0.6931472, %v2983_v46  ;;  %v2200_v57 = vadd.f32 %v2199_v1, %v2198_v49 }
 0x450   :  { %v2266_v62 = vmul.f32 %v4461_v9, %v2136_v38  ;;  %v2267_v24 = vmul.f32 %v4460_v53, %v2137_v63  ;;  %v1476_v41 = vmul.f32 0.6931472, %v2985_v23  ;;  %v1913_v58 = vrot.slane %v1912_v59, 1 }
 0x451   :  { %v2058_v56 = vadd.f32 %v2057_v16, %v2056_v4  ;;  %v2184_v55 = vadd.f32 %v2183_v17, %v2182_v5  ;;  %v2987_v52 = vpop.eup %2986  ;;  %v1736_v47 = vadd.f32 %v1735_v26, %v1734_v45  ;;  %v2201_v48 = vrot.slane %v2200_v57, 4 }
 0x452   :  { %v2270_v22 = vmul.f32 %v4465_v29, %v2140_v40  ;;  %v2271_v28 = vmul.f32 %v4462_v3, %v2141_v14  ;;  %2990 = vlog2.f32 %v1751_v43  ;;  %v1896_v12 = vadd.f32 %v1895_v11, %v1894_v20 }
 0x453   :  { %v2041_v33 = vrot.slane %v2040_v19, 1  ;;  %v2185_v37 = vrot.slane %v2184_v55, 2  ;;  %v1484_v46 = vmul.f32 %v3351_v54, %v1472_v35  ;;  %v2202_v38 = vadd.f32 %v2201_v48, %v2200_v57 }
 0x454   :  { %v2282_v27 = vmul.f32 6.1442124e-06, %v2266_v62  ;;  %v2283_v63 = vmul.f32 6.1442124e-06, %v2267_v24  ;;  %v4207_v23 = vpop.eup %2988  ;;  %v4210_v4 = vmul.f32 %v3351_v54, %v1476_v41  ;;  %v1914_v45 = vadd.f32 %v1913_v58, %v1912_v59 }
 0x455   :  { %v2059_v16 = vrot.slane %v2058_v56, 1  ;;  %v2286_v5 = vmul.f32 6.1442124e-06, %v2270_v22  ;;  %v1753_v40 = vmax.f32 %v1736_v47, 1e-10  ;;  %v2186_v26 = vadd.f32 %v2185_v37, %v2184_v55  ;;  %v4471_v47 = vld [vmem:[#allocation21_spill] sm:$0xff] }
 0x456   :  { %v2203_v14 = vrot.slane %v2202_v38, 2  ;;  %v2287_v7 = vmul.f32 6.1442124e-06, %v2271_v28  ;;  %v1929_v20 = vmax.f32 %v1896_v12, 1e-10  ;;  %v2042_v49 = vadd.f32 %v2041_v33, %v2040_v19 }
 0x457   :  { %v2326_v1 = vsel %vm831_vm1, %v2282_v27, 0.0  ;;  %v2327_v43 = vsel %vm831_vm1, %v2283_v63, 0.0  ;;  %v2344_v35 = vsel %vm831_vm1, %v2286_v5, 0.0  ;;  %v4217_v59 = vadd.f32 %v1484_v46, %v4179_v2 }
 0x458   :  { %v2204_v11 = vadd.f32 %v2203_v14, %v2202_v38  ;;  %v2328_v17 = vadd.f32 %v2327_v43, %v2326_v1  ;;  %v2345_v54 = vsel %vm831_vm1, %v2287_v7, 0.0  ;;  %v1931_v57 = vmax.f32 %v1914_v45, 1e-10  ;;  %v4472_v45 = vld [vmem:[#allocation34_spill] sm:$0xff] }
 0x459   :  { %v2060_v62 = vadd.f32 %v2059_v16, %v2058_v56  ;;  %v2346_v24 = vadd.f32 %v2345_v54, %v2344_v35  ;;  %v1618_v41 = vmul.f32 0.6931472, %v2987_v52  ;;  %2992 = vlog2.f32 %v1753_v40 }
 0x45a   :  { %v2187_v58 = vrot.slane %v2186_v26, 1  ;;  %v2329_v19 = vrot.slane %v2328_v17, 4  ;;  %2994 = vlog2.f32 %v1929_v20  ;;  %v2360_v48 = vrot.slane %v4471_v47, 1 }
 0x45b   :  { %v2347_v55 = vrot.slane %v2346_v24, 4  ;;  %v2412_v22 = vmul.f32 %v4461_v9, %v2282_v27  ;;  %v2075_v28 = vmax.f32 %v2042_v49, 1e-10  ;;  %v2205_v12 = vrot.slane %v2204_v11, 1 }
 0x45c   :  { %v2330_v33 = vadd.f32 %v2329_v19, %v2328_v17  ;;  %v2413_v37 = vmul.f32 %v4460_v53, %v2283_v63  ;;  %v2991_v2 = vpop.eup %2990  ;;  %2996 = vlog2.f32 %v1931_v57  ;;  %v2077_v46 = vmax.f32 %v2060_v62, 1e-10  ;;  %v4474_v62 = vld [vmem:[#allocation65_spill] sm:$0xff] }
 0x45d   :  { %v2348_v56 = vadd.f32 %v2347_v55, %v2346_v24  ;;  %v2416_v52 = vmul.f32 %v4465_v29, %v2286_v5  ;;  %v2188_v38 = vadd.f32 %v2187_v58, %v2186_v26  ;;  %v4473_v16 = vmax.f32 %v4472_v45, 1e-10 }
 0x45e   :  { %v2331_v40 = vrot.slane %v2330_v33, 2  ;;  %v2417_v14 = vmul.f32 %v4462_v3, %v2287_v7  ;;  %v2361_v9 = vadd.f32 %v2360_v48, %v4471_v47  ;;  %v2428_v27 = vmul.f32 1.12535176e-07, %v2412_v22  ;;  %v4475_v47 = vld [vmem:[#allocation56_spill] sm:$0xff] }
 0x45f   :  { %2998 = vlog2.f32 %v4473_v16  ;;  %v2349_v20 = vrot.slane %v2348_v56, 2  ;;  %v2429_v49 = vmul.f32 1.12535176e-07, %v2413_v37  ;;  %v1764_v1 = vmul.f32 0.6931472, %v2991_v2 }
 0x460   :  { %3000 = vlog2.f32 %v2075_v28  ;;  %v2206_v53 = vadd.f32 %v2205_v12, %v2204_v11  ;;  %v2332_v63 = vadd.f32 %v2331_v40, %v2330_v33  ;;  %v2432_v17 = vmul.f32 1.12535176e-07, %v2416_v52 }
 0x461   :  { %3002 = vlog2.f32 %v2077_v46  ;;  %v2350_v43 = vadd.f32 %v2349_v20, %v2348_v56  ;;  %v2433_v29 = vmul.f32 1.12535176e-07, %v2417_v14  ;;  %v2221_v5 = vmax.f32 %v2188_v38, 1e-10  ;;  %v4476_v46 = vld [vmem:[#allocation62_spill] sm:$0xff] }
 0x462   :  { %v2333_v26 = vrot.slane %v2332_v63, 1  ;;  %v2472_v35 = vsel %vm831_vm1, %v2428_v27, 0.0  ;;  %v2473_v54 = vsel %vm831_vm1, %v2429_v49, 0.0  ;;  %v2370_v7 = vmax.f32 %v2361_v9, 1e-10 }
 0x463   :  { %v2351_v3 = vrot.slane %v2350_v43, 1  ;;  %v2474_v57 = vadd.f32 %v2473_v54, %v2472_v35  ;;  %v2488_v24 = vrot.slane %v4474_v62, 1  ;;  %v2993_v58 = vpop.eup %2992  ;;  %v2223_v19 = vmax.f32 %v2206_v53, 1e-10 }
 0x464   :  { %v2334_v55 = vadd.f32 %v2333_v26, %v2332_v63  ;;  %v2491_v11 = vsel %vm831_vm1, %v2433_v29, 0.0  ;;  %v2504_v48 = vrot.slane %v4475_v47, 2  ;;  %v2995_v22 = vpop.eup %2994  ;;  %v2490_v37 = vsel %vm831_vm1, %v2432_v17, 0.0 }
 0x465   :  { %v2352_v28 = vadd.f32 %v2351_v3, %v2350_v43  ;;  %v2475_v12 = vrot.slane %v2474_v57, 4  ;;  %v2489_v33 = vadd.f32 %v2488_v24, %v4474_v62  ;;  %v4477_v56 = vmax.f32 %v4476_v46, 1e-10 }
 0x466   :  { %v2367_v2 = vmax.f32 %v2334_v55, 1e-10  ;;  %v2492_v52 = vadd.f32 %v2491_v11, %v2490_v37  ;;  %v2505_v38 = vadd.f32 %v2504_v48, %v4475_v47  ;;  %v2997_v45 = vpop.eup %2996  ;;  %v1622_v16 = vmul.f32 0.6931472, %v4207_v23  ;;  %v4479_v11 = vld [vmem:[#allocation63_spill] sm:$0xff] }
 0x467   :  { %3004 = vlog2.f32 %v4477_v56  ;;  %v2476_v40 = vadd.f32 %v2475_v12, %v2474_v57  ;;  %v2514_v14 = vmax.f32 %v2489_v33, 1e-10  ;;  %v1630_v9 = vmul.f32 %v3354_v51, %v1618_v41 }
 0x468   :  { %3006 = vlog2.f32 %v2221_v5  ;;  %v2493_v27 = vrot.slane %v2492_v52, 4  ;;  %v2506_v49 = vrot.slane %v2505_v38, 1  ;;  %v1768_v53 = vmul.f32 0.6931472, %v2993_v58  ;;  %v4478_v58 = vld [vmem:[#allocation23_spill] sm:$0xff] }
 0x469   :  { %v2999_v20 = vpop.eup %2998  ;;  %3008 = vlog2.f32 %v2370_v7  ;;  %v2369_v63 = vmax.f32 %v2352_v28, 1e-10  ;;  %v2477_v43 = vrot.slane %v2476_v40, 2  ;;  %v1776_v29 = vmul.f32 %v3839_v6, %v1764_v1 }
 0x46a   :  { %3010 = vlog2.f32 %v2223_v19  ;;  %v3001_v17 = vpop.eup %3000  ;;  %v2494_v26 = vadd.f32 %v2493_v27, %v2492_v52  ;;  %v2507_v35 = vadd.f32 %v2506_v49, %v2505_v38  ;;  %v1494_v5 = vadd.f32 %v4210_v4, %v4182_v42  ;;  %v4480_v4 = vld [vmem:[#allocation64_spill] sm:$0xff] }
 0x46b   :  { %3012 = vlog2.f32 %v2367_v2  ;;  %v3003_v23 = vpop.eup %3002  ;;  %v1632_v54 = vmul.f32 %v3354_v51, %v1622_v16  ;;  %v2478_v41 = vadd.f32 %v2477_v43, %v2476_v40  ;;  %v1638_v3 = vadd.f32 %v1630_v9, %v4217_v59 }
 0x46c   :  { %3014 = vlog2.f32 %v2514_v14  ;;  %v1942_v7 = vmul.f32 0.6931472, %v2995_v22  ;;  %v2495_v57 = vrot.slane %v2494_v26, 2  ;;  %v2516_v62 = vmax.f32 %v2507_v35, 1e-10 }
 0x46d   :  { %v1778_v24 = vmul.f32 %v3839_v6, %v1768_v53  ;;  %v2094_v1 = vmul.f32 0.6931472, %v4478_v58  ;;  %3016 = vlog2.f32 %v2369_v63  ;;  %v2479_v19 = vrot.slane %v2478_v41, 1 }
 0x46e   :  { %v1784_v55 = vadd.f32 %v1776_v29, %v1638_v3  ;;  %v2236_v47 = vmul.f32 0.6931472, %v4479_v11  ;;  %v2496_v48 = vadd.f32 %v2495_v57, %v2494_v26  ;;  %3018 = vlog2.f32 %v2516_v62 }
 0x46f   :  { %v1640_v42 = vadd.f32 %v1632_v54, %v1494_v5  ;;  %v1946_v51 = vmul.f32 0.6931472, %v2997_v45  ;;  %v2101_v28 = vmul.f32 %v3942_v15, %v4480_v4  ;;  %v2480_v59 = vadd.f32 %v2479_v19, %v2478_v41 }
 0x470   :  { %v1954_v12 = vmul.f32 %v4443_v32, %v1942_v7  ;;  %v1965_v6 = vadd.f32 %v4195_v21, %v4187_v8  ;;  %v2088_v33 = vmul.f32 0.6931472, %v3001_v17  ;;  %v2497_v37 = vrot.slane %v2496_v48, 1 }
 0x471   :  { %v3005_v22 = vpop.eup %3004  ;;  %v1786_v46 = vadd.f32 %v1778_v24, %v1640_v42  ;;  %v2103_v56 = vmul.f32 %v3942_v15, %v2094_v1  ;;  %v2109_v52 = vadd.f32 %v2101_v28, %v4198_v31  ;;  %v2513_v38 = vmax.f32 %v2480_v59, 1e-10 }
 0x472   :  { %v3007_v2 = vpop.eup %3006  ;;  %v1962_v16 = vadd.f32 %v1954_v12, %v1784_v55  ;;  %v2240_v40 = vmul.f32 0.6931472, %v2999_v20  ;;  %v2247_v14 = vmul.f32 %v3990_v18, %v2236_v47  ;;  %v2498_v9 = vadd.f32 %v2497_v37, %v2496_v48 }
 0x473   :  { %v3009_v45 = vpop.eup %3008  ;;  %v1956_v49 = vmul.f32 %v4443_v32, %v1946_v51  ;;  %v2092_v53 = vmul.f32 0.6931472, %v3003_v23  ;;  %v2382_v8 = vmul.f32 0.6931472, %v3005_v22  ;;  %3020 = vlog2.f32 %v2513_v38 }
 0x474   :  { %v3011_v27 = vpop.eup %3010  ;;  %v2100_v63 = vmul.f32 %v3942_v15, %v2088_v33  ;;  %v2111_v43 = vadd.f32 %v2103_v56, %v1965_v6  ;;  %v2234_v17 = vmul.f32 0.6931472, %v3007_v2  ;;  %v2515_v29 = vmax.f32 %v2498_v9, 1e-10 }
 0x475   :  { %v3013_v21 = vpop.eup %3012  ;;  %v2542_v26 = vadd.f32 %v4129_v0, %v4116_v30  ;;  %v2545_v20 = vadd.f32 %v4138_v13, %v4124_v34  ;;  %v1964_v35 = vadd.f32 %v1956_v49, %v1786_v46  ;;  %v2255_v5 = vadd.f32 %v2247_v14, %v2109_v52 }
 0x476   :  { %v3015_v31 = vpop.eup %3014  ;;  %v2108_v54 = vadd.f32 %v2100_v63, %v1962_v16  ;;  %v2249_v32 = vmul.f32 %v3990_v18, %v2240_v40  ;;  %v2386_v23 = vmul.f32 0.6931472, %v3009_v45  ;;  %3022 = vlog2.f32 %v2515_v29 }
 0x477   :  { %v3017_v41 = vpop.eup %3016  ;;  %v2102_v3 = vmul.f32 %v3942_v15, %v2092_v53  ;;  %v2238_v7 = vmul.f32 0.6931472, %v3011_v27  ;;  %v2393_v57 = vmul.f32 %v4019_v39, %v2382_v8  ;;  %v2528_v62 = vmul.f32 0.6931472, %v3015_v31 }
 0x478   :  { %v3019_v24 = vpop.eup %3018  ;;  %v2568_v30 = vmul.f32 %v2552_v44, %v4142_v36  ;;  %v2246_v34 = vmul.f32 %v3990_v18, %v2234_v17  ;;  %v2257_v0 = vadd.f32 %v2249_v32, %v2111_v43  ;;  %v2380_v13 = vmul.f32 0.6931472, %v3013_v21 }
 0x479   :  { %v2553_v58 = vrot.slane %v4082_v61, 2  ;;  %v2110_v1 = vadd.f32 %v2102_v3, %v1964_v35  ;;  %v2401_v19 = vadd.f32 %v2393_v57, %v2255_v5  ;;  %v2544_v15 = vadd.f32 %v4135_v10, %v4121_v50 }
 0x47a   :  { %v2254_v55 = vadd.f32 %v2246_v34, %v2108_v54  ;;  %v2395_v11 = vmul.f32 %v4019_v39, %v2386_v23  ;;  %v2532_v47 = vmul.f32 0.6931472, %v3019_v24  ;;  %v2567_v48 = vmul.f32 %v4082_v61, %v2542_v26 }
 0x47b   :  { %v2248_v42 = vmul.f32 %v3990_v18, %v2238_v7  ;;  %v2384_v44 = vmul.f32 0.6931472, %v3017_v41  ;;  %v2539_v36 = vmul.f32 %v4102_v60, %v2528_v62  ;;  %v2570_v51 = vmul.f32 %v2554_v25, %v2545_v20 }
 0x47c   :  { %v2583_v4 = vrot.slane %v2568_v30, 7  ;;  %v2392_v28 = vmul.f32 %v4019_v39, %v2380_v13  ;;  %v2403_v59 = vadd.f32 %v2395_v11, %v2257_v0  ;;  %v2556_v12 = vrot.slane %v4082_v61, 5 }
 0x47d   :  { %v3021_v22 = vpop.eup %3020  ;;  %v2256_v50 = vadd.f32 %v2248_v42, %v2110_v1  ;;  %v2547_v10 = vadd.f32 %v2539_v36, %v2401_v19  ;;  %v2569_v6 = vmul.f32 %v2553_v58, %v2544_v15  ;;  %v2541_v18 = vmul.f32 %v4102_v60, %v2532_v47 }
 0x47e   :  { %v2400_v33 = vadd.f32 %v2392_v28, %v2254_v55  ;;  %v2526_v37 = vmul.f32 0.6931472, %v3021_v22  ;;  %v2555_v2 = vrot.slane %v4082_v61, 4  ;;  %v2394_v46 = vmul.f32 %v4019_v39, %v2384_v44 }
 0x47f   :  { %v2549_v52 = vadd.f32 %v2541_v18, %v2403_v59  ;;  %v2585_v38 = vsel %vm2584_vm2, %v2583_v4, %v2567_v48  ;;  %v2572_v40 = vmul.f32 %v2556_v12, %v2547_v10  ;;  %v2589_v14 = vrot.slane %v2570_v51, 5 }
 0x480   :  { %v3023_v25 = vpop.eup %3022  ;;  %v2538_v56 = vmul.f32 %v4102_v60, %v2526_v37  ;;  %v2402_v45 = vadd.f32 %v2394_v46, %v2256_v50  ;;  %v2586_v9 = vrot.slane %v2569_v6, 6  ;;  %v2558_v49 = vrot.slane %v4082_v61, 7 }
 0x481   :  { %v2530_v16 = vmul.f32 0.6931472, %v3023_v25  ;;  %v2557_v8 = vrot.slane %v4082_v61, 6  ;;  %v2595_v29 = vrot.slane %v2572_v40, 3  ;;  %v2613_v62 = vstv %s4307_s5 }
 0x482   :  { %v2546_v27 = vadd.f32 %v2538_v56, %v2400_v33  ;;  %v2574_v21 = vmul.f32 %v2558_v49, %v2549_v52  ;;  %v2588_v63 = vsel %vm2587_vm3, %v2586_v9, %v2585_v38 }
 0x483   :  { %v2540_v53 = vmul.f32 %v4102_v60, %v2530_v16  ;;  %v2591_v17 = vsel %vm2590_vm4, %v2589_v14, %v2588_v63 }
 0x484   :  { %v2571_v39 = vmul.f32 %v2555_v2, %v2546_v27  ;;  %v2601_v35 = vrot.slane %v2574_v21, 1 }
 0x485   :  { %v2548_v43 = vadd.f32 %v2540_v53, %v2402_v45 }
 0x486   :  { %v2592_v31 = vrot.slane %v2571_v39, 4 }
 0x487   :  { %v2573_v26 = vmul.f32 %v2557_v8, %v2548_v43 }
 0x488   :  { %v2594_v20 = vsel %vm2593_vm5, %v2592_v31, %v2591_v17 }
 0x489   :  { %v2597_v5 = vsel %vm2596_vm6, %v2595_v29, %v2594_v20  ;;  %v2598_v54 = vrot.slane %v2573_v26, 2 }
 0x48b   :  { %v2600_v32 = vsel %vm2599_vm7, %v2598_v54, %v2597_v5 }
 0x48c   :  { %v2603_v60 = vsel %vm2602_vm8, %v2601_v35, %v2600_v32 }
 0x48d   :  { %v2605_v61 = vsel %vm831_vm1, %v2603_v60, 0.0 }
 0x48e   :  { %v2606_v23 = vrot.slane %v2605_v61, 4 }
 0x490   :  { %v2607_v41 = vadd.f32 %v2606_v23, %v2605_v61 }
 0x492   :  { %v2608_v3 = vrot.slane %v2607_v41, 2 }
 0x494   :  { %v2609_v7 = vadd.f32 %v2608_v3, %v2607_v41 }
 0x496   :  { %v2610_v57 = vrot.slane %v2609_v7, 1 }
 0x498   :  { %v2611_v24 = vadd.f32 %v2610_v57, %v2609_v7 }
 0x49a   :  { %v2614_v30 = vadd.f32 %v2613_v62, %v2611_v24 }
 0x49c   :  { %3024 = vtanh.f32 %v2614_v30 }
 0x4a6   :  { %v3025_v34 = vpop.eup %3024 }
 0x4a7   :  { %2617 = vst.msk [vmem:[#allocation10] sm:$0x1] %vm2616_vm9, %v3025_v34 }
 0x4a8   :  { %3093 = shalt.err (!%p3090_p11)
}
 0x4a9   :  { %s3094_s5 = scalar_lea.hbm %s4308_s6, 16 }
 0x4aa   :  { %p3095_p12 = scmp.ne.s32.totalorder %s4308_s6, %s3094_s5  ;;  %p3098_p13 = scmp.lt.u32.totalorder %s3094_s5, %s4308_s6 }
 0x4ac   :  { %p3100_p0 = pnand %p3098_p13, %p3095_p12 }
 0x4ae   :  { %3103 = shalt.err (!%p3100_p0)
}
 0x4af   :  { %2627 = dma.vmem_to_hbm [thread:$0]  %s2625_s17, 16, %s4308_s6, [#allocation5]  }
 0x4b0   :  { %3110 = dma.done.wait [#allocation5], 16  }
 0x4b1   :  { %3111 = vsyncadd [#allocation5], 4294967280 }
 0x4b2   :  { %2631 = vsyncpa [#allocation4], 1 }
 0x4b3   :  { %2632 = vsyncpa [#allocation8], 1 }
 0x4b4   :  { %2633 = vsyncpa [#allocation5], 1 }
 0x4b5   :  { %2634 = vsyncpa [#allocation6], 1 }

</bundles_post_ra>
